<compile_context>
chip_gen: v7x
topology: tpu7x:2x2x1
jax: 0.10.0
libtpu: 0.0.40
codegen_flags: <defaults>
</compile_context>

<pallas_src>
import jax
import jax.numpy as jnp
from jax import lax
from jax.experimental import pallas as pl
from jax.experimental.pallas import tpu as pltpu


def _pick_tile(n, cap, multiple):
    """Largest tile <= cap that divides n and is a multiple of `multiple`.

    Falls back to n itself (full extent is always a legal block dim)."""
    if n <= cap:
        return n
    t = (cap // multiple) * multiple
    while t >= multiple:
        if n % t == 0:
            return t
        t -= multiple
    return n


# ----------------------------------------------------------------------------
# Kernel 1: kNN — fused pairwise -||x_i - x_j||^2 + in-kernel top-k indices
# ----------------------------------------------------------------------------
def _make_knn_kernel(tn, k, n):
    def kernel(x_ref, xrt_ref, idx_ref):
        x = x_ref[...].astype(jnp.float32)        # (C, N)  full point cloud
        xr = xrt_ref[...].astype(jnp.float32)     # (TN, C) row slice (transposed)

        # gram[i, j] = <x_row_i, x_j>
        gram = jnp.dot(xr, x, preferred_element_type=jnp.float32)     # (TN, N)
        col_norm = jnp.sum(x * x, axis=0, keepdims=True)              # (1, N)
        row_norm = jnp.sum(xr * xr, axis=1, keepdims=True)            # (TN, 1)
        # negative squared distance; diagonal ~0 up to fp rounding (harmless
        # for the selection below).
        vals = 2.0 * gram - row_norm - col_norm                        # (TN, N)

        col_ids = lax.broadcasted_iota(jnp.int32, (tn, n), 1)
        k_ids = lax.broadcasted_iota(jnp.int32, (tn, k), 1)
        idx = jnp.zeros((tn, k), jnp.int32)
        # Iterative top-k (k is small): max along lanes, min-index tie break,
        # mask out the selected column. Avoids the (B, N, N) HBM round trip
        # and the slow XLA top_k entirely.
        for i in range(k):
            m = jnp.max(vals, axis=-1, keepdims=True)                  # (TN, 1)
            sel = jnp.min(jnp.where(vals == m, col_ids, n),
                          axis=-1, keepdims=True)                      # (TN, 1)
            idx = jnp.where(k_ids == i, sel, idx)
            vals = jnp.where(col_ids == sel, -jnp.inf, vals)
        idx_ref[...] = idx
    return kernel


def knn_indices(x, x_t, k):
    """x: (B, C, N) f32, x_t: (B, N, C) f32 -> (B, N, k) int32 neighbor ids."""
    B, C, N = x.shape
    tn = _pick_tile(N, 256, 8)
    kernel = _make_knn_kernel(tn, k, N)
    return pl.pallas_call(
        kernel,
        out_shape=jax.ShapeDtypeStruct((B, N, k), jnp.int32),
        grid=(B, N // tn),
        in_specs=[
            pl.BlockSpec((None, C, N), lambda b, t: (b, 0, 0)),   # resident per b
            pl.BlockSpec((None, tn, C), lambda b, t: (b, t, 0)),  # row tile
        ],
        out_specs=pl.BlockSpec((None, tn, k), lambda b, t: (b, t, 0)),
        compiler_params=pltpu.CompilerParams(
            dimension_semantics=("parallel", "parallel"),
            vmem_limit_bytes=64 * 1024 * 1024),
    )(x, x_t)


# ----------------------------------------------------------------------------
# Kernel 2: shared MLP (1x1 conv + folded BN + LeakyReLU) + max over k,
#           tiled over points, bf16 MXU matmuls, channels-first output.
# ----------------------------------------------------------------------------
def _make_edgeconv_kernel(tn, k, c_in, num_layers):
    def kernel(*refs):
        nbr_ref, ctr_ref = refs[0], refs[1]
        out_ref = refs[-1]
        lrefs = refs[2:-1]   # w_top, w_bot, aff0, then (w_i, aff_i) for i >= 1

        nbr = nbr_ref[...]                                    # (TN, k, C)  bf16
        ctr = ctr_ref[...]                                    # (TN, C)     bf16
        # Edge feature [x_j - x_i, x_i] is never concatenated: the first 1x1
        # conv is applied by linearity (diff @ W_top + ctr @ W_bot).
        diff = (nbr - ctr[:, None, :]).reshape(tn * k, c_in)  # (TN*k, C) bf16

        w_top = lrefs[0][...]                                 # (C, C1) bf16
        w_bot = lrefs[1][...]                                 # (C, C1) bf16
        aff0 = lrefs[2][...]                                  # (2, C1) f32

        h = jnp.dot(diff, w_top, preferred_element_type=jnp.float32)   # (TN*k, C1)
        base = jnp.dot(ctr, w_bot, preferred_element_type=jnp.float32)  # (TN, C1)
        c1 = h.shape[-1]
        h = (h.reshape(tn, k, c1) + base[:, None, :]).reshape(tn * k, c1)
        h = h * aff0[0:1, :] + aff0[1:2, :]                   # folded BatchNorm
        h = jnp.where(h > 0, h, 0.2 * h)                      # LeakyReLU(0.2)

        for i in range(1, num_layers):
            w = lrefs[3 + 2 * (i - 1)][...]                   # (C_in_i, C_out_i) bf16
            aff = lrefs[4 + 2 * (i - 1)][...]                 # (2, C_out_i) f32
            h = jnp.dot(h.astype(jnp.bfloat16), w,
                        preferred_element_type=jnp.float32)
            h = h * aff[0:1, :] + aff[1:2, :]
            h = jnp.where(h > 0, h, 0.2 * h)

        c_out = h.shape[-1]
        m = jnp.max(h.reshape(tn, k, c_out), axis=1)          # (TN, C_out) max over k
        out_ref[...] = jnp.transpose(m)                       # (C_out, TN) lane-dense
    return kernel


def edgeconv_mlp_max(nbr, ctr, weights, affines, k):
    """nbr: (B, N, k, C) bf16, ctr: (B, N, C) bf16 -> (B, c_last, N) f32."""
    B, N, _, C = nbr.shape
    num_layers = len(weights)
    c_last = weights[-1].shape[1]
    tn = _pick_tile(N, 256, 128)   # out tile (c_last, tn): lane dim multiple of 128 or full N

    w0 = weights[0]                                   # (2C, C1), rows = [diff | ctr]
    w_top = w0[:C, :].astype(jnp.bfloat16)
    w_bot = w0[C:, :].astype(jnp.bfloat16)

    args = [nbr, ctr, w_top, w_bot, affines[0]]
    in_specs = [
        pl.BlockSpec((None, tn, k, C), lambda b, t: (b, t, 0, 0)),
        pl.BlockSpec((None, tn, C), lambda b, t: (b, t, 0)),
        pl.BlockSpec(w_top.shape, lambda b, t: (0, 0)),       # resident weights
        pl.BlockSpec(w_bot.shape, lambda b, t: (0, 0)),
        pl.BlockSpec(affines[0].shape, lambda b, t: (0, 0)),
    ]
    for w, a in zip(weights[1:], affines[1:]):
        wb = w.astype(jnp.bfloat16)
        args.extend([wb, a])
        in_specs.append(pl.BlockSpec(wb.shape, lambda b, t: (0, 0)))
        in_specs.append(pl.BlockSpec(a.shape, lambda b, t: (0, 0)))

    kernel = _make_edgeconv_kernel(tn, k, C, num_layers)
    return pl.pallas_call(
        kernel,
        out_shape=jax.ShapeDtypeStruct((B, c_last, N), jnp.float32),
        grid=(B, N // tn),
        in_specs=in_specs,
        out_specs=pl.BlockSpec((None, c_last, tn), lambda b, t: (b, 0, t)),
        compiler_params=pltpu.CompilerParams(
            dimension_semantics=("parallel", "parallel"),
            vmem_limit_bytes=64 * 1024 * 1024),
    )(*args)


# ----------------------------------------------------------------------------
# Full EdgeConv forward
# ----------------------------------------------------------------------------
def edge_conv_forward(x, params, k):
    """x: (B, C, N) float32 -> (B, channel_list[-1], N) float32 (channels-first)."""
    x = x.astype(jnp.float32)
    x_t = jnp.transpose(x, (0, 2, 1))                         # (B, N, C)
    idx = knn_indices(x, x_t, k)                              # (B, N, k) int32
    x_bf = x_t.astype(jnp.bfloat16)
    # TODO(synk): the data-dependent neighbor gather stays as XLA glue; a fully
    # fused version would DMA-gather rows inside kernel 2 via per-row descriptors.
    nbr = jax.vmap(lambda xt, ix: jnp.take(xt, ix, axis=0))(x_bf, idx)  # (B, N, k, C)
    return edgeconv_mlp_max(nbr, x_bf, params["weights"], params["affines"], k)


def init_params(key, in_channel, channel_list, eps=1e-5):
    """Synthetic Conv2d(1x1, bias=False) + BatchNorm2d (eval-mode, folded)."""
    weights, affines = [], []
    last = in_channel
    for out_ch in channel_list:
        key, kw, kg, kb, km, kv = jax.random.split(key, 6)
        w = jax.random.normal(kw, (out_ch, last), jnp.float32) / jnp.sqrt(
            jnp.float32(last))
        gamma = jax.random.uniform(kg, (out_ch,), jnp.float32, 0.5, 1.5)
        beta = jax.random.normal(kb, (out_ch,), jnp.float32) * 0.1
        mean = jax.random.normal(km, (out_ch,), jnp.float32) * 0.1
        var = jax.random.uniform(kv, (out_ch,), jnp.float32, 0.5, 1.5)
        scale = gamma / jnp.sqrt(var + eps)
        shift = beta - mean * scale
        weights.append(jnp.transpose(w))                   # (C_in, C_out)
        affines.append(jnp.stack([scale, shift], axis=0))  # (2, C_out)
        last = out_ch
    return {"weights": weights, "affines": affines}


def edge_conv_reference(x, params, k):
    """Pure-JAX f32 reference matching the PyTorch EdgeConv forward."""
    x_t = jnp.transpose(x, (0, 2, 1))                                  # (B, N, C)
    sq = jnp.sum(x_t * x_t, axis=-1)                                   # (B, N)
    inner = jnp.einsum('bic,bjc->bij', x_t, x_t)
    pdist = 2.0 * inner - sq[:, :, None] - sq[:, None, :]
    idx = lax.top_k(pdist, k)[1]                                       # (B, N, k)
    nbr = jax.vmap(lambda xt, ix: xt[ix])(x_t, idx)                    # (B, N, k, C)
    ctr = jnp.broadcast_to(x_t[:, :, None, :], nbr.shape)
    h = jnp.concatenate([nbr - ctr, ctr], axis=-1)                     # (B, N, k, 2C)
    for w, a in zip(params["weights"], params["affines"]):
        h = jnp.einsum('bnkc,cd->bnkd', h, w)
        h = h * a[0] + a[1]
        h = jnp.where(h > 0, h, 0.2 * h)
    out = jnp.max(h, axis=2)                                           # (B, N, c_last)
    return jnp.transpose(out, (0, 2, 1))                               # (B, c_last, N)


if __name__ == "__main__":
    key = jax.random.PRNGKey(0)
    B, C, N, k = 2, 3, 32, 8           # x: (B, in_channel/2, N)
    channel_list = [32, 32]
    in_channel = 2 * C

    kx, kp = jax.random.split(key)
    x = jax.random.normal(kx, (B, C, N), jnp.float32)
    params = init_params(kp, in_channel, channel_list)

    fwd = jax.jit(edge_conv_forward, static_argnums=2)
    out = jax.block_until_ready(fwd(x, params, k))
    assert out.shape == (B, channel_list[-1], N), out.shape
    assert bool(jnp.all(jnp.isfinite(out)))

    ref = edge_conv_reference(x, params, k)
    err = float(jnp.max(jnp.abs(out - ref)))
    assert err < 0.3, f"max abs error vs f32 reference too large: {err}"
    print("KERNEL_OK")
</pallas_src>

<mosaic_0001>
module attributes {stable_mosaic.version = 11 : i64} {
  func.func @kernel(%arg0: i32, %arg1: i32, %arg2: memref<1x3x32xf32, #tpu.memory_space<vmem>>, %arg3: memref<1x32x3xf32, #tpu.memory_space<vmem>>, %arg4: memref<1x32x8xi32, #tpu.memory_space<vmem>>) attributes {dimension_semantics = [#tpu.dimension_semantics<parallel>, #tpu.dimension_semantics<parallel>], iteration_bounds = array<i64: 2, 1>, scalar_prefetch = 0 : i64, scratch_operands = 0 : i64, tpu.core_type = #tpu.core_type<tc>, window_params = [{transform_indices = @transform_0, window_bounds = array<i64: 1, 3, 32>}, {transform_indices = @transform_1, window_bounds = array<i64: 1, 32, 3>}, {transform_indices = @transform_2, window_bounds = array<i64: 1, 32, 8>}]} {
    %c0 = arith.constant 0 : index
    %c0_0 = arith.constant 0 : index
    %c0_1 = arith.constant 0 : index
    %0 = vector.load %arg2[%c0, %c0_0, %c0_1] : memref<1x3x32xf32, #tpu.memory_space<vmem>>, vector<1x3x32xf32>
    %1 = vector.shape_cast %0 : vector<1x3x32xf32> to vector<3x32xf32>
    %c0_2 = arith.constant 0 : index
    %c0_3 = arith.constant 0 : index
    %c0_4 = arith.constant 0 : index
    %2 = vector.load %arg3[%c0_2, %c0_3, %c0_4] : memref<1x32x3xf32, #tpu.memory_space<vmem>>, vector<1x32x3xf32>
    %3 = vector.shape_cast %2 : vector<1x32x3xf32> to vector<32x3xf32>
    %cst = arith.constant dense<0.000000e+00> : vector<32x32xf32>
    %4 = tpu.matmul %3, %1, %cst {dimension_numbers = #tpu.dot_dimension_numbers<[1], [0], [0], [1], [0, 0, 1, 1], [], []>} : vector<32x3xf32>, vector<3x32xf32>, vector<32x32xf32> -> vector<32x32xf32>
    %5 = arith.mulf %1, %1 : vector<3x32xf32>
    %cst_5 = arith.constant dense<0.000000e+00> : vector<32xf32>
    %6 = vector.multi_reduction <add>, %5, %cst_5 [0] : vector<3x32xf32> to vector<32xf32>
    %7 = vector.shape_cast %6 : vector<32xf32> to vector<1x32xf32>
    %8 = arith.mulf %3, %3 : vector<32x3xf32>
    %cst_6 = arith.constant dense<0.000000e+00> : vector<32xf32>
    %9 = vector.multi_reduction <add>, %8, %cst_6 [1] : vector<32x3xf32> to vector<32xf32>
    %10 = vector.shape_cast %9 : vector<32xf32> to vector<32x1xf32>
    %cst_7 = arith.constant 2.000000e+00 : f32
    %11 = vector.broadcast %cst_7 : f32 to vector<32x32xf32>
    %12 = arith.mulf %11, %4 : vector<32x32xf32>
    %13 = vector.broadcast %10 : vector<32x1xf32> to vector<32x32xf32>
    %14 = arith.subf %12, %13 : vector<32x32xf32>
    %15 = vector.broadcast %7 : vector<1x32xf32> to vector<32x32xf32>
    %16 = arith.subf %14, %15 : vector<32x32xf32>
    %17 = tpu.iota {dimensions = array<i32: 1>} : vector<32x32xi32>
    %18 = tpu.iota {dimensions = array<i32: 1>} : vector<32x8xi32>
    %c0_i32 = arith.constant 0 : i32
    %19 = vector.broadcast %c0_i32 : i32 to vector<32x8xi32>
    %cst_8 = arith.constant dense<0xFF800000> : vector<32xf32>
    %20 = vector.multi_reduction <maximumf>, %16, %cst_8 [1] : vector<32x32xf32> to vector<32xf32>
    %21 = vector.shape_cast %20 : vector<32xf32> to vector<32x1xf32>
    %22 = vector.broadcast %21 : vector<32x1xf32> to vector<32x32xf32>
    %23 = arith.cmpf oeq, %16, %22 : vector<32x32xf32>
    %c32_i32 = arith.constant 32 : i32
    %24 = vector.broadcast %c32_i32 : i32 to vector<32x32xi32>
    %25 = arith.select %23, %17, %24 : vector<32x32xi1>, vector<32x32xi32>
    %cst_9 = arith.constant dense<2147483647> : vector<32xi32>
    %26 = vector.multi_reduction <minsi>, %25, %cst_9 [1] : vector<32x32xi32> to vector<32xi32>
    %27 = vector.shape_cast %26 : vector<32xi32> to vector<32x1xi32>
    %c0_i32_10 = arith.constant 0 : i32
    %28 = vector.broadcast %c0_i32_10 : i32 to vector<32x8xi32>
    %29 = arith.cmpi eq, %18, %28 : vector<32x8xi32>
    %30 = vector.shape_cast %27 : vector<32x1xi32> to vector<32x1xi32>
    %31 = vector.broadcast %30 : vector<32x1xi32> to vector<32x8xi32>
    %32 = arith.select %29, %31, %19 : vector<32x8xi1>, vector<32x8xi32>
    %33 = vector.broadcast %27 : vector<32x1xi32> to vector<32x32xi32>
    %34 = arith.cmpi eq, %17, %33 : vector<32x32xi32>
    %cst_11 = arith.constant 0xFF800000 : f32
    %35 = vector.broadcast %cst_11 : f32 to vector<32x32xf32>
    %36 = arith.select %34, %35, %16 : vector<32x32xi1>, vector<32x32xf32>
    %cst_12 = arith.constant dense<0xFF800000> : vector<32xf32>
    %37 = vector.multi_reduction <maximumf>, %36, %cst_12 [1] : vector<32x32xf32> to vector<32xf32>
    %38 = vector.shape_cast %37 : vector<32xf32> to vector<32x1xf32>
    %39 = vector.broadcast %38 : vector<32x1xf32> to vector<32x32xf32>
    %40 = arith.cmpf oeq, %36, %39 : vector<32x32xf32>
    %c32_i32_13 = arith.constant 32 : i32
    %41 = vector.broadcast %c32_i32_13 : i32 to vector<32x32xi32>
    %42 = arith.select %40, %17, %41 : vector<32x32xi1>, vector<32x32xi32>
    %cst_14 = arith.constant dense<2147483647> : vector<32xi32>
    %43 = vector.multi_reduction <minsi>, %42, %cst_14 [1] : vector<32x32xi32> to vector<32xi32>
    %44 = vector.shape_cast %43 : vector<32xi32> to vector<32x1xi32>
    %c1_i32 = arith.constant 1 : i32
    %45 = vector.broadcast %c1_i32 : i32 to vector<32x8xi32>
    %46 = arith.cmpi eq, %18, %45 : vector<32x8xi32>
    %47 = vector.shape_cast %44 : vector<32x1xi32> to vector<32x1xi32>
    %48 = vector.broadcast %47 : vector<32x1xi32> to vector<32x8xi32>
    %49 = arith.select %46, %48, %32 : vector<32x8xi1>, vector<32x8xi32>
    %50 = vector.broadcast %44 : vector<32x1xi32> to vector<32x32xi32>
    %51 = arith.cmpi eq, %17, %50 : vector<32x32xi32>
    %cst_15 = arith.constant 0xFF800000 : f32
    %52 = vector.broadcast %cst_15 : f32 to vector<32x32xf32>
    %53 = arith.select %51, %52, %36 : vector<32x32xi1>, vector<32x32xf32>
    %cst_16 = arith.constant dense<0xFF800000> : vector<32xf32>
    %54 = vector.multi_reduction <maximumf>, %53, %cst_16 [1] : vector<32x32xf32> to vector<32xf32>
    %55 = vector.shape_cast %54 : vector<32xf32> to vector<32x1xf32>
    %56 = vector.broadcast %55 : vector<32x1xf32> to vector<32x32xf32>
    %57 = arith.cmpf oeq, %53, %56 : vector<32x32xf32>
    %c32_i32_17 = arith.constant 32 : i32
    %58 = vector.broadcast %c32_i32_17 : i32 to vector<32x32xi32>
    %59 = arith.select %57, %17, %58 : vector<32x32xi1>, vector<32x32xi32>
    %cst_18 = arith.constant dense<2147483647> : vector<32xi32>
    %60 = vector.multi_reduction <minsi>, %59, %cst_18 [1] : vector<32x32xi32> to vector<32xi32>
    %61 = vector.shape_cast %60 : vector<32xi32> to vector<32x1xi32>
    %c2_i32 = arith.constant 2 : i32
    %62 = vector.broadcast %c2_i32 : i32 to vector<32x8xi32>
    %63 = arith.cmpi eq, %18, %62 : vector<32x8xi32>
    %64 = vector.shape_cast %61 : vector<32x1xi32> to vector<32x1xi32>
    %65 = vector.broadcast %64 : vector<32x1xi32> to vector<32x8xi32>
    %66 = arith.select %63, %65, %49 : vector<32x8xi1>, vector<32x8xi32>
    %67 = vector.broadcast %61 : vector<32x1xi32> to vector<32x32xi32>
    %68 = arith.cmpi eq, %17, %67 : vector<32x32xi32>
    %cst_19 = arith.constant 0xFF800000 : f32
    %69 = vector.broadcast %cst_19 : f32 to vector<32x32xf32>
    %70 = arith.select %68, %69, %53 : vector<32x32xi1>, vector<32x32xf32>
    %cst_20 = arith.constant dense<0xFF800000> : vector<32xf32>
    %71 = vector.multi_reduction <maximumf>, %70, %cst_20 [1] : vector<32x32xf32> to vector<32xf32>
    %72 = vector.shape_cast %71 : vector<32xf32> to vector<32x1xf32>
    %73 = vector.broadcast %72 : vector<32x1xf32> to vector<32x32xf32>
    %74 = arith.cmpf oeq, %70, %73 : vector<32x32xf32>
    %c32_i32_21 = arith.constant 32 : i32
    %75 = vector.broadcast %c32_i32_21 : i32 to vector<32x32xi32>
    %76 = arith.select %74, %17, %75 : vector<32x32xi1>, vector<32x32xi32>
    %cst_22 = arith.constant dense<2147483647> : vector<32xi32>
    %77 = vector.multi_reduction <minsi>, %76, %cst_22 [1] : vector<32x32xi32> to vector<32xi32>
    %78 = vector.shape_cast %77 : vector<32xi32> to vector<32x1xi32>
    %c3_i32 = arith.constant 3 : i32
    %79 = vector.broadcast %c3_i32 : i32 to vector<32x8xi32>
    %80 = arith.cmpi eq, %18, %79 : vector<32x8xi32>
    %81 = vector.shape_cast %78 : vector<32x1xi32> to vector<32x1xi32>
    %82 = vector.broadcast %81 : vector<32x1xi32> to vector<32x8xi32>
    %83 = arith.select %80, %82, %66 : vector<32x8xi1>, vector<32x8xi32>
    %84 = vector.broadcast %78 : vector<32x1xi32> to vector<32x32xi32>
    %85 = arith.cmpi eq, %17, %84 : vector<32x32xi32>
    %cst_23 = arith.constant 0xFF800000 : f32
    %86 = vector.broadcast %cst_23 : f32 to vector<32x32xf32>
    %87 = arith.select %85, %86, %70 : vector<32x32xi1>, vector<32x32xf32>
    %cst_24 = arith.constant dense<0xFF800000> : vector<32xf32>
    %88 = vector.multi_reduction <maximumf>, %87, %cst_24 [1] : vector<32x32xf32> to vector<32xf32>
    %89 = vector.shape_cast %88 : vector<32xf32> to vector<32x1xf32>
    %90 = vector.broadcast %89 : vector<32x1xf32> to vector<32x32xf32>
    %91 = arith.cmpf oeq, %87, %90 : vector<32x32xf32>
    %c32_i32_25 = arith.constant 32 : i32
    %92 = vector.broadcast %c32_i32_25 : i32 to vector<32x32xi32>
    %93 = arith.select %91, %17, %92 : vector<32x32xi1>, vector<32x32xi32>
    %cst_26 = arith.constant dense<2147483647> : vector<32xi32>
    %94 = vector.multi_reduction <minsi>, %93, %cst_26 [1] : vector<32x32xi32> to vector<32xi32>
    %95 = vector.shape_cast %94 : vector<32xi32> to vector<32x1xi32>
    %c4_i32 = arith.constant 4 : i32
    %96 = vector.broadcast %c4_i32 : i32 to vector<32x8xi32>
    %97 = arith.cmpi eq, %18, %96 : vector<32x8xi32>
    %98 = vector.shape_cast %95 : vector<32x1xi32> to vector<32x1xi32>
    %99 = vector.broadcast %98 : vector<32x1xi32> to vector<32x8xi32>
    %100 = arith.select %97, %99, %83 : vector<32x8xi1>, vector<32x8xi32>
    %101 = vector.broadcast %95 : vector<32x1xi32> to vector<32x32xi32>
    %102 = arith.cmpi eq, %17, %101 : vector<32x32xi32>
    %cst_27 = arith.constant 0xFF800000 : f32
    %103 = vector.broadcast %cst_27 : f32 to vector<32x32xf32>
    %104 = arith.select %102, %103, %87 : vector<32x32xi1>, vector<32x32xf32>
    %cst_28 = arith.constant dense<0xFF800000> : vector<32xf32>
    %105 = vector.multi_reduction <maximumf>, %104, %cst_28 [1] : vector<32x32xf32> to vector<32xf32>
    %106 = vector.shape_cast %105 : vector<32xf32> to vector<32x1xf32>
    %107 = vector.broadcast %106 : vector<32x1xf32> to vector<32x32xf32>
    %108 = arith.cmpf oeq, %104, %107 : vector<32x32xf32>
    %c32_i32_29 = arith.constant 32 : i32
    %109 = vector.broadcast %c32_i32_29 : i32 to vector<32x32xi32>
    %110 = arith.select %108, %17, %109 : vector<32x32xi1>, vector<32x32xi32>
    %cst_30 = arith.constant dense<2147483647> : vector<32xi32>
    %111 = vector.multi_reduction <minsi>, %110, %cst_30 [1] : vector<32x32xi32> to vector<32xi32>
    %112 = vector.shape_cast %111 : vector<32xi32> to vector<32x1xi32>
    %c5_i32 = arith.constant 5 : i32
    %113 = vector.broadcast %c5_i32 : i32 to vector<32x8xi32>
    %114 = arith.cmpi eq, %18, %113 : vector<32x8xi32>
    %115 = vector.shape_cast %112 : vector<32x1xi32> to vector<32x1xi32>
    %116 = vector.broadcast %115 : vector<32x1xi32> to vector<32x8xi32>
    %117 = arith.select %114, %116, %100 : vector<32x8xi1>, vector<32x8xi32>
    %118 = vector.broadcast %112 : vector<32x1xi32> to vector<32x32xi32>
    %119 = arith.cmpi eq, %17, %118 : vector<32x32xi32>
    %cst_31 = arith.constant 0xFF800000 : f32
    %120 = vector.broadcast %cst_31 : f32 to vector<32x32xf32>
    %121 = arith.select %119, %120, %104 : vector<32x32xi1>, vector<32x32xf32>
    %cst_32 = arith.constant dense<0xFF800000> : vector<32xf32>
    %122 = vector.multi_reduction <maximumf>, %121, %cst_32 [1] : vector<32x32xf32> to vector<32xf32>
    %123 = vector.shape_cast %122 : vector<32xf32> to vector<32x1xf32>
    %124 = vector.broadcast %123 : vector<32x1xf32> to vector<32x32xf32>
    %125 = arith.cmpf oeq, %121, %124 : vector<32x32xf32>
    %c32_i32_33 = arith.constant 32 : i32
    %126 = vector.broadcast %c32_i32_33 : i32 to vector<32x32xi32>
    %127 = arith.select %125, %17, %126 : vector<32x32xi1>, vector<32x32xi32>
    %cst_34 = arith.constant dense<2147483647> : vector<32xi32>
    %128 = vector.multi_reduction <minsi>, %127, %cst_34 [1] : vector<32x32xi32> to vector<32xi32>
    %129 = vector.shape_cast %128 : vector<32xi32> to vector<32x1xi32>
    %c6_i32 = arith.constant 6 : i32
    %130 = vector.broadcast %c6_i32 : i32 to vector<32x8xi32>
    %131 = arith.cmpi eq, %18, %130 : vector<32x8xi32>
    %132 = vector.shape_cast %129 : vector<32x1xi32> to vector<32x1xi32>
    %133 = vector.broadcast %132 : vector<32x1xi32> to vector<32x8xi32>
    %134 = arith.select %131, %133, %117 : vector<32x8xi1>, vector<32x8xi32>
    %135 = vector.broadcast %129 : vector<32x1xi32> to vector<32x32xi32>
    %136 = arith.cmpi eq, %17, %135 : vector<32x32xi32>
    %cst_35 = arith.constant 0xFF800000 : f32
    %137 = vector.broadcast %cst_35 : f32 to vector<32x32xf32>
    %138 = arith.select %136, %137, %121 : vector<32x32xi1>, vector<32x32xf32>
    %cst_36 = arith.constant dense<0xFF800000> : vector<32xf32>
    %139 = vector.multi_reduction <maximumf>, %138, %cst_36 [1] : vector<32x32xf32> to vector<32xf32>
    %140 = vector.shape_cast %139 : vector<32xf32> to vector<32x1xf32>
    %141 = vector.broadcast %140 : vector<32x1xf32> to vector<32x32xf32>
    %142 = arith.cmpf oeq, %138, %141 : vector<32x32xf32>
    %c32_i32_37 = arith.constant 32 : i32
    %143 = vector.broadcast %c32_i32_37 : i32 to vector<32x32xi32>
    %144 = arith.select %142, %17, %143 : vector<32x32xi1>, vector<32x32xi32>
    %cst_38 = arith.constant dense<2147483647> : vector<32xi32>
    %145 = vector.multi_reduction <minsi>, %144, %cst_38 [1] : vector<32x32xi32> to vector<32xi32>
    %146 = vector.shape_cast %145 : vector<32xi32> to vector<32x1xi32>
    %c7_i32 = arith.constant 7 : i32
    %147 = vector.broadcast %c7_i32 : i32 to vector<32x8xi32>
    %148 = arith.cmpi eq, %18, %147 : vector<32x8xi32>
    %149 = vector.shape_cast %146 : vector<32x1xi32> to vector<32x1xi32>
    %150 = vector.broadcast %149 : vector<32x1xi32> to vector<32x8xi32>
    %151 = arith.select %148, %150, %134 : vector<32x8xi1>, vector<32x8xi32>
    %c0_39 = arith.constant 0 : index
    %c0_40 = arith.constant 0 : index
    %c0_41 = arith.constant 0 : index
    %152 = vector.load %arg4[%c0_39, %c0_40, %c0_41] : memref<1x32x8xi32, #tpu.memory_space<vmem>>, vector<1x32x8xi32>
    %153 = vector.shape_cast %152 : vector<1x32x8xi32> to vector<32x8xi32>
    %154 = vector.shape_cast %151 : vector<32x8xi32> to vector<1x32x8xi32>
    tpu.vector_store %arg4[%c0_39, %c0_40, %c0_41], %154 {strides = array<i32>} : memref<1x32x8xi32, #tpu.memory_space<vmem>>, vector<1x32x8xi32>,
    return
  }
  func.func @transform_0(%arg0: i32, %arg1: i32) -> (i32, i32, i32) {
    %c0_i32 = arith.constant 0 : i32
    %c0_i32_0 = arith.constant 0 : i32
    %c0_i32_1 = arith.constant 0 : i32
    return %arg0, %c0_i32, %c0_i32_0 : i32, i32, i32
  }
  func.func @transform_1(%arg0: i32, %arg1: i32) -> (i32, i32, i32) {
    %c0_i32 = arith.constant 0 : i32
    %c0_i32_0 = arith.constant 0 : i32
    return %arg0, %arg1, %c0_i32 : i32, i32, i32
  }
  func.func @transform_2(%arg0: i32, %arg1: i32) -> (i32, i32, i32) {
    %c0_i32 = arith.constant 0 : i32
    %c0_i32_0 = arith.constant 0 : i32
    return %arg0, %arg1, %c0_i32 : i32, i32, i32
  }
}

module attributes {stable_mosaic.version = 11 : i64} {
  func.func @kernel(%arg0: i32, %arg1: i32, %arg2: memref<1x32x8x3xbf16, #tpu.memory_space<vmem>>, %arg3: memref<1x32x3xbf16, #tpu.memory_space<vmem>>, %arg4: memref<3x32xbf16, #tpu.memory_space<vmem>>, %arg5: memref<3x32xbf16, #tpu.memory_space<vmem>>, %arg6: memref<2x32xf32, #tpu.memory_space<vmem>>, %arg7: memref<32x32xbf16, #tpu.memory_space<vmem>>, %arg8: memref<2x32xf32, #tpu.memory_space<vmem>>, %arg9: memref<1x32x32xf32, #tpu.memory_space<vmem>>) attributes {dimension_semantics = [#tpu.dimension_semantics<parallel>, #tpu.dimension_semantics<parallel>], iteration_bounds = array<i64: 2, 1>, scalar_prefetch = 0 : i64, scratch_operands = 0 : i64, tpu.core_type = #tpu.core_type<tc>, window_params = [{transform_indices = @transform_0, window_bounds = array<i64: 1, 32, 8, 3>}, {transform_indices = @transform_1, window_bounds = array<i64: 1, 32, 3>}, {pipeline_mode = #tpu.pipeline_mode<synchronous>, transform_indices = @transform_2, window_bounds = array<i64: 3, 32>}, {pipeline_mode = #tpu.pipeline_mode<synchronous>, transform_indices = @transform_3, window_bounds = array<i64: 3, 32>}, {pipeline_mode = #tpu.pipeline_mode<synchronous>, transform_indices = @transform_4, window_bounds = array<i64: 2, 32>}, {pipeline_mode = #tpu.pipeline_mode<synchronous>, transform_indices = @transform_5, window_bounds = array<i64: 32, 32>}, {pipeline_mode = #tpu.pipeline_mode<synchronous>, transform_indices = @transform_6, window_bounds = array<i64: 2, 32>}, {transform_indices = @transform_7, window_bounds = array<i64: 1, 32, 32>}]} {
    %c0 = arith.constant 0 : index
    %c0_0 = arith.constant 0 : index
    %c0_1 = arith.constant 0 : index
    %c0_2 = arith.constant 0 : index
    %0 = vector.load %arg2[%c0, %c0_0, %c0_1, %c0_2] : memref<1x32x8x3xbf16, #tpu.memory_space<vmem>>, vector<1x32x8x3xbf16>
    %1 = vector.shape_cast %0 : vector<1x32x8x3xbf16> to vector<32x8x3xbf16>
    %c0_3 = arith.constant 0 : index
    %c0_4 = arith.constant 0 : index
    %c0_5 = arith.constant 0 : index
    %2 = vector.load %arg3[%c0_3, %c0_4, %c0_5] : memref<1x32x3xbf16, #tpu.memory_space<vmem>>, vector<1x32x3xbf16>
    %3 = vector.shape_cast %2 : vector<1x32x3xbf16> to vector<32x3xbf16>
    %4 = vector.shape_cast %3 : vector<32x3xbf16> to vector<32x1x3xbf16>
    %5 = vector.broadcast %4 : vector<32x1x3xbf16> to vector<32x8x3xbf16>
    %6 = arith.subf %1, %5 : vector<32x8x3xbf16>
    %7 = vector.shape_cast %6 : vector<32x8x3xbf16> to vector<256x3xbf16>
    %c0_6 = arith.constant 0 : index
    %c0_7 = arith.constant 0 : index
    %8 = vector.load %arg4[%c0_6, %c0_7] : memref<3x32xbf16, #tpu.memory_space<vmem>>, vector<3x32xbf16>
    %c0_8 = arith.constant 0 : index
    %c0_9 = arith.constant 0 : index
    %9 = vector.load %arg5[%c0_8, %c0_9] : memref<3x32xbf16, #tpu.memory_space<vmem>>, vector<3x32xbf16>
    %c0_10 = arith.constant 0 : index
    %c0_11 = arith.constant 0 : index
    %10 = vector.load %arg6[%c0_10, %c0_11] : memref<2x32xf32, #tpu.memory_space<vmem>>, vector<2x32xf32>
    %cst = arith.constant dense<0.000000e+00> : vector<256x32xf32>
    %11 = tpu.matmul %7, %8, %cst {dimension_numbers = #tpu.dot_dimension_numbers<[1], [0], [0], [1], [0, 0, 1, 1], [], []>} : vector<256x3xbf16>, vector<3x32xbf16>, vector<256x32xf32> -> vector<256x32xf32>
    %cst_12 = arith.constant dense<0.000000e+00> : vector<32x32xf32>
    %12 = tpu.matmul %3, %9, %cst_12 {dimension_numbers = #tpu.dot_dimension_numbers<[1], [0], [0], [1], [0, 0, 1, 1], [], []>} : vector<32x3xbf16>, vector<3x32xbf16>, vector<32x32xf32> -> vector<32x32xf32>
    %13 = vector.shape_cast %11 : vector<256x32xf32> to vector<32x8x32xf32>
    %14 = vector.shape_cast %12 : vector<32x32xf32> to vector<32x1x32xf32>
    %15 = vector.broadcast %14 : vector<32x1x32xf32> to vector<32x8x32xf32>
    %16 = arith.addf %13, %15 : vector<32x8x32xf32>
    %17 = vector.shape_cast %16 : vector<32x8x32xf32> to vector<256x32xf32>
    %18 = vector.extract_strided_slice %10 {offsets = [0, 0], sizes = [1, 32], strides = [1, 1]} : vector<2x32xf32> to vector<1x32xf32>
    %19 = vector.broadcast %18 : vector<1x32xf32> to vector<256x32xf32>
    %20 = arith.mulf %17, %19 : vector<256x32xf32>
    %21 = vector.extract_strided_slice %10 {offsets = [1, 0], sizes = [1, 32], strides = [1, 1]} : vector<2x32xf32> to vector<1x32xf32>
    %22 = vector.broadcast %21 : vector<1x32xf32> to vector<256x32xf32>
    %23 = arith.addf %20, %22 : vector<256x32xf32>
    %cst_13 = arith.constant 0.000000e+00 : f32
    %24 = vector.broadcast %cst_13 : f32 to vector<256x32xf32>
    %25 = arith.cmpf ogt, %23, %24 : vector<256x32xf32>
    %cst_14 = arith.constant 2.000000e-01 : f32
    %26 = vector.broadcast %cst_14 : f32 to vector<256x32xf32>
    %27 = arith.mulf %26, %23 : vector<256x32xf32>
    %28 = arith.select %25, %23, %27 : vector<256x32xi1>, vector<256x32xf32>
    %c0_15 = arith.constant 0 : index
    %c0_16 = arith.constant 0 : index
    %29 = vector.load %arg7[%c0_15, %c0_16] : memref<32x32xbf16, #tpu.memory_space<vmem>>, vector<32x32xbf16>
    %c0_17 = arith.constant 0 : index
    %c0_18 = arith.constant 0 : index
    %30 = vector.load %arg8[%c0_17, %c0_18] : memref<2x32xf32, #tpu.memory_space<vmem>>, vector<2x32xf32>
    %31 = arith.truncf %28 : vector<256x32xf32> to vector<256x32xbf16>
    %cst_19 = arith.constant dense<0.000000e+00> : vector<256x32xf32>
    %32 = tpu.matmul %31, %29, %cst_19 {dimension_numbers = #tpu.dot_dimension_numbers<[1], [0], [0], [1], [0, 0, 1, 1], [], []>} : vector<256x32xbf16>, vector<32x32xbf16>, vector<256x32xf32> -> vector<256x32xf32>
    %33 = vector.extract_strided_slice %30 {offsets = [0, 0], sizes = [1, 32], strides = [1, 1]} : vector<2x32xf32> to vector<1x32xf32>
    %34 = vector.broadcast %33 : vector<1x32xf32> to vector<256x32xf32>
    %35 = arith.mulf %32, %34 : vector<256x32xf32>
    %36 = vector.extract_strided_slice %30 {offsets = [1, 0], sizes = [1, 32], strides = [1, 1]} : vector<2x32xf32> to vector<1x32xf32>
    %37 = vector.broadcast %36 : vector<1x32xf32> to vector<256x32xf32>
    %38 = arith.addf %35, %37 : vector<256x32xf32>
    %cst_20 = arith.constant 0.000000e+00 : f32
    %39 = vector.broadcast %cst_20 : f32 to vector<256x32xf32>
    %40 = arith.cmpf ogt, %38, %39 : vector<256x32xf32>
    %cst_21 = arith.constant 2.000000e-01 : f32
    %41 = vector.broadcast %cst_21 : f32 to vector<256x32xf32>
    %42 = arith.mulf %41, %38 : vector<256x32xf32>
    %43 = arith.select %40, %38, %42 : vector<256x32xi1>, vector<256x32xf32>
    %44 = vector.shape_cast %43 : vector<256x32xf32> to vector<32x8x32xf32>
    %cst_22 = arith.constant dense<0xFF800000> : vector<32x32xf32>
    %45 = vector.multi_reduction <maximumf>, %44, %cst_22 [1] : vector<32x8x32xf32> to vector<32x32xf32>
    %46 = tpu.transpose %45, [1, 0] : vector<32x32xf32> -> vector<32x32xf32>
    %c0_23 = arith.constant 0 : index
    %c0_24 = arith.constant 0 : index
    %c0_25 = arith.constant 0 : index
    %47 = vector.load %arg9[%c0_23, %c0_24, %c0_25] : memref<1x32x32xf32, #tpu.memory_space<vmem>>, vector<1x32x32xf32>
    %48 = vector.shape_cast %47 : vector<1x32x32xf32> to vector<32x32xf32>
    %49 = vector.shape_cast %46 : vector<32x32xf32> to vector<1x32x32xf32>
    tpu.vector_store %arg9[%c0_23, %c0_24, %c0_25], %49 {strides = array<i32>} : memref<1x32x32xf32, #tpu.memory_space<vmem>>, vector<1x32x32xf32>,
    return
  }
  func.func @transform_0(%arg0: i32, %arg1: i32) -> (i32, i32, i32, i32) {
    %c0_i32 = arith.constant 0 : i32
    %c0_i32_0 = arith.constant 0 : i32
    %c0_i32_1 = arith.constant 0 : i32
    return %arg0, %arg1, %c0_i32, %c0_i32_0 : i32, i32, i32, i32
  }
  func.func @transform_1(%arg0: i32, %arg1: i32) -> (i32, i32, i32) {
    %c0_i32 = arith.constant 0 : i32
    %c0_i32_0 = arith.constant 0 : i32
    return %arg0, %arg1, %c0_i32 : i32, i32, i32
  }
  func.func @transform_2(%arg0: i32, %arg1: i32) -> (i32, i32) {
    %c0_i32 = arith.constant 0 : i32
    %c0_i32_0 = arith.constant 0 : i32
    %c0_i32_1 = arith.constant 0 : i32
    return %c0_i32, %c0_i32_0 : i32, i32
  }
  func.func @transform_3(%arg0: i32, %arg1: i32) -> (i32, i32) {
    %c0_i32 = arith.constant 0 : i32
    %c0_i32_0 = arith.constant 0 : i32
    %c0_i32_1 = arith.constant 0 : i32
    return %c0_i32, %c0_i32_0 : i32, i32
  }
  func.func @transform_4(%arg0: i32, %arg1: i32) -> (i32, i32) {
    %c0_i32 = arith.constant 0 : i32
    %c0_i32_0 = arith.constant 0 : i32
    %c0_i32_1 = arith.constant 0 : i32
    return %c0_i32, %c0_i32_0 : i32, i32
  }
  func.func @transform_5(%arg0: i32, %arg1: i32) -> (i32, i32) {
    %c0_i32 = arith.constant 0 : i32
    %c0_i32_0 = arith.constant 0 : i32
    %c0_i32_1 = arith.constant 0 : i32
    return %c0_i32, %c0_i32_0 : i32, i32
  }
  func.func @transform_6(%arg0: i32, %arg1: i32) -> (i32, i32) {
    %c0_i32 = arith.constant 0 : i32
    %c0_i32_0 = arith.constant 0 : i32
    %c0_i32_1 = arith.constant 0 : i32
    return %c0_i32, %c0_i32_0 : i32, i32
  }
  func.func @transform_7(%arg0: i32, %arg1: i32) -> (i32, i32, i32) {
    %c0_i32 = arith.constant 0 : i32
    %c0_i32_0 = arith.constant 0 : i32
    return %arg0, %c0_i32, %arg1 : i32, i32, i32
  }
}

</mosaic_0001>

<bundles_post_ra>
// kernel: edge_conv_forward.2
= control target key start
LH: loop header
LB: loop body
LE: loop exit
PB: predicated region body
PF: predicated region fallthrough
CT: control target
= control target key end

     0   :  { %7 = vsyncpa [#allocation3], 0  ;;  %s2181_s0 = inlined_call_operand.hbm [shape: f32[2,3,32], index: 0, kind: input, shape index: {}]   ;;  %s2182_s1 = inlined_call_operand.hbm [shape: f32[2,32,3], index: 1, kind: input, shape index: {}]   ;;  %s2183_s2 = inlined_call_operand.hbm [shape: s32[2,32,8], index: 2, kind: output, shape index: {}]  }
   0x1   :  { %9 = vsyncpa [#allocation3 + $0x1], 0 }
   0x2   :  { %10 = vsyncpa [#allocation6], 0 }
   0x3   :  { %12 = vsyncpa [#allocation6 + $0x1], 0 }
   0x4   :  { %13 = vsyncpa [#allocation4], 0 }
   0x5   :  { %15 = vsyncpa [#allocation4 + $0x1], 0  ;;  %s1514_s9 = smov 0   ;;  %s1516_s10 = smov 0  }
   0x6   :  { %s1518_s11 = smov 0   ;;  %s1520_s12 = smov 0  }
   0x7   :  { %s1522_s13 = smov 0   ;;  %s1524_s14 = smov 0  }
   0x8 LB: > { %s1233_s15 = sadd.s32 4294967295, %s1490_s14   ;;  %s1234_s16 = sadd.s32 4294967294, %s1490_s14   ;;  %s1490_s14 = sphi %s1524_s14, %s21_s14   ;;  %s1486_s13 = sphi %s1522_s13, %s2202_s13   ;;  %s1482_s12 = sphi %s1520_s12, %s2201_s12   ;;  %s1478_s11 = sphi %s1518_s11, %s2200_s11   ;;  %s1474_s10 = sphi %s1516_s10, %s2199_s10   ;;  %s1470_s9 = sphi %s1514_s9, %s2198_s9  }
   0x9   : > { %s33_s17 = sadd.s32 1, %s1486_s13  ;;  %s40_s18 = sadd.s32 1, %s1478_s11 }
   0xa   : > { %p35_p0 = scmp.ge.s32.totalorder %s33_s17, 2  ;;  %p47_p1 = scmp.ne.s32.totalorder %s1478_s11, %s1474_s10 }
   0xb   : > { %p48_p2 = scmp.eq.s32.totalorder %s1490_s14, 0  ;;  %p53_p3 = scmp.ne.s32.totalorder %s1474_s10, %s1470_s9 }
   0xc   : > { %s2204_s17 = smov (%p35_p0, %s33_s17), 0  ;;  %p54_p5 = scmp.eq.s32.totalorder %s1233_s15, 0 }
   0xd   : > { %p1555_p4 = por %p48_p2, %p47_p1  ;;  %s37_s20 = ssub.s32 %s1486_s13, %s2204_s17 }
   0xe   : > { %p107_p6 = scmp.eq.s32.totalorder %s1233_s15, 1  ;;  %p38_p7 = scmp.eq.s32.totalorder %s37_s20, 0 }
   0xf   : > { %p1561_p8 = por %p54_p5, %p53_p3  ;;  %p113_p10 = scmp.eq.s32.totalorder %s1234_s16, 1 }
  0x10   : > { %p1565_p9 = por %p107_p6, %p47_p1  ;;  %p1290_p13 = scmp.lt.s32.totalorder %s1490_s14, 2 }
  0x11   : > { %s2187_s21 = scalar_select %p1561_p8, 1, 0 }
  0x12   : > { %s2188_s22 = scalar_select %p1565_p9, 1, 0 }
  0x13   : > { %s1570_s23 = scalar_select %p38_p7, %s1478_s11, %s40_s18  }
  0x14   : > { %p1572_p11 = por %p113_p10, %p53_p3  ;;  %s1579_s25 = sand.u32 1, %s1478_s11  }
  0x15   : > { %s1237_s26 = sshll.u32 %s1579_s25, 2  ;;  %s1238_s27 = sshll.u32 %s1486_s13, 6 }
  0x16   : > { %s2189_s24 = scalar_select %p1572_p11, 1, 0 }
  0x17   : > { %s1586_s30 = scalar_lea.hbm %s2181_s0, %s1238_s27  ;;  %s137_s3 = scalar_lea.vmem [#allocation2], %s1237_s26 }
  0x18   : > { %s144_s4 = sshll.u32 %s137_s3, 4  ;;  %p1592_p0 = pnand %p1290_p13, %p1555_p4  ;;  %s1588_s4 = int_to_ptr.vmem [resolvable:$true] %s144_s4 }
  0x19   : > { %s134_s6 = scalar_lea.sflag [#allocation3], %s1579_s25  ;;  %s1344_s7 = scalar_lea.hbm %s1586_s30, 64 }
  0x1a   : > { %p1345_p3 = scmp.ne.s32.totalorder %s1586_s30, %s1344_s7  ;;  %p1346_p5 = pneg %p1592_p0 }
  0x1b   : > { %s1349_s16 = scalar_lea.hbm %s2181_s0, 128  ;;  %p1350_p4 = scmp.lt.u32.totalorder %s1586_s30, %s2181_s0 }
  0x1c   : > { %p1347_p6 = pnand %p1346_p5, %p1345_p3  ;;  %p1351_p10 = scmp.lt.u32.totalorder %s1349_s16, %s1344_s7 }
  0x1d   : > { %p1353_p12 = scmp.lt.u32.totalorder %s1344_s7, %s1586_s30 }
  0x1e   : > { %p1348_p7 = pneg %p1347_p6  ;;  %p1352_p13 = por %p1351_p10, %p1350_p4 }
  0x20   : > { %p1354_p1 = por %p1353_p12, %p1352_p13 }
  0x22   : > { %p1355_p2 = pnand %p1354_p1, %p1348_p7 }
  0x24   : > { %1358 = shalt.err (!%p1355_p2)
}
  0x25   : > { %s1359_s20 = scalar_lea.vmem %s1588_s4, 64  ;;  %s1492_s26 = smov [#allocation2]  }
  0x26   : > { %p1360_p3 = scmp.ne.s32.totalorder %s1588_s4, %s1359_s20  ;;  %s1364_s27 = sshll.u32 %s1492_s26, 4  ;;  %s1365_s27 = int_to_ptr.vmem [resolvable:$false] %s1364_s27 }
  0x27   : > { %s1366_s28 = scalar_lea.vmem %s1365_s27, 128  ;;  %p1367_p9 = scmp.lt.s32.totalorder %s1588_s4, %s1365_s27 }
  0x28   : > { %p1362_p6 = pnand %p1360_p3, %p1346_p5  ;;  %p1368_p4 = scmp.lt.s32.totalorder %s1366_s28, %s1359_s20 }
  0x2a   : > { %p1363_p11 = pneg %p1362_p6  ;;  %p1369_p10 = por %p1368_p4, %p1367_p9 }
  0x2c   : > { %p1370_p12 = pnand %p1369_p10, %p1363_p11 }
  0x2e   : > { %1373 = shalt.err (!%p1370_p12)
}
  0x2f   : > { %1282 = dma.hbm_to_vmem [thread:$0]  (!%p1592_p0), %s1586_s30, 64, %s1588_s4, %s134_s6  }
  0x30   : > { %p2191_p1 = scmp.lt.s32.totalorder %s1490_s14, 3  ;;  %p2192_p2 = scmp.ge.s32.totalorder %s1490_s14, 1 }
  0x31   : > { %s1239_s3 = sshll.u32 %s1579_s25, 5  ;;  %s1256_s7 = sshll.u32 %s1486_s13, 9 }
  0x32   : > { %p1628_p7 = pnand %p2192_p2, %p2191_p1  ;;  %s1637_s16 = scalar_lea.hbm %s2182_s1, %s1256_s7 }
  0x33   : > { %s155_s18 = scalar_lea.vmem [#allocation5], %s1239_s3  ;;  %s152_s30 = scalar_lea.sflag [#allocation6], %s1579_s25 }
  0x34   : > { %s164_s19 = sshll.u32 %s155_s18, 4  ;;  %s1374_s4 = scalar_lea.hbm %s1637_s16, 512  ;;  %s1639_s19 = int_to_ptr.vmem [resolvable:$true] %s164_s19 }
  0x35   : > { %p1375_p9 = scmp.ne.s32.totalorder %s1637_s16, %s1374_s4  ;;  %s1379_s26 = scalar_lea.hbm %s2182_s1, 1024 }
  0x36   : > { %p1380_p3 = scmp.lt.u32.totalorder %s1637_s16, %s2182_s1  ;;  %p1381_p6 = scmp.lt.u32.totalorder %s1379_s26, %s1374_s4 }
  0x37   : > { %p1377_p11 = pnand %p1375_p9, %p1346_p5  ;;  %p1383_p10 = scmp.lt.u32.totalorder %s1374_s4, %s1637_s16 }
  0x38   : > { %p1382_p4 = por %p1381_p6, %p1380_p3 }
  0x39   : > { %p1378_p13 = pneg %p1377_p11 }
  0x3a   : > { %p1384_p12 = por %p1383_p10, %p1382_p4 }
  0x3c   : > { %p1385_p1 = pnand %p1384_p12, %p1378_p13 }
  0x3e   : > { %1388 = shalt.err (!%p1385_p1)
}
  0x3f   : > { %s1389_s3 = scalar_lea.vmem %s1639_s19, 512  ;;  %s1493_s7 = smov [#allocation5]  }
  0x40   : > { %p1390_p2 = scmp.ne.s32.totalorder %s1639_s19, %s1389_s3  ;;  %s1394_s8 = sshll.u32 %s1493_s7, 4  ;;  %s1395_s8 = int_to_ptr.vmem [resolvable:$false] %s1394_s8 }
  0x41   : > { %s1396_s15 = scalar_lea.vmem %s1395_s8, 1024  ;;  %p1397_p8 = scmp.lt.s32.totalorder %s1639_s19, %s1395_s8 }
  0x42   : > { %p1392_p9 = pnand %p1390_p2, %p1346_p5  ;;  %p1398_p3 = scmp.lt.s32.totalorder %s1396_s15, %s1389_s3 }
  0x44   : > { %p1393_p11 = pneg %p1392_p9  ;;  %p1399_p6 = por %p1398_p3, %p1397_p8 }
  0x46   : > { %p1400_p4 = pnand %p1399_p6, %p1393_p11 }
  0x48   : > { %1403 = shalt.err (!%p1400_p4)
}
  0x49   : > { %s1494_s18 = smov 128   ;;  %s1495_s4 = smov 8  }
  0x4a   : > { %1285 = dma.hbm_to_vmem [thread:$0]  (!%p1592_p0), %s1637_s16, 512, %s1639_s19, %s152_s30, %s1494_s18, %s1494_s18, %s1495_s4  }
  0x4b   : > { %176 = sbr.rel (%p1628_p7) target bundleno = 3863 (0xf17), region = 28  ;;  %s1670_s6 = sand.u32 (!%p1628_p7), 1, %s1474_s10  }
  0x4c   : > { %s1243_s20 = sshll.u32 (!%p1628_p7), %s1670_s6, 2  ;;  %s179_s26 = scalar_lea.sflag (!%p1628_p7), [#allocation3], %s1670_s6 }
  0x4d   : > { %s182_s27 = scalar_lea.vmem (!%p1628_p7), [#allocation2], %s1243_s20  ;;  %p2194_p8 = scmp.ne.s32.totalorder (!%p1628_p7), %s2187_s21, 0 }
  0x52   : > { %1457 = dma.done.wait (%p2194_p8), %s179_s26, 64  }
  0x53   : > { %1459 = vsyncadd (%p2194_p8), %s179_s26, 4294967232  ;;  %s1244_s25 = sshll.u32 %s1670_s6, 5  ;;  %s188_s5 = scalar_lea.sflag [#allocation6], %s1670_s6 }
  0x54   : > { %s191_s29 = scalar_lea.vmem [#allocation5], %s1244_s25 }
  0x55   : > { %1461 = dma.done.wait (%p2194_p8), %s188_s5, 512  }
  0x56   : > { %1463 = vsyncadd (%p2194_p8), %s188_s5, 4294966784  ;;  %vm237_vm0 = vcmask 1042432   ;;  %v219_v0 = vld [vmem:[%s182_s27] sm:$0x7]  ;;  %v220_v1 = vld [vmem:[%s191_s29] sm:$0xff]  ;;  %vm224_vm1 = vcmask 23552   ;;  %v363_v45 = vlaneseq }
  0x57   : > { %v222_v2 = vld [vmem:[%s191_s29 + $0x10] sm:$0xff]  ;;  %1263 = vmatprep.subr.msk.mxu0 %vm237_vm0, %v219_v0  ;;  %1271 = vmatprep.subr.msk.mxu1 %vm237_vm0, %v219_v0  ;;  %v335_v3 = vmul.f32 %v220_v1, %v220_v1  ;;  %v221_v5 = vld [vmem:[%s191_s29 + $0x8] sm:$0xff]  ;;  %v223_v6 = vld [vmem:[%s191_s29 + $0x18] sm:$0xff]  ;;  %v326_v13 = vmul.f32 %v219_v0, %v219_v0  ;;  %vm327_vm2 = vcmask 256000   ;;  %vm365_vm3 = vcmask 261120   ;;  %s216_s21 = scalar_lea.vmem [#allocation7], %s1244_s25 }
  0x58   : > { %v337_v4 = vmul.f32 %v222_v2, %v222_v2  ;;  %1264 = vmatpush3.msk.msra.mxu0 %vm237_vm0, %v219_v0  ;;  %1272 = vmatpush3.msk.msra.mxu1 %vm237_vm0, %v219_v0  ;;  %v336_v7 = vmul.f32 %v221_v5, %v221_v5  ;;  %v338_v8 = vmul.f32 %v223_v6, %v223_v6  ;;  %v1710_v46 = vand.u32 127, %v363_v45  ;;  %s1123_s16 = sshll.u32 %s216_s21, 4  ;;  %s1257_s19 = sshll.u32 %s1482_s12, 9  ;;  %s2118_s16 = int_to_ptr.vmem [resolvable:$true] %s1123_s16 }
  0x59   : > { %1265 = vmatprep.mubr.msk.f32.mxu0 %vm224_vm1, %v220_v1  ;;  %1268 = vmatprep.mubr.msk.f32.mxu1 %vm224_vm1, %v222_v2  ;;  %v339_v9 = vsel %vm224_vm1, %v335_v3, 0.0  ;;  %v328_v14 = vsel %vm327_vm2, %v326_v13, 0.0  ;;  %s2124_s28 = scalar_lea.hbm %s2183_s2, %s1257_s19  ;;  %s1108_s3 = scalar_lea.sflag [#allocation4], %s1670_s6 }
  0x5a   : > { %v345_v10 = vsel %vm224_vm1, %v337_v4, 0.0  ;;  %1266 = vmatmul.mubr.msk.f32.vlgmr.msra.gmra.mrb[0].mxu0 %vm224_vm1, %v221_v5  ;;  %1269 = vmatmul.mubr.msk.f32.vlgmr.msra.gmra.mrb[0].mxu1 %vm224_vm1, %v223_v6  ;;  %v342_v11 = vsel %vm224_vm1, %v336_v7, 0.0  ;;  %v348_v12 = vsel %vm224_vm1, %v338_v8, 0.0  ;;  %v329_v15 = vrot.slane %v328_v14, 4  ;;  %s1404_s7 = scalar_lea.vmem %s2118_s16, 512  ;;  %p2195_p5 = scmp.ne.s32.totalorder %s2188_s22, 0 }
  0x5b   : > { %340 = vadd.xlane.f32.xlu0 %v339_v9  ;;  %346 = vadd.xlane.f32.xlu1 %v345_v10  ;;  %p1405_p0 = scmp.ne.s32.totalorder %s2118_s16, %s1404_s7  ;;  %s1496_s8 = smov [#allocation7]  }
  0x5c   : > { %v330_v16 = vadd.f32 %v329_v15, %v328_v14  ;;  %s1408_s15 = sshll.u32 %s1496_s8, 4  ;;  %s1409_s15 = int_to_ptr.vmem [resolvable:$false] %s1408_s15 }
  0x5d   : > { %p1406_p7 = pnand %p1405_p0, %p2195_p5  ;;  %s1410_s18 = scalar_lea.vmem %s1409_s15, 1024 }
  0x5e   : > { %v331_v17 = vrot.slane %v330_v16, 2  ;;  %p1411_p10 = scmp.lt.s32.totalorder %s2118_s16, %s1409_s15  ;;  %p1412_p12 = scmp.lt.s32.totalorder %s1410_s18, %s1404_s7 }
  0x5f   : > { %343 = vadd.xlane.f32.xlu0 %v342_v11  ;;  %349 = vadd.xlane.f32.xlu1 %v348_v12  ;;  %p1407_p13 = pneg %p1406_p7 }
  0x60   : > { %v332_v19 = vadd.f32 %v331_v17, %v330_v16  ;;  %p1413_p1 = por %p1412_p12, %p1411_p10 }
  0x62   : > { %v333_v21 = vrot.slane %v332_v19, 1  ;;  %p1414_p2 = pnand %p1413_p1, %p1407_p13 }
  0x64   : > { %v334_v29 = vadd.f32 %v333_v21, %v332_v19 }
  0xe8   : > { %v341_v18 = vpop.xlane.xlu0 %340  ;;  %v347_v20 = vpop.xlane.xlu1 %346 }
  0xec   : > { %v344_v22 = vpop.xlane.xlu0 %343  ;;  %v350_v23 = vpop.xlane.xlu1 %349 }
 0x12d   : > { %v1267_v24 = vpop.f32.mrb[0].mxu0  ;;  %v1270_v25 = vpop.f32.mrb[0].mxu1 }
 0x12e   : > { %v352_v26 = vmul.f32 2.0, %v1267_v24  ;;  %v354_v27 = vmul.f32 2.0, %v1270_v25  ;;  %v307_v28 = vpop.f32.mrb[1].mxu0  ;;  %v317_v30 = vpop.f32.mrb[1].mxu1 }
 0x12f   : > { %v351_v31 = vmul.f32 2.0, %v307_v28  ;;  %v353_v32 = vmul.f32 2.0, %v317_v30 }
 0x130   : > { %v356_v33 = vsub.f32 %v352_v26, %v344_v22  ;;  %v358_v34 = vsub.f32 %v354_v27, %v350_v23 }
 0x131   : > { %v355_v35 = vsub.f32 %v351_v31, %v341_v18  ;;  %v357_v36 = vsub.f32 %v353_v32, %v347_v20 }
 0x132   : > { %v1694_v37 = vsub.f32 %v356_v33, %v334_v29  ;;  %v1696_v38 = vsub.f32 %v358_v34, %v334_v29 }
 0x133   : > { %v1698_v39 = vsub.f32 %v355_v35, %v334_v29  ;;  %v1700_v40 = vsub.f32 %v357_v36, %v334_v29 }
 0x134   : > { %v369_v41 = vsel %vm365_vm3, %v1694_v37, -inf  ;;  %v375_v43 = vsel %vm365_vm3, %v1696_v38, -inf }
 0x135   : > { %370 = vmax.xlane.f32.xlu1 %v369_v41  ;;  %v366_v42 = vsel %vm365_vm3, %v1698_v39, -inf  ;;  %v372_v44 = vsel %vm365_vm3, %v1700_v40, -inf }
 0x136   : > { %367 = vmax.xlane.f32.xlu0 %v366_v42 }
 0x139   : > { %376 = vmax.xlane.f32.xlu1 %v375_v43 }
 0x13a   : > { %373 = vmax.xlane.f32.xlu0 %v372_v44 }
 0x1c2   : > { %v371_v47 = vpop.xlane.xlu1 %370 }
 0x1c3   : > { %vm379_vm4 = vcmp.eq.f32.partialorder %v1694_v37, %v371_v47  ;;  %v368_v48 = vpop.xlane.xlu0 %367 }
 0x1c4   : > { %v383_v49 = vsel %vm379_vm4, %v1710_v46, 32  ;;  %vm378_vm5 = vcmp.eq.f32.partialorder %v1698_v39, %v368_v48 }
 0x1c5   : > { %v401_v50 = vsel %vm365_vm3, %v383_v49, 2147483647  ;;  %v382_v51 = vsel %vm378_vm5, %v1710_v46, 32 }
 0x1c6   : > { %v386_v52 = vsel %vm365_vm3, %v382_v51, 2147483647  ;;  %v377_v53 = vpop.xlane.xlu1 %376  ;;  %v403_v54 = vshra.s32 %v401_v50, 16  ;;  %v402_v3 = vand.u32 65535, %v401_v50 }
 0x1c7   : > { %vm381_vm6 = vcmp.eq.f32.partialorder %v1696_v38, %v377_v53  ;;  %v374_v55 = vpop.xlane.xlu0 %373  ;;  %v388_v56 = vshra.s32 %v386_v52, 16  ;;  %v387_v4 = vand.u32 65535, %v386_v52 }
 0x1c8   : > { %v385_v57 = vsel %vm381_vm6, %v1710_v46, 32  ;;  %vm380_vm7 = vcmp.eq.f32.partialorder %v1700_v40, %v374_v55  ;;  %v405_v58 = vcvt.s32.f32 %v403_v54  ;;  %v404_v6 = vcvt.s32.f32 %v402_v3 }
 0x1c9   : > { %v431_v59 = vsel %vm365_vm3, %v385_v57, 2147483647  ;;  %v384_v60 = vsel %vm380_vm7, %v1710_v46, 32  ;;  %v390_v61 = vcvt.s32.f32 %v388_v56  ;;  %v389_v9 = vcvt.s32.f32 %v387_v4 }
 0x1ca   : > { %v416_v62 = vsel %vm365_vm3, %v384_v60, 2147483647  ;;  %406 = vmin.xlane.f32.xlu1 %v405_v58  ;;  %v433_v63 = vshra.s32 %v431_v59, 16  ;;  %v432_v7 = vand.u32 65535, %v431_v59 }
 0x1cb   : > { %391 = vmin.xlane.f32.xlu0 %v390_v61  ;;  %v418_v0 = vshra.s32 %v416_v62, 16  ;;  %v417_v10 = vand.u32 65535, %v416_v62 }
 0x1cc   : > { %v435_v1 = vcvt.s32.f32 %v433_v63  ;;  %v434_v14 = vcvt.s32.f32 %v432_v7 }
 0x1cd   : > { %v420_v2 = vcvt.s32.f32 %v418_v0  ;;  %v419_v16 = vcvt.s32.f32 %v417_v10 }
 0x1ce   : > { %436 = vmin.xlane.f32.xlu1 %v435_v1 }
 0x1cf   : > { %421 = vmin.xlane.f32.xlu0 %v420_v2 }
 0x257   : > { %v407_v5 = vpop.xlane.xlu1 %406 }
 0x258   : > { %v392_v8 = vpop.xlane.xlu0 %391  ;;  %vm408_vm8 = vcmp.eq.f32.partialorder %v405_v58, %v407_v5  ;;  %v413_v19 = vcvt.f32.s32 %v407_v5 }
 0x259   : > { %v409_v11 = vsel %vm408_vm8, %v404_v6, inf  ;;  %vm393_vm9 = vcmp.eq.f32.partialorder %v390_v61, %v392_v8  ;;  %v398_v20 = vcvt.f32.s32 %v392_v8 }
 0x25a   : > { %410 = vmin.xlane.f32.xlu1 %v409_v11  ;;  %v394_v12 = vsel %vm393_vm9, %v389_v9, inf  ;;  %v414_v22 = vshll.u32 %v413_v19, 16  ;;  %vm446_vm9 = vcmp.eq.s32.totalorder %v1710_v46, 0 }
 0x25b   : > { %v437_v13 = vpop.xlane.xlu1 %436  ;;  %395 = vmin.xlane.f32.xlu0 %v394_v12  ;;  %v399_v26 = vshll.u32 %v398_v20, 16 }
 0x25c   : > { %v422_v15 = vpop.xlane.xlu0 %421  ;;  %vm438_vm10 = vcmp.eq.f32.partialorder %v435_v1, %v437_v13  ;;  %v443_v23 = vcvt.f32.s32 %v437_v13 }
 0x25d   : > { %v439_v17 = vsel %vm438_vm10, %v434_v14, inf  ;;  %vm423_vm11 = vcmp.eq.f32.partialorder %v420_v2, %v422_v15  ;;  %v428_v27 = vcvt.f32.s32 %v422_v15  ;;  %vm539_vm10 = vcmp.eq.s32.totalorder %v1710_v46, 1 }
 0x25e   : > { %440 = vmin.xlane.f32.xlu1 %v439_v17  ;;  %v424_v18 = vsel %vm423_vm11, %v419_v16, inf  ;;  %v444_v32 = vshll.u32 %v443_v23, 16 }
 0x25f   : > { %425 = vmin.xlane.f32.xlu0 %v424_v18  ;;  %v429_v35 = vshll.u32 %v428_v27, 16 }
 0x2e7   : > { %v411_v21 = vpop.xlane.xlu1 %410 }
 0x2e8   : > { %v412_v24 = vcvt.f32.s32 %v411_v21  ;;  %v396_v25 = vpop.xlane.xlu0 %395 }
 0x2e9   : > { %v397_v28 = vcvt.f32.s32 %v396_v25 }
 0x2ea   : > { %v1724_v29 = vadd.s32 %v414_v22, %v412_v24 }
 0x2eb   : > { %v1726_v30 = vadd.s32 %v399_v26, %v397_v28  ;;  %v441_v31 = vpop.xlane.xlu1 %440 }
 0x2ec   : > { %v442_v33 = vcvt.f32.s32 %v441_v31  ;;  %v426_v34 = vpop.xlane.xlu0 %425  ;;  %vm452_vm12 = vcmp.eq.s32.totalorder %v1710_v46, %v1724_v29 }
 0x2ed   : > { %v427_v36 = vcvt.f32.s32 %v426_v34  ;;  %v1731_v41 = vsel %vm452_vm12, -inf, %v1694_v37  ;;  %vm451_vm13 = vcmp.eq.s32.totalorder %v1710_v46, %v1726_v30  ;;  %v447_v34 = vsel %vm446_vm9, %v1726_v30, 0 }
 0x2ee   : > { %v1735_v42 = vadd.s32 %v444_v32, %v442_v33  ;;  %v462_v43 = vsel %vm365_vm3, %v1731_v41, -inf  ;;  %v1740_v44 = vsel %vm451_vm13, -inf, %v1698_v39  ;;  %v448_v33 = vsel %vm446_vm9, %v1724_v29, 0 }
 0x2ef   : > { %v1742_v45 = vadd.s32 %v429_v35, %v427_v36  ;;  %463 = vmax.xlane.f32.xlu1 %v462_v43  ;;  %v459_v47 = vsel %vm365_vm3, %v1740_v44, -inf }
 0x2f0   : > { %460 = vmax.xlane.f32.xlu0 %v459_v47  ;;  %vm454_vm14 = vcmp.eq.s32.totalorder %v1710_v46, %v1735_v42 }
 0x2f1   : > { %v1749_v37 = vsel %vm454_vm14, -inf, %v1696_v38  ;;  %vm453_vm15 = vcmp.eq.s32.totalorder %v1710_v46, %v1742_v45 }
 0x2f2   : > { %v468_v39 = vsel %vm365_vm3, %v1749_v37, -inf  ;;  %v1756_v48 = vsel %vm453_vm15, -inf, %v1700_v40 }
 0x2f3   : > { %469 = vmax.xlane.f32.xlu1 %v468_v39  ;;  %v465_v49 = vsel %vm365_vm3, %v1756_v48, -inf }
 0x2f4   : > { %466 = vmax.xlane.f32.xlu0 %v465_v49 }
 0x37c   : > { %v464_v50 = vpop.xlane.xlu1 %463 }
 0x37d   : > { %vm472_vm0 = vcmp.eq.f32.partialorder %v1731_v41, %v464_v50  ;;  %v461_v51 = vpop.xlane.xlu0 %460 }
 0x37e   : > { %v476_v38 = vsel %vm472_vm0, %v1710_v46, 32  ;;  %vm471_vm1 = vcmp.eq.f32.partialorder %v1740_v44, %v461_v51 }
 0x37f   : > { %v494_v52 = vsel %vm365_vm3, %v476_v38, 2147483647  ;;  %v475_v53 = vsel %vm471_vm1, %v1710_v46, 32 }
 0x380   : > { %v479_v40 = vsel %vm365_vm3, %v475_v53, 2147483647  ;;  %v470_v54 = vpop.xlane.xlu1 %469  ;;  %v496_v55 = vshra.s32 %v494_v52, 16  ;;  %v495_v4 = vand.u32 65535, %v494_v52 }
 0x381   : > { %vm474_vm2 = vcmp.eq.f32.partialorder %v1749_v37, %v470_v54  ;;  %v467_v56 = vpop.xlane.xlu0 %466  ;;  %v481_v57 = vshra.s32 %v479_v40, 16  ;;  %v480_v5 = vand.u32 65535, %v479_v40  ;;  %v450_v40 = vsel %vm446_vm9, %v1735_v42, 0 }
 0x382   : > { %v478_v58 = vsel %vm474_vm2, %v1710_v46, 32  ;;  %vm473_vm4 = vcmp.eq.f32.partialorder %v1756_v48, %v467_v56  ;;  %v498_v59 = vcvt.s32.f32 %v496_v55  ;;  %v497_v7 = vcvt.s32.f32 %v495_v4 }
 0x383   : > { %v524_v60 = vsel %vm365_vm3, %v478_v58, 2147483647  ;;  %v477_v61 = vsel %vm473_vm4, %v1710_v46, 32  ;;  %v483_v62 = vcvt.s32.f32 %v481_v57  ;;  %v482_v10 = vcvt.s32.f32 %v480_v5 }
 0x384   : > { %v509_v63 = vsel %vm365_vm3, %v477_v61, 2147483647  ;;  %499 = vmin.xlane.f32.xlu1 %v498_v59  ;;  %v526_v0 = vshra.s32 %v524_v60, 16  ;;  %v525_v8 = vand.u32 65535, %v524_v60 }
 0x385   : > { %484 = vmin.xlane.f32.xlu0 %v483_v62  ;;  %v511_v1 = vshra.s32 %v509_v63, 16  ;;  %v510_v11 = vand.u32 65535, %v509_v63 }
 0x386   : > { %v528_v2 = vcvt.s32.f32 %v526_v0  ;;  %v527_v15 = vcvt.s32.f32 %v525_v8 }
 0x387   : > { %v513_v3 = vcvt.s32.f32 %v511_v1  ;;  %v512_v17 = vcvt.s32.f32 %v510_v11 }
 0x388   : > { %529 = vmin.xlane.f32.xlu1 %v528_v2 }
 0x389   : > { %514 = vmin.xlane.f32.xlu0 %v513_v3 }
 0x411   : > { %v500_v6 = vpop.xlane.xlu1 %499 }
 0x412   : > { %v485_v9 = vpop.xlane.xlu0 %484  ;;  %vm501_vm5 = vcmp.eq.f32.partialorder %v498_v59, %v500_v6  ;;  %v506_v20 = vcvt.f32.s32 %v500_v6 }
 0x413   : > { %v502_v12 = vsel %vm501_vm5, %v497_v7, inf  ;;  %vm486_vm6 = vcmp.eq.f32.partialorder %v483_v62, %v485_v9  ;;  %v491_v21 = vcvt.f32.s32 %v485_v9 }
 0x414   : > { %503 = vmin.xlane.f32.xlu1 %v502_v12  ;;  %v487_v13 = vsel %vm486_vm6, %v482_v10, inf  ;;  %v507_v24 = vshll.u32 %v506_v20, 16 }
 0x415   : > { %v530_v14 = vpop.xlane.xlu1 %529  ;;  %488 = vmin.xlane.f32.xlu0 %v487_v13  ;;  %v492_v28 = vshll.u32 %v491_v21, 16 }
 0x416   : > { %v515_v16 = vpop.xlane.xlu0 %514  ;;  %vm531_vm7 = vcmp.eq.f32.partialorder %v528_v2, %v530_v14  ;;  %v536_v22 = vcvt.f32.s32 %v530_v14 }
 0x417   : > { %v532_v18 = vsel %vm531_vm7, %v527_v15, inf  ;;  %vm516_vm8 = vcmp.eq.f32.partialorder %v513_v3, %v515_v16  ;;  %v521_v25 = vcvt.f32.s32 %v515_v16 }
 0x418   : > { %533 = vmin.xlane.f32.xlu1 %v532_v18  ;;  %v517_v19 = vsel %vm516_vm8, %v512_v17, inf  ;;  %v537_v35 = vshll.u32 %v536_v22, 16  ;;  %vm632_vm8 = vcmp.eq.s32.totalorder %v1710_v46, 2 }
 0x419   : > { %518 = vmin.xlane.f32.xlu0 %v517_v19  ;;  %v522_v47 = vshll.u32 %v521_v25, 16 }
 0x4a1   : > { %v504_v23 = vpop.xlane.xlu1 %503 }
 0x4a2   : > { %v505_v26 = vcvt.f32.s32 %v504_v23  ;;  %v489_v27 = vpop.xlane.xlu0 %488 }
 0x4a3   : > { %v490_v31 = vcvt.f32.s32 %v489_v27 }
 0x4a4   : > { %v508_v32 = vadd.s32 %v507_v24, %v505_v26 }
 0x4a5   : > { %v493_v36 = vadd.s32 %v492_v28, %v490_v31  ;;  %v534_v43 = vpop.xlane.xlu1 %533 }
 0x4a6   : > { %v1782_v39 = vsel %vm539_vm10, %v508_v32, %v448_v33  ;;  %v535_v49 = vcvt.f32.s32 %v534_v43  ;;  %v519_v50 = vpop.xlane.xlu0 %518  ;;  %vm545_vm11 = vcmp.eq.s32.totalorder %v1710_v46, %v508_v32 }
 0x4a7   : > { %v1787_v51 = vsel %vm539_vm10, %v493_v36, %v447_v34  ;;  %v520_v29 = vcvt.f32.s32 %v519_v50  ;;  %v1790_v38 = vsel %vm545_vm11, -inf, %v1731_v41  ;;  %vm544_vm12 = vcmp.eq.s32.totalorder %v1710_v46, %v493_v36 }
 0x4a8   : > { %v538_v30 = vadd.s32 %v537_v35, %v535_v49  ;;  %v555_v52 = vsel %vm365_vm3, %v1790_v38, -inf  ;;  %v1796_v53 = vsel %vm544_vm12, -inf, %v1740_v44  ;;  %v449_v41 = vsel %vm446_vm9, %v1742_v45, 0 }
 0x4a9   : > { %v523_v54 = vadd.s32 %v522_v47, %v520_v29  ;;  %556 = vmax.xlane.f32.xlu1 %v555_v52  ;;  %v552_v55 = vsel %vm365_vm3, %v1796_v53, -inf }
 0x4aa   : > { %v1808_v56 = vsel %vm539_vm10, %v538_v30, %v450_v40  ;;  %553 = vmax.xlane.f32.xlu0 %v552_v55  ;;  %vm547_vm13 = vcmp.eq.s32.totalorder %v1710_v46, %v538_v30 }
 0x4ab   : > { %v1813_v44 = vsel %vm539_vm10, %v523_v54, %v449_v41  ;;  %v1816_v42 = vsel %vm547_vm13, -inf, %v1749_v37  ;;  %vm546_vm14 = vcmp.eq.s32.totalorder %v1710_v46, %v523_v54 }
 0x4ac   : > { %v561_v57 = vsel %vm365_vm3, %v1816_v42, -inf  ;;  %v1822_v45 = vsel %vm546_vm14, -inf, %v1756_v48 }
 0x4ad   : > { %562 = vmax.xlane.f32.xlu1 %v561_v57  ;;  %v558_v58 = vsel %vm365_vm3, %v1822_v45, -inf }
 0x4ae   : > { %559 = vmax.xlane.f32.xlu0 %v558_v58 }
 0x536   : > { %v557_v59 = vpop.xlane.xlu1 %556 }
 0x537   : > { %vm565_vm15 = vcmp.eq.f32.partialorder %v1790_v38, %v557_v59  ;;  %v554_v60 = vpop.xlane.xlu0 %553 }
 0x538   : > { %v569_v37 = vsel %vm565_vm15, %v1710_v46, 32  ;;  %vm564_vm0 = vcmp.eq.f32.partialorder %v1796_v53, %v554_v60 }
 0x539   : > { %v587_v61 = vsel %vm365_vm3, %v569_v37, 2147483647  ;;  %v568_v62 = vsel %vm564_vm0, %v1710_v46, 32 }
 0x53a   : > { %v572_v48 = vsel %vm365_vm3, %v568_v62, 2147483647  ;;  %v563_v63 = vpop.xlane.xlu1 %562  ;;  %v589_v0 = vshra.s32 %v587_v61, 16  ;;  %v588_v13 = vand.u32 65535, %v587_v61 }
 0x53b   : > { %vm567_vm1 = vcmp.eq.f32.partialorder %v1816_v42, %v563_v63  ;;  %v560_v1 = vpop.xlane.xlu0 %559  ;;  %v574_v2 = vshra.s32 %v572_v48, 16  ;;  %v573_v14 = vand.u32 65535, %v572_v48 }
 0x53c   : > { %v571_v3 = vsel %vm567_vm1, %v1710_v46, 32  ;;  %vm566_vm2 = vcmp.eq.f32.partialorder %v1822_v45, %v560_v1  ;;  %v591_v4 = vcvt.s32.f32 %v589_v0  ;;  %v590_v16 = vcvt.s32.f32 %v588_v13 }
 0x53d   : > { %v617_v5 = vsel %vm365_vm3, %v571_v3, 2147483647  ;;  %v570_v6 = vsel %vm566_vm2, %v1710_v46, 32  ;;  %v576_v7 = vcvt.s32.f32 %v574_v2  ;;  %v575_v19 = vcvt.s32.f32 %v573_v14 }
 0x53e   : > { %v602_v8 = vsel %vm365_vm3, %v570_v6, 2147483647  ;;  %592 = vmin.xlane.f32.xlu1 %v591_v4  ;;  %v619_v9 = vshra.s32 %v617_v5, 16  ;;  %v618_v17 = vand.u32 65535, %v617_v5 }
 0x53f   : > { %577 = vmin.xlane.f32.xlu0 %v576_v7  ;;  %v604_v10 = vshra.s32 %v602_v8, 16  ;;  %v603_v20 = vand.u32 65535, %v602_v8 }
 0x540   : > { %v621_v11 = vcvt.s32.f32 %v619_v9  ;;  %v620_v24 = vcvt.s32.f32 %v618_v17 }
 0x541   : > { %v606_v12 = vcvt.s32.f32 %v604_v10  ;;  %v605_v26 = vcvt.s32.f32 %v603_v20 }
 0x542   : > { %622 = vmin.xlane.f32.xlu1 %v621_v11 }
 0x543   : > { %607 = vmin.xlane.f32.xlu0 %v606_v12 }
 0x5cb   : > { %v593_v15 = vpop.xlane.xlu1 %592 }
 0x5cc   : > { %v578_v18 = vpop.xlane.xlu0 %577  ;;  %vm594_vm4 = vcmp.eq.f32.partialorder %v591_v4, %v593_v15  ;;  %v599_v31 = vcvt.f32.s32 %v593_v15 }
 0x5cd   : > { %v595_v21 = vsel %vm594_vm4, %v590_v16, inf  ;;  %vm579_vm5 = vcmp.eq.f32.partialorder %v576_v7, %v578_v18  ;;  %v584_v32 = vcvt.f32.s32 %v578_v18 }
 0x5ce   : > { %596 = vmin.xlane.f32.xlu1 %v595_v21  ;;  %v580_v22 = vsel %vm579_vm5, %v575_v19, inf  ;;  %v600_v35 = vshll.u32 %v599_v31, 16 }
 0x5cf   : > { %v623_v23 = vpop.xlane.xlu1 %622  ;;  %581 = vmin.xlane.f32.xlu0 %v580_v22  ;;  %v585_v49 = vshll.u32 %v584_v32, 16 }
 0x5d0   : > { %v608_v25 = vpop.xlane.xlu0 %607  ;;  %vm624_vm6 = vcmp.eq.f32.partialorder %v621_v11, %v623_v23  ;;  %v629_v33 = vcvt.f32.s32 %v623_v23 }
 0x5d1   : > { %v625_v27 = vsel %vm624_vm6, %v620_v24, inf  ;;  %vm609_vm7 = vcmp.eq.f32.partialorder %v606_v12, %v608_v25  ;;  %v614_v36 = vcvt.f32.s32 %v608_v25  ;;  %vm725_vm6 = vcmp.eq.s32.totalorder %v1710_v46, 3 }
 0x5d2   : > { %626 = vmin.xlane.f32.xlu1 %v625_v27  ;;  %v610_v28 = vsel %vm609_vm7, %v605_v26, inf  ;;  %v630_v30 = vshll.u32 %v629_v33, 16 }
 0x5d3   : > { %611 = vmin.xlane.f32.xlu0 %v610_v28  ;;  %v615_v54 = vshll.u32 %v614_v36, 16 }
 0x65b   : > { %v597_v34 = vpop.xlane.xlu1 %596 }
 0x65c   : > { %v598_v43 = vcvt.f32.s32 %v597_v34  ;;  %v582_v47 = vpop.xlane.xlu0 %581 }
 0x65d   : > { %v583_v50 = vcvt.f32.s32 %v582_v47 }
 0x65e   : > { %v601_v29 = vadd.s32 %v600_v35, %v598_v43 }
 0x65f   : > { %v586_v52 = vadd.s32 %v585_v49, %v583_v50  ;;  %v627_v40 = vpop.xlane.xlu1 %626 }
 0x660   : > { %v1842_v55 = vsel %vm632_vm8, %v601_v29, %v1782_v39  ;;  %v628_v41 = vcvt.f32.s32 %v627_v40  ;;  %v612_v57 = vpop.xlane.xlu0 %611  ;;  %vm638_vm9 = vcmp.eq.s32.totalorder %v1710_v46, %v601_v29 }
 0x661   : > { %v1848_v58 = vsel %vm632_vm8, %v586_v52, %v1787_v51  ;;  %v613_v59 = vcvt.f32.s32 %v612_v57  ;;  %v1851_v60 = vsel %vm638_vm9, -inf, %v1790_v38  ;;  %vm637_vm10 = vcmp.eq.s32.totalorder %v1710_v46, %v586_v52 }
 0x662   : > { %v631_v37 = vadd.s32 %v630_v30, %v628_v41  ;;  %v648_v39 = vsel %vm365_vm3, %v1851_v60, -inf  ;;  %v1857_v61 = vsel %vm637_vm10, -inf, %v1796_v53 }
 0x663   : > { %v616_v62 = vadd.s32 %v615_v54, %v613_v59  ;;  %649 = vmax.xlane.f32.xlu1 %v648_v39  ;;  %v645_v48 = vsel %vm365_vm3, %v1857_v61, -inf }
 0x664   : > { %v1864_v51 = vsel %vm632_vm8, %v631_v37, %v1808_v56  ;;  %646 = vmax.xlane.f32.xlu0 %v645_v48  ;;  %vm640_vm11 = vcmp.eq.s32.totalorder %v1710_v46, %v631_v37 }
 0x665   : > { %v1870_v38 = vsel %vm632_vm8, %v616_v62, %v1813_v44  ;;  %v1873_v53 = vsel %vm640_vm11, -inf, %v1816_v42  ;;  %vm639_vm12 = vcmp.eq.s32.totalorder %v1710_v46, %v616_v62 }
 0x666   : > { %v654_v63 = vsel %vm365_vm3, %v1873_v53, -inf  ;;  %v1879_v0 = vsel %vm639_vm12, -inf, %v1822_v45 }
 0x667   : > { %655 = vmax.xlane.f32.xlu1 %v654_v63  ;;  %v651_v56 = vsel %vm365_vm3, %v1879_v0, -inf }
 0x668   : > { %652 = vmax.xlane.f32.xlu0 %v651_v56 }
 0x6f0   : > { %v650_v1 = vpop.xlane.xlu1 %649 }
 0x6f1   : > { %vm658_vm13 = vcmp.eq.f32.partialorder %v1851_v60, %v650_v1  ;;  %v647_v44 = vpop.xlane.xlu0 %646 }
 0x6f2   : > { %v662_v42 = vsel %vm658_vm13, %v1710_v46, 32  ;;  %vm657_vm14 = vcmp.eq.f32.partialorder %v1857_v61, %v647_v44 }
 0x6f3   : > { %v680_v2 = vsel %vm365_vm3, %v662_v42, 2147483647  ;;  %v661_v3 = vsel %vm657_vm14, %v1710_v46, 32 }
 0x6f4   : > { %v665_v45 = vsel %vm365_vm3, %v661_v3, 2147483647  ;;  %v656_v4 = vpop.xlane.xlu1 %655  ;;  %v682_v5 = vshra.s32 %v680_v2, 16  ;;  %v681_v18 = vand.u32 65535, %v680_v2 }
 0x6f5   : > { %vm660_vm15 = vcmp.eq.f32.partialorder %v1873_v53, %v656_v4  ;;  %v653_v6 = vpop.xlane.xlu0 %652  ;;  %v667_v7 = vshra.s32 %v665_v45, 16  ;;  %v666_v19 = vand.u32 65535, %v665_v45 }
 0x6f6   : > { %v664_v8 = vsel %vm660_vm15, %v1710_v46, 32  ;;  %vm659_vm0 = vcmp.eq.f32.partialorder %v1879_v0, %v653_v6  ;;  %v684_v9 = vcvt.s32.f32 %v682_v5  ;;  %v683_v21 = vcvt.s32.f32 %v681_v18 }
 0x6f7   : > { %v710_v10 = vsel %vm365_vm3, %v664_v8, 2147483647  ;;  %v663_v11 = vsel %vm659_vm0, %v1710_v46, 32  ;;  %v669_v12 = vcvt.s32.f32 %v667_v7  ;;  %v668_v24 = vcvt.s32.f32 %v666_v19 }
 0x6f8   : > { %v695_v13 = vsel %vm365_vm3, %v663_v11, 2147483647  ;;  %685 = vmin.xlane.f32.xlu1 %v684_v9  ;;  %v712_v14 = vshra.s32 %v710_v10, 16  ;;  %v711_v22 = vand.u32 65535, %v710_v10 }
 0x6f9   : > { %670 = vmin.xlane.f32.xlu0 %v669_v12  ;;  %v697_v15 = vshra.s32 %v695_v13, 16  ;;  %v696_v25 = vand.u32 65535, %v695_v13 }
 0x6fa   : > { %v714_v16 = vcvt.s32.f32 %v712_v14  ;;  %v713_v31 = vcvt.s32.f32 %v711_v22 }
 0x6fb   : > { %v699_v17 = vcvt.s32.f32 %v697_v15  ;;  %v698_v33 = vcvt.s32.f32 %v696_v25 }
 0x6fc   : > { %715 = vmin.xlane.f32.xlu1 %v714_v16 }
 0x6fd   : > { %700 = vmin.xlane.f32.xlu0 %v699_v17 }
 0x785   : > { %v686_v20 = vpop.xlane.xlu1 %685 }
 0x786   : > { %v671_v23 = vpop.xlane.xlu0 %670  ;;  %vm687_vm1 = vcmp.eq.f32.partialorder %v684_v9, %v686_v20  ;;  %v692_v36 = vcvt.f32.s32 %v686_v20 }
 0x787   : > { %v688_v26 = vsel %vm687_vm1, %v683_v21, inf  ;;  %vm672_vm2 = vcmp.eq.f32.partialorder %v669_v12, %v671_v23  ;;  %v677_v43 = vcvt.f32.s32 %v671_v23 }
 0x788   : > { %689 = vmin.xlane.f32.xlu1 %v688_v26  ;;  %v673_v27 = vsel %vm672_vm2, %v668_v24, inf  ;;  %v693_v50 = vshll.u32 %v692_v36, 16 }
 0x789   : > { %v716_v28 = vpop.xlane.xlu1 %715  ;;  %674 = vmin.xlane.f32.xlu0 %v673_v27  ;;  %v678_v40 = vshll.u32 %v677_v43, 16 }
 0x78a   : > { %v701_v32 = vpop.xlane.xlu0 %700  ;;  %vm717_vm4 = vcmp.eq.f32.partialorder %v714_v16, %v716_v28  ;;  %v722_v47 = vcvt.f32.s32 %v716_v28 }
 0x78b   : > { %v718_v34 = vsel %vm717_vm4, %v713_v31, inf  ;;  %vm702_vm5 = vcmp.eq.f32.partialorder %v699_v17, %v701_v32  ;;  %v707_v29 = vcvt.f32.s32 %v701_v32  ;;  %vm818_vm4 = vcmp.eq.s32.totalorder %v1710_v46, 4 }
 0x78c   : > { %719 = vmin.xlane.f32.xlu1 %v718_v34  ;;  %v703_v35 = vsel %vm702_vm5, %v698_v33, inf  ;;  %v723_v57 = vshll.u32 %v722_v47, 16 }
 0x78d   : > { %704 = vmin.xlane.f32.xlu0 %v703_v35  ;;  %v708_v39 = vshll.u32 %v707_v29, 16 }
 0x815   : > { %v690_v49 = vpop.xlane.xlu1 %689 }
 0x816   : > { %v691_v30 = vcvt.f32.s32 %v690_v49  ;;  %v675_v52 = vpop.xlane.xlu0 %674 }
 0x817   : > { %v676_v54 = vcvt.f32.s32 %v675_v52 }
 0x818   : > { %v694_v41 = vadd.s32 %v693_v50, %v691_v30 }
 0x819   : > { %v679_v59 = vadd.s32 %v678_v40, %v676_v54  ;;  %v720_v37 = vpop.xlane.xlu1 %719 }
 0x81a   : > { %v1899_v62 = vsel %vm725_vm6, %v694_v41, %v1842_v55  ;;  %v721_v48 = vcvt.f32.s32 %v720_v37  ;;  %v705_v63 = vpop.xlane.xlu0 %704  ;;  %vm731_vm7 = vcmp.eq.s32.totalorder %v1710_v46, %v694_v41 }
 0x81b   : > { %v1905_v56 = vsel %vm725_vm6, %v679_v59, %v1848_v58  ;;  %v706_v1 = vcvt.f32.s32 %v705_v63  ;;  %v1908_v44 = vsel %vm731_vm7, -inf, %v1851_v60  ;;  %vm730_vm8 = vcmp.eq.s32.totalorder %v1710_v46, %v679_v59 }
 0x81c   : > { %v724_v42 = vadd.s32 %v723_v57, %v721_v48  ;;  %v741_v55 = vsel %vm365_vm3, %v1908_v44, -inf  ;;  %v1914_v2 = vsel %vm730_vm8, -inf, %v1857_v61 }
 0x81d   : > { %v709_v3 = vadd.s32 %v708_v39, %v706_v1  ;;  %742 = vmax.xlane.f32.xlu1 %v741_v55  ;;  %v738_v45 = vsel %vm365_vm3, %v1914_v2, -inf }
 0x81e   : > { %v1921_v58 = vsel %vm725_vm6, %v724_v42, %v1864_v51  ;;  %739 = vmax.xlane.f32.xlu0 %v738_v45  ;;  %vm733_vm9 = vcmp.eq.s32.totalorder %v1710_v46, %v724_v42 }
 0x81f   : > { %v1927_v60 = vsel %vm725_vm6, %v709_v3, %v1870_v38  ;;  %v1930_v61 = vsel %vm733_vm9, -inf, %v1873_v53  ;;  %vm732_vm10 = vcmp.eq.s32.totalorder %v1710_v46, %v709_v3 }
 0x820   : > { %v747_v4 = vsel %vm365_vm3, %v1930_v61, -inf  ;;  %v1936_v5 = vsel %vm732_vm10, -inf, %v1879_v0 }
 0x821   : > { %748 = vmax.xlane.f32.xlu1 %v747_v4  ;;  %v744_v51 = vsel %vm365_vm3, %v1936_v5, -inf }
 0x822   : > { %745 = vmax.xlane.f32.xlu0 %v744_v51 }
 0x8aa   : > { %v743_v6 = vpop.xlane.xlu1 %742 }
 0x8ab   : > { %vm751_vm11 = vcmp.eq.f32.partialorder %v1908_v44, %v743_v6  ;;  %v740_v38 = vpop.xlane.xlu0 %739 }
 0x8ac   : > { %v755_v53 = vsel %vm751_vm11, %v1710_v46, 32  ;;  %vm750_vm12 = vcmp.eq.f32.partialorder %v1914_v2, %v740_v38 }
 0x8ad   : > { %v773_v7 = vsel %vm365_vm3, %v755_v53, 2147483647  ;;  %v754_v8 = vsel %vm750_vm12, %v1710_v46, 32 }
 0x8ae   : > { %v758_v0 = vsel %vm365_vm3, %v754_v8, 2147483647  ;;  %v749_v9 = vpop.xlane.xlu1 %748  ;;  %v775_v10 = vshra.s32 %v773_v7, 16  ;;  %v774_v23 = vand.u32 65535, %v773_v7 }
 0x8af   : > { %vm753_vm13 = vcmp.eq.f32.partialorder %v1930_v61, %v749_v9  ;;  %v746_v11 = vpop.xlane.xlu0 %745  ;;  %v760_v12 = vshra.s32 %v758_v0, 16  ;;  %v759_v24 = vand.u32 65535, %v758_v0 }
 0x8b0   : > { %v757_v13 = vsel %vm753_vm13, %v1710_v46, 32  ;;  %vm752_vm14 = vcmp.eq.f32.partialorder %v1936_v5, %v746_v11  ;;  %v777_v14 = vcvt.s32.f32 %v775_v10  ;;  %v776_v26 = vcvt.s32.f32 %v774_v23 }
 0x8b1   : > { %v803_v15 = vsel %vm365_vm3, %v757_v13, 2147483647  ;;  %v756_v16 = vsel %vm752_vm14, %v1710_v46, 32  ;;  %v762_v17 = vcvt.s32.f32 %v760_v12  ;;  %v761_v31 = vcvt.s32.f32 %v759_v24 }
 0x8b2   : > { %v788_v18 = vsel %vm365_vm3, %v756_v16, 2147483647  ;;  %778 = vmin.xlane.f32.xlu1 %v777_v14  ;;  %v805_v19 = vshra.s32 %v803_v15, 16  ;;  %v804_v27 = vand.u32 65535, %v803_v15 }
 0x8b3   : > { %763 = vmin.xlane.f32.xlu0 %v762_v17  ;;  %v790_v20 = vshra.s32 %v788_v18, 16  ;;  %v789_v32 = vand.u32 65535, %v788_v18 }
 0x8b4   : > { %v807_v21 = vcvt.s32.f32 %v805_v19  ;;  %v806_v36 = vcvt.s32.f32 %v804_v27 }
 0x8b5   : > { %v792_v22 = vcvt.s32.f32 %v790_v20  ;;  %v791_v47 = vcvt.s32.f32 %v789_v32 }
 0x8b6   : > { %808 = vmin.xlane.f32.xlu1 %v807_v21 }
 0x8b7   : > { %793 = vmin.xlane.f32.xlu0 %v792_v22 }
 0x93f   : > { %v779_v25 = vpop.xlane.xlu1 %778 }
 0x940   : > { %v764_v28 = vpop.xlane.xlu0 %763  ;;  %vm780_vm15 = vcmp.eq.f32.partialorder %v777_v14, %v779_v25  ;;  %v785_v29 = vcvt.f32.s32 %v779_v25 }
 0x941   : > { %v781_v33 = vsel %vm780_vm15, %v776_v26, inf  ;;  %vm765_vm0 = vcmp.eq.f32.partialorder %v762_v17, %v764_v28  ;;  %v770_v30 = vcvt.f32.s32 %v764_v28 }
 0x942   : > { %782 = vmin.xlane.f32.xlu1 %v781_v33  ;;  %v766_v34 = vsel %vm765_vm0, %v761_v31, inf  ;;  %v786_v54 = vshll.u32 %v785_v29, 16 }
 0x943   : > { %v809_v35 = vpop.xlane.xlu1 %808  ;;  %767 = vmin.xlane.f32.xlu0 %v766_v34  ;;  %v771_v37 = vshll.u32 %v770_v30, 16 }
 0x944   : > { %v794_v43 = vpop.xlane.xlu0 %793  ;;  %vm810_vm1 = vcmp.eq.f32.partialorder %v807_v21, %v809_v35  ;;  %v815_v52 = vcvt.f32.s32 %v809_v35 }
 0x945   : > { %v811_v49 = vsel %vm810_vm1, %v806_v36, inf  ;;  %vm795_vm2 = vcmp.eq.f32.partialorder %v792_v22, %v794_v43  ;;  %v800_v41 = vcvt.f32.s32 %v794_v43  ;;  %vm911_vm1 = vcmp.eq.s32.totalorder %v1710_v46, 5 }
 0x946   : > { %812 = vmin.xlane.f32.xlu1 %v811_v49  ;;  %v796_v50 = vsel %vm795_vm2, %v791_v47, inf  ;;  %v816_v63 = vshll.u32 %v815_v52, 16 }
 0x947   : > { %797 = vmin.xlane.f32.xlu0 %v796_v50  ;;  %v801_v55 = vshll.u32 %v800_v41, 16 }
 0x9cf   : > { %v783_v40 = vpop.xlane.xlu1 %782 }
 0x9d0   : > { %v784_v57 = vcvt.f32.s32 %v783_v40  ;;  %v768_v59 = vpop.xlane.xlu0 %767 }
 0x9d1   : > { %v769_v39 = vcvt.f32.s32 %v768_v59 }
 0x9d2   : > { %v787_v48 = vadd.s32 %v786_v54, %v784_v57 }
 0x9d3   : > { %v772_v1 = vadd.s32 %v771_v37, %v769_v39  ;;  %v813_v42 = vpop.xlane.xlu1 %812 }
 0x9d4   : > { %v1956_v3 = vsel %vm818_vm4, %v787_v48, %v1899_v62  ;;  %v814_v45 = vcvt.f32.s32 %v813_v42  ;;  %v798_v4 = vpop.xlane.xlu0 %797  ;;  %vm824_vm5 = vcmp.eq.s32.totalorder %v1710_v46, %v787_v48 }
 0x9d5   : > { %v1962_v51 = vsel %vm818_vm4, %v772_v1, %v1905_v56  ;;  %v799_v6 = vcvt.f32.s32 %v798_v4  ;;  %v1965_v38 = vsel %vm824_vm5, -inf, %v1908_v44  ;;  %vm823_vm6 = vcmp.eq.s32.totalorder %v1710_v46, %v772_v1 }
 0x9d6   : > { %v817_v53 = vadd.s32 %v816_v63, %v814_v45  ;;  %v834_v62 = vsel %vm365_vm3, %v1965_v38, -inf  ;;  %v1971_v7 = vsel %vm823_vm6, -inf, %v1914_v2 }
 0x9d7   : > { %v802_v8 = vadd.s32 %v801_v55, %v799_v6  ;;  %835 = vmax.xlane.f32.xlu1 %v834_v62  ;;  %v831_v0 = vsel %vm365_vm3, %v1971_v7, -inf }
 0x9d8   : > { %v1978_v56 = vsel %vm818_vm4, %v817_v53, %v1921_v58  ;;  %832 = vmax.xlane.f32.xlu0 %v831_v0  ;;  %vm826_vm7 = vcmp.eq.s32.totalorder %v1710_v46, %v817_v53 }
 0x9d9   : > { %v1984_v44 = vsel %vm818_vm4, %v802_v8, %v1927_v60  ;;  %v1987_v2 = vsel %vm826_vm7, -inf, %v1930_v61  ;;  %vm825_vm8 = vcmp.eq.s32.totalorder %v1710_v46, %v802_v8 }
 0x9da   : > { %v840_v9 = vsel %vm365_vm3, %v1987_v2, -inf  ;;  %v1993_v10 = vsel %vm825_vm8, -inf, %v1936_v5 }
 0x9db   : > { %841 = vmax.xlane.f32.xlu1 %v840_v9  ;;  %v837_v58 = vsel %vm365_vm3, %v1993_v10, -inf }
 0x9dc   : > { %838 = vmax.xlane.f32.xlu0 %v837_v58 }
 0xa64   : > { %v836_v11 = vpop.xlane.xlu1 %835 }
 0xa65   : > { %vm844_vm9 = vcmp.eq.f32.partialorder %v1965_v38, %v836_v11  ;;  %v833_v60 = vpop.xlane.xlu0 %832 }
 0xa66   : > { %v848_v61 = vsel %vm844_vm9, %v1710_v46, 32  ;;  %vm843_vm10 = vcmp.eq.f32.partialorder %v1971_v7, %v833_v60 }
 0xa67   : > { %v866_v12 = vsel %vm365_vm3, %v848_v61, 2147483647  ;;  %v847_v13 = vsel %vm843_vm10, %v1710_v46, 32 }
 0xa68   : > { %v851_v5 = vsel %vm365_vm3, %v847_v13, 2147483647  ;;  %v842_v14 = vpop.xlane.xlu1 %841  ;;  %v868_v15 = vshra.s32 %v866_v12, 16  ;;  %v867_v28 = vand.u32 65535, %v866_v12 }
 0xa69   : > { %vm846_vm11 = vcmp.eq.f32.partialorder %v1987_v2, %v842_v14  ;;  %v839_v16 = vpop.xlane.xlu0 %838  ;;  %v853_v17 = vshra.s32 %v851_v5, 16  ;;  %v852_v31 = vand.u32 65535, %v851_v5 }
 0xa6a   : > { %v850_v18 = vsel %vm846_vm11, %v1710_v46, 32  ;;  %vm845_vm12 = vcmp.eq.f32.partialorder %v1993_v10, %v839_v16  ;;  %v870_v19 = vcvt.s32.f32 %v868_v15  ;;  %v869_v33 = vcvt.s32.f32 %v867_v28 }
 0xa6b   : > { %v896_v20 = vsel %vm365_vm3, %v850_v18, 2147483647  ;;  %v849_v21 = vsel %vm845_vm12, %v1710_v46, 32  ;;  %v855_v22 = vcvt.s32.f32 %v853_v17  ;;  %v854_v36 = vcvt.s32.f32 %v852_v31 }
 0xa6c   : > { %v881_v23 = vsel %vm365_vm3, %v849_v21, 2147483647  ;;  %871 = vmin.xlane.f32.xlu1 %v870_v19  ;;  %v898_v24 = vshra.s32 %v896_v20, 16  ;;  %v897_v34 = vand.u32 65535, %v896_v20 }
 0xa6d   : > { %856 = vmin.xlane.f32.xlu0 %v855_v22  ;;  %v883_v25 = vshra.s32 %v881_v23, 16  ;;  %v882_v43 = vand.u32 65535, %v881_v23 }
 0xa6e   : > { %v900_v26 = vcvt.s32.f32 %v898_v24  ;;  %v899_v29 = vcvt.s32.f32 %v897_v34 }
 0xa6f   : > { %v885_v27 = vcvt.s32.f32 %v883_v25  ;;  %v884_v52 = vcvt.s32.f32 %v882_v43 }
 0xa70   : > { %901 = vmin.xlane.f32.xlu1 %v900_v26 }
 0xa71   : > { %886 = vmin.xlane.f32.xlu0 %v885_v27 }
 0xaf9   : > { %v872_v32 = vpop.xlane.xlu1 %871 }
 0xafa   : > { %v857_v35 = vpop.xlane.xlu0 %856  ;;  %vm873_vm13 = vcmp.eq.f32.partialorder %v870_v19, %v872_v32  ;;  %v878_v41 = vcvt.f32.s32 %v872_v32 }
 0xafb   : > { %v874_v47 = vsel %vm873_vm13, %v869_v33, inf  ;;  %vm858_vm14 = vcmp.eq.f32.partialorder %v855_v22, %v857_v35  ;;  %v863_v57 = vcvt.f32.s32 %v857_v35 }
 0xafc   : > { %875 = vmin.xlane.f32.xlu1 %v874_v47  ;;  %v859_v49 = vsel %vm858_vm14, %v854_v36, inf  ;;  %v879_v39 = vshll.u32 %v878_v41, 16 }
 0xafd   : > { %v902_v50 = vpop.xlane.xlu1 %901  ;;  %860 = vmin.xlane.f32.xlu0 %v859_v49  ;;  %v864_v42 = vshll.u32 %v863_v57, 16 }
 0xafe   : > { %v887_v30 = vpop.xlane.xlu0 %886  ;;  %vm903_vm15 = vcmp.eq.f32.partialorder %v900_v26, %v902_v50  ;;  %v908_v59 = vcvt.f32.s32 %v902_v50 }
 0xaff   : > { %v904_v40 = vsel %vm903_vm15, %v899_v29, inf  ;;  %vm888_vm0 = vcmp.eq.f32.partialorder %v885_v27, %v887_v30  ;;  %v893_v48 = vcvt.f32.s32 %v887_v30  ;;  %vm1004_vm15 = vcmp.eq.s32.totalorder %v1710_v46, 6 }
 0xb00   : > { %905 = vmin.xlane.f32.xlu1 %v904_v40  ;;  %v889_v54 = vsel %vm888_vm0, %v884_v52, inf  ;;  %v909_v4 = vshll.u32 %v908_v59, 16 }
 0xb01   : > { %890 = vmin.xlane.f32.xlu0 %v889_v54  ;;  %v894_v62 = vshll.u32 %v893_v48, 16 }
 0xb89   : > { %v876_v37 = vpop.xlane.xlu1 %875 }
 0xb8a   : > { %v877_v63 = vcvt.f32.s32 %v876_v37  ;;  %v861_v1 = vpop.xlane.xlu0 %860 }
 0xb8b   : > { %v862_v55 = vcvt.f32.s32 %v861_v1 }
 0xb8c   : > { %v880_v45 = vadd.s32 %v879_v39, %v877_v63 }
 0xb8d   : > { %v865_v6 = vadd.s32 %v864_v42, %v862_v55  ;;  %v906_v53 = vpop.xlane.xlu1 %905 }
 0xb8e   : > { %v2013_v8 = vsel %vm911_vm1, %v880_v45, %v1956_v3  ;;  %v907_v0 = vcvt.f32.s32 %v906_v53  ;;  %v891_v9 = vpop.xlane.xlu0 %890  ;;  %vm917_vm2 = vcmp.eq.s32.totalorder %v1710_v46, %v880_v45 }
 0xb8f   : > { %v2019_v58 = vsel %vm911_vm1, %v865_v6, %v1962_v51  ;;  %v892_v11 = vcvt.f32.s32 %v891_v9  ;;  %v2022_v60 = vsel %vm917_vm2, -inf, %v1965_v38  ;;  %vm916_vm4 = vcmp.eq.s32.totalorder %v1710_v46, %v865_v6 }
 0xb90   : > { %v910_v61 = vadd.s32 %v909_v4, %v907_v0  ;;  %v927_v3 = vsel %vm365_vm3, %v2022_v60, -inf  ;;  %v2028_v12 = vsel %vm916_vm4, -inf, %v1971_v7 }
 0xb91   : > { %v895_v13 = vadd.s32 %v894_v62, %v892_v11  ;;  %928 = vmax.xlane.f32.xlu1 %v927_v3  ;;  %v924_v5 = vsel %vm365_vm3, %v2028_v12, -inf }
 0xb92   : > { %v2035_v51 = vsel %vm911_vm1, %v910_v61, %v1978_v56  ;;  %925 = vmax.xlane.f32.xlu0 %v924_v5  ;;  %vm919_vm5 = vcmp.eq.s32.totalorder %v1710_v46, %v910_v61 }
 0xb93   : > { %v2041_v38 = vsel %vm911_vm1, %v895_v13, %v1984_v44  ;;  %v2044_v7 = vsel %vm919_vm5, -inf, %v1987_v2  ;;  %vm918_vm6 = vcmp.eq.s32.totalorder %v1710_v46, %v895_v13 }
 0xb94   : > { %v933_v14 = vsel %vm365_vm3, %v2044_v7, -inf  ;;  %v2050_v15 = vsel %vm918_vm6, -inf, %v1993_v10 }
 0xb95   : > { %934 = vmax.xlane.f32.xlu1 %v933_v14  ;;  %v930_v56 = vsel %vm365_vm3, %v2050_v15, -inf }
 0xb96   : > { %931 = vmax.xlane.f32.xlu0 %v930_v56 }
 0xc1e   : > { %v929_v16 = vpop.xlane.xlu1 %928 }
 0xc1f   : > { %vm937_vm7 = vcmp.eq.f32.partialorder %v2022_v60, %v929_v16  ;;  %v926_v44 = vpop.xlane.xlu0 %925 }
 0xc20   : > { %v941_v2 = vsel %vm937_vm7, %v1710_v46, 32  ;;  %vm936_vm8 = vcmp.eq.f32.partialorder %v2028_v12, %v926_v44 }
 0xc21   : > { %v959_v17 = vsel %vm365_vm3, %v941_v2, 2147483647  ;;  %v940_v18 = vsel %vm936_vm8, %v1710_v46, 32 }
 0xc22   : > { %v944_v10 = vsel %vm365_vm3, %v940_v18, 2147483647  ;;  %v935_v19 = vpop.xlane.xlu1 %934  ;;  %v961_v20 = vshra.s32 %v959_v17, 16  ;;  %v960_v35 = vand.u32 65535, %v959_v17 }
 0xc23   : > { %vm939_vm9 = vcmp.eq.f32.partialorder %v2044_v7, %v935_v19  ;;  %v932_v21 = vpop.xlane.xlu0 %931  ;;  %v946_v22 = vshra.s32 %v944_v10, 16  ;;  %v945_v36 = vand.u32 65535, %v944_v10 }
 0xc24   : > { %v943_v23 = vsel %vm939_vm9, %v1710_v46, 32  ;;  %vm938_vm10 = vcmp.eq.f32.partialorder %v2050_v15, %v932_v21  ;;  %v963_v24 = vcvt.s32.f32 %v961_v20  ;;  %v962_v47 = vcvt.s32.f32 %v960_v35 }
 0xc25   : > { %v989_v25 = vsel %vm365_vm3, %v943_v23, 2147483647  ;;  %v942_v26 = vsel %vm938_vm10, %v1710_v46, 32  ;;  %v948_v27 = vcvt.s32.f32 %v946_v22  ;;  %v947_v29 = vcvt.s32.f32 %v945_v36 }
 0xc26   : > { %v974_v28 = vsel %vm365_vm3, %v942_v26, 2147483647  ;;  %964 = vmin.xlane.f32.xlu1 %v963_v24  ;;  %v991_v31 = vshra.s32 %v989_v25, 16  ;;  %v990_v49 = vand.u32 65535, %v989_v25 }
 0xc27   : > { %949 = vmin.xlane.f32.xlu0 %v948_v27  ;;  %v976_v32 = vshra.s32 %v974_v28, 16  ;;  %v975_v30 = vand.u32 65535, %v974_v28 }
 0xc28   : > { %v993_v33 = vcvt.s32.f32 %v991_v31  ;;  %v992_v41 = vcvt.s32.f32 %v990_v49 }
 0xc29   : > { %v978_v34 = vcvt.s32.f32 %v976_v32  ;;  %v977_v59 = vcvt.s32.f32 %v975_v30 }
 0xc2a   : > { %994 = vmin.xlane.f32.xlu1 %v993_v33 }
 0xc2b   : > { %979 = vmin.xlane.f32.xlu0 %v978_v34 }
 0xcb3   : > { %v965_v43 = vpop.xlane.xlu1 %964 }
 0xcb4   : > { %v950_v50 = vpop.xlane.xlu0 %949  ;;  %vm966_vm11 = vcmp.eq.f32.partialorder %v963_v24, %v965_v43  ;;  %v971_v48 = vcvt.f32.s32 %v965_v43 }
 0xcb5   : > { %v967_v52 = vsel %vm966_vm11, %v962_v47, inf  ;;  %vm951_vm12 = vcmp.eq.f32.partialorder %v948_v27, %v950_v50  ;;  %v956_v63 = vcvt.f32.s32 %v950_v50 }
 0xcb6   : > { %968 = vmin.xlane.f32.xlu1 %v967_v52  ;;  %v952_v40 = vsel %vm951_vm12, %v947_v29, inf  ;;  %v972_v55 = vshll.u32 %v971_v48, 16  ;;  %vm1097_vm12 = vcmp.eq.s32.totalorder %v1710_v46, 7 }
 0xcb7   : > { %v995_v54 = vpop.xlane.xlu1 %994  ;;  %953 = vmin.xlane.f32.xlu0 %v952_v40  ;;  %v957_v53 = vshll.u32 %v956_v63, 16 }
 0xcb8   : > { %v980_v57 = vpop.xlane.xlu0 %979  ;;  %vm996_vm13 = vcmp.eq.f32.partialorder %v993_v33, %v995_v54  ;;  %v1001_v1 = vcvt.f32.s32 %v995_v54 }
 0xcb9   : > { %v997_v37 = vsel %vm996_vm13, %v992_v41, inf  ;;  %vm981_vm14 = vcmp.eq.f32.partialorder %v978_v34, %v980_v57  ;;  %v986_v45 = vcvt.f32.s32 %v980_v57  ;;  %vm1102_vm13 = vcmask 64512  }
 0xcba   : > { %998 = vmin.xlane.f32.xlu1 %v997_v37  ;;  %v982_v39 = vsel %vm981_vm14, %v977_v59, inf  ;;  %v1002_v9 = vshll.u32 %v1001_v1, 16 }
 0xcbb   : > { %983 = vmin.xlane.f32.xlu0 %v982_v39  ;;  %v987_v3 = vshll.u32 %v986_v45, 16 }
 0xd43   : > { %v969_v42 = vpop.xlane.xlu1 %968 }
 0xd44   : > { %v970_v4 = vcvt.f32.s32 %v969_v42  ;;  %v954_v6 = vpop.xlane.xlu0 %953 }
 0xd45   : > { %v955_v62 = vcvt.f32.s32 %v954_v6 }
 0xd46   : > { %v973_v0 = vadd.s32 %v972_v55, %v970_v4 }
 0xd47   : > { %v958_v11 = vadd.s32 %v957_v53, %v955_v62  ;;  %v999_v61 = vpop.xlane.xlu1 %998 }
 0xd48   : > { %v2070_v13 = vsel %vm1004_vm15, %v973_v0, %v2013_v8  ;;  %v1000_v5 = vcvt.f32.s32 %v999_v61  ;;  %v984_v14 = vpop.xlane.xlu0 %983  ;;  %vm1010_vm0 = vcmp.eq.s32.totalorder %v1710_v46, %v973_v0 }
 0xd49   : > { %v2076_v56 = vsel %vm1004_vm15, %v958_v11, %v2019_v58  ;;  %v985_v16 = vcvt.f32.s32 %v984_v14  ;;  %v1014_v44 = vsel %vm1010_vm0, -inf, %v2022_v60  ;;  %vm1009_vm1 = vcmp.eq.s32.totalorder %v1710_v46, %v958_v11 }
 0xd4a   : > { %v1003_v2 = vadd.s32 %v1002_v9, %v1000_v5  ;;  %v1020_v17 = vsel %vm365_vm3, %v1014_v44, -inf  ;;  %v1013_v8 = vsel %vm1009_vm1, -inf, %v2028_v12 }
 0xd4b   : > { %v988_v18 = vadd.s32 %v987_v3, %v985_v16  ;;  %1021 = vmax.xlane.f32.xlu1 %v1020_v17  ;;  %v1017_v10 = vsel %vm365_vm3, %v1013_v8, -inf }
 0xd4c   : > { %v2086_v19 = vsel %vm1004_vm15, %v1003_v2, %v2035_v51  ;;  %1018 = vmax.xlane.f32.xlu0 %v1017_v10  ;;  %vm1012_vm2 = vcmp.eq.s32.totalorder %v1710_v46, %v1003_v2 }
 0xd4d   : > { %v2092_v58 = vsel %vm1004_vm15, %v988_v18, %v2041_v38  ;;  %v1016_v60 = vsel %vm1012_vm2, -inf, %v2044_v7  ;;  %vm1011_vm4 = vcmp.eq.s32.totalorder %v1710_v46, %v988_v18 }
 0xd4e   : > { %v1026_v12 = vsel %vm365_vm3, %v1016_v60, -inf  ;;  %v1015_v20 = vsel %vm1011_vm4, -inf, %v2050_v15 }
 0xd4f   : > { %1027 = vmax.xlane.f32.xlu1 %v1026_v12  ;;  %v1023_v51 = vsel %vm365_vm3, %v1015_v20, -inf }
 0xd50   : > { %1024 = vmax.xlane.f32.xlu0 %v1023_v51 }
 0xdd8   : > { %v1022_v21 = vpop.xlane.xlu1 %1021 }
 0xdd9   : > { %vm1030_vm5 = vcmp.eq.f32.partialorder %v1014_v44, %v1022_v21  ;;  %v1019_v22 = vpop.xlane.xlu0 %1018 }
 0xdda   : > { %v1034_v23 = vsel %vm1030_vm5, %v1710_v46, 32  ;;  %vm1029_vm6 = vcmp.eq.f32.partialorder %v1013_v8, %v1019_v22 }
 0xddb   : > { %v1052_v38 = vsel %vm365_vm3, %v1034_v23, 2147483647  ;;  %v1033_v7 = vsel %vm1029_vm6, %v1710_v46, 32 }
 0xddc   : > { %v1037_v24 = vsel %vm365_vm3, %v1033_v7, 2147483647  ;;  %v1028_v25 = vpop.xlane.xlu1 %1027  ;;  %v1054_v26 = vshra.s32 %v1052_v38, 16  ;;  %v1053_v50 = vand.u32 65535, %v1052_v38 }
 0xddd   : > { %vm1032_vm7 = vcmp.eq.f32.partialorder %v1016_v60, %v1028_v25  ;;  %v1025_v15 = vpop.xlane.xlu0 %1024  ;;  %v1039_v27 = vshra.s32 %v1037_v24, 16  ;;  %v1038_v29 = vand.u32 65535, %v1037_v24 }
 0xdde   : > { %v1036_v28 = vsel %vm1032_vm7, %v1710_v46, 32  ;;  %vm1031_vm8 = vcmp.eq.f32.partialorder %v1015_v20, %v1025_v15  ;;  %v1056_v31 = vcvt.s32.f32 %v1054_v26  ;;  %v1055_v40 = vcvt.s32.f32 %v1053_v50 }
 0xddf   : > { %v1082_v32 = vsel %vm365_vm3, %v1036_v28, 2147483647  ;;  %v1035_v33 = vsel %vm1031_vm8, %v1710_v46, 32  ;;  %v1041_v34 = vcvt.s32.f32 %v1039_v27  ;;  %v1040_v57 = vcvt.s32.f32 %v1038_v29 }
 0xde0   : > { %v1067_v35 = vsel %vm365_vm3, %v1035_v33, 2147483647  ;;  %1057 = vmin.xlane.f32.xlu1 %v1056_v31  ;;  %v1084_v36 = vshra.s32 %v1082_v32, 16  ;;  %v1083_v30 = vand.u32 65535, %v1082_v32 }
 0xde1   : > { %1042 = vmin.xlane.f32.xlu0 %v1041_v34  ;;  %v1069_v43 = vshra.s32 %v1067_v35, 16  ;;  %v1068_v54 = vand.u32 65535, %v1067_v35 }
 0xde2   : > { %v1086_v47 = vcvt.s32.f32 %v1084_v36  ;;  %v1085_v48 = vcvt.s32.f32 %v1083_v30 }
 0xde3   : > { %v1071_v49 = vcvt.s32.f32 %v1069_v43  ;;  %v1070_v1 = vcvt.s32.f32 %v1068_v54 }
 0xde4   : > { %1087 = vmin.xlane.f32.xlu1 %v1086_v47 }
 0xde5   : > { %1072 = vmin.xlane.f32.xlu0 %v1071_v49 }
 0xe6d   : > { %v1058_v52 = vpop.xlane.xlu1 %1057 }
 0xe6e   : > { %v1043_v41 = vpop.xlane.xlu0 %1042  ;;  %vm1059_vm9 = vcmp.eq.f32.partialorder %v1056_v31, %v1058_v52  ;;  %v1064_v45 = vcvt.f32.s32 %v1058_v52 }
 0xe6f   : > { %v1060_v59 = vsel %vm1059_vm9, %v1055_v40, inf  ;;  %vm1044_vm10 = vcmp.eq.f32.partialorder %v1041_v34, %v1043_v41  ;;  %v1049_v4 = vcvt.f32.s32 %v1043_v41 }
 0xe70   : > { %1061 = vmin.xlane.f32.xlu1 %v1060_v59  ;;  %v1045_v37 = vsel %vm1044_vm10, %v1040_v57, inf  ;;  %v1065_v53 = vshll.u32 %v1064_v45, 16 }
 0xe71   : > { %v1088_v39 = vpop.xlane.xlu1 %1087  ;;  %1046 = vmin.xlane.f32.xlu0 %v1045_v37  ;;  %v1050_v11 = vshll.u32 %v1049_v4, 16 }
 0xe72   : > { %vm1089_vm3 = vcmp.eq.f32.partialorder %v1086_v47, %v1088_v39  ;;  %v1073_v63 = vpop.xlane.xlu0 %1072  ;;  %v1094_v62 = vcvt.f32.s32 %v1088_v39 }
 0xe73   : > { %vm1074_vm11 = vcmp.eq.f32.partialorder %v1071_v49, %v1073_v63  ;;  %v1090_v42 = vsel %vm1089_vm3, %v1085_v48, inf  ;;  %v1079_v61 = vcvt.f32.s32 %v1073_v63 }
 0xe74   : > { %1091 = vmin.xlane.f32.xlu1 %v1090_v42  ;;  %v1075_v55 = vsel %vm1074_vm11, %v1070_v1, inf  ;;  %v1095_v44 = vshll.u32 %v1094_v62, 16 }
 0xe75   : > { %1076 = vmin.xlane.f32.xlu0 %v1075_v55  ;;  %v1080_v18 = vshll.u32 %v1079_v61, 16 }
 0xefd   : > { %v1062_v6 = vpop.xlane.xlu1 %1061 }
 0xefe   : > { %v1063_v0 = vcvt.f32.s32 %v1062_v6  ;;  %v1047_v9 = vpop.xlane.xlu0 %1046 }
 0xeff   : > { %v1048_v3 = vcvt.f32.s32 %v1047_v9 }
 0xf00   : > { %v1066_v5 = vadd.s32 %v1065_v53, %v1063_v0 }
 0xf01   : > { %v1051_v14 = vadd.s32 %v1050_v11, %v1048_v3  ;;  %v1092_v16 = vpop.xlane.xlu1 %1091 }
 0xf02   : > { %v1099_v2 = vsel %vm1097_vm12, %v1066_v5, %v2070_v13  ;;  %v1093_v17 = vcvt.f32.s32 %v1092_v16  ;;  %v1077_v8 = vpop.xlane.xlu0 %1076 }
 0xf03   : > { %1104 = vst.msk [vmem:[%s216_s21 + $0x8] sm:$0xff] %vm1102_vm13, %v1099_v2  ;;  %v1098_v10 = vsel %vm1097_vm12, %v1051_v14, %v2076_v56  ;;  %v1078_v60 = vcvt.f32.s32 %v1077_v8 }
 0xf04   : > { %1103 = vst.msk [vmem:[%s216_s21] sm:$0xff] %vm1102_vm13, %v1098_v10  ;;  %v1096_v13 = vadd.s32 %v1095_v44, %v1093_v17 }
 0xf05   : > { %v1081_v12 = vadd.s32 %v1080_v18, %v1078_v60 }
 0xf06   : > { %v1101_v20 = vsel %vm1097_vm12, %v1096_v13, %v2086_v19 }
 0xf07   : > { %1106 = vst.msk [vmem:[%s216_s21 + $0x18] sm:$0xff] %vm1102_vm13, %v1101_v20  ;;  %v1100_v56 = vsel %vm1097_vm12, %v1081_v12, %v2092_v58 }
 0xf08   : > { %1105 = vst.msk [vmem:[%s216_s21 + $0x10] sm:$0xff] %vm1102_vm13, %v1100_v56 }
 0xf09   : > { %1417 = shalt.err (!%p1414_p2)
}
 0xf0a   : > { %s1418_s4 = scalar_lea.hbm %s2124_s28, 512  ;;  %s1422_s27 = scalar_lea.hbm %s2183_s2, 1024 }
 0xf0b   : > { %p1419_p9 = scmp.ne.s32.totalorder %s2124_s28, %s1418_s4  ;;  %p1423_p6 = scmp.lt.u32.totalorder %s2124_s28, %s2183_s2 }
 0xf0c   : > { %p1424_p4 = scmp.lt.u32.totalorder %s1422_s27, %s1418_s4  ;;  %p1426_p0 = scmp.lt.u32.totalorder %s1418_s4, %s2124_s28 }
 0xf0d   : > { %p1420_p11 = pnand %p1419_p9, %p2195_p5 }
 0xf0e   : > { %p1425_p8 = por %p1424_p4, %p1423_p6 }
 0xf0f   : > { %p1421_p3 = pneg %p1420_p11 }
 0xf10   : > { %p1427_p7 = por %p1426_p0, %p1425_p8 }
 0xf12   : > { %p1428_p13 = pnand %p1427_p7, %p1421_p3 }
 0xf14   : > { %1431 = shalt.err (!%p1428_p13)
}
 0xf15   : > { %s1497_s29 = smov 128   ;;  %s1498_s21 = smov 8  }
 0xf16   : > { %1277 = dma.vmem_to_hbm [thread:$0]  (%p2195_p5), %s2118_s16, 512, %s2124_s28, %s1108_s3, %s1497_s29, %s1497_s29, %s1498_s21  }
 0xf17 PF: > { %s1138_s19 = sand.u32 1, %s1470_s9   ;;  %p2196_p10 = scmp.ne.s32.totalorder %s2189_s24, 0 }
 0xf18   : > { %p2197_p12 = scmp.ge.s32.totalorder %s1490_s14, 2  ;;  %s1139_s30 = scalar_lea.sflag [#allocation4], %s1138_s19 }
 0xf1a   : > { %p1287_p1 = pnand %p2197_p12, %p2196_p10 }
 0xf1c   : > { %1465 = dma.done.wait (!%p1287_p1), %s1139_s30, 512  }
 0xf1d   : > { %1467 = vsyncadd (!%p1287_p1), %s1139_s30, 4294966784  ;;  %s21_s14 = sadd.s32 1, %s1490_s14   ;;  %s2198_s9 = smov %s1474_s10 }
 0xf1e   : > { %p18_p2 = scmp.ge.s32.totalorder %s21_s14, 4   ;;  %s2199_s10 = smov %s1478_s11 }
 0xf1f   : > { %s2200_s11 = smov %s1570_s23  ;;  %s2201_s12 = smov %s1486_s13 }
 0xf20   : > { %s2202_s13 = smov %s2204_s17  ;;  %20 = sbr.rel (!%p18_p2) target bundleno = 8 (0x8), region = 86 }
 0xf27   :  { %1144 = vsyncpa [#allocation3], 1 }
 0xf28   :  { %1146 = vsyncpa [#allocation3 + $0x1], 1 }
 0xf29   :  { %1147 = vsyncpa [#allocation6], 1 }
 0xf2a   :  { %1149 = vsyncpa [#allocation6 + $0x1], 1 }
 0xf2b   :  { %1150 = vsyncpa [#allocation4], 1 }
 0xf2c   :  { %1152 = vsyncpa [#allocation4 + $0x1], 1 }

// kernel: edge_conv_forward.3
= control target key start
LH: loop header
LB: loop body
LE: loop exit
PB: predicated region body
PF: predicated region fallthrough
CT: control target
= control target key end

     0   :  { %s4607_s0 = inlined_call_operand.hbm [shape: bf16[2,32,8,3], index: 0, kind: input, shape index: {}]   ;;  %s4608_s1 = inlined_call_operand.hbm [shape: bf16[2,32,3], index: 1, kind: input, shape index: {}]   ;;  %s4609_s2 = inlined_call_operand.hbm [shape: bf16[3,32], index: 2, kind: input, shape index: {}]   ;;  %s4610_s3 = inlined_call_operand.hbm [shape: bf16[3,32], index: 3, kind: input, shape index: {}]   ;;  %s4611_s4 = inlined_call_operand.hbm [shape: f32[2,32], index: 4, kind: input, shape index: {}]   ;;  %s4612_s5 = inlined_call_operand.hbm [shape: bf16[32,32], index: 5, kind: input, shape index: {}]   ;;  %s4613_s6 = inlined_call_operand.hbm [shape: f32[2,32], index: 6, kind: input, shape index: {}]   ;;  %s4614_s7 = inlined_call_operand.hbm [shape: f32[2,32,32], index: 7, kind: output, shape index: {}]  }
   0x1   :  { %4623 = sst [smem:[#allocation21_spill]] %s4607_s0 }
   0x2   :  { %4624 = sst [smem:[#allocation22_spill]] %s4609_s2 }
   0x3   :  { %4625 = sst [smem:[#allocation23_spill]] %s4610_s3 }
   0x4   :  { %4626 = sst [smem:[#allocation24_spill]] %s4611_s4 }
   0x5   :  { %4627 = sst [smem:[#allocation25_spill]] %s4612_s5 }
   0x6   :  { %4628 = sst [smem:[#allocation26_spill]] %s4613_s6 }
   0x7   :  { %4629 = sst [smem:[#allocation27_spill]] %s4614_s7 }
   0x8   :  { %12 = vsyncpa [#allocation3], 0 }
   0x9   :  { %14 = vsyncpa [#allocation3 + $0x1], 0 }
   0xa   :  { %15 = vsyncpa [#allocation6], 0 }
   0xb   :  { %17 = vsyncpa [#allocation6 + $0x1], 0 }
   0xc   :  { %18 = vsyncpa [#allocation9], 0 }
   0xd   :  { %19 = vsyncpa [#allocation12], 0 }
   0xe   :  { %20 = vsyncpa [#allocation4], 0 }
   0xf   :  { %22 = vsyncpa [#allocation4 + $0x1], 0  ;;  %s3549_s24 = smov 0   ;;  %s3551_s25 = smov 0  }
  0x10   :  { %s3553_s26 = smov 0   ;;  %s3555_s27 = smov 0  }
  0x11   :  { %s3557_s28 = smov 0   ;;  %s3559_s29 = smov 0  }
  0x12 LB: > { %s3580_s30 = sadd.s32 4294967295, %s3493_s29   ;;  %p2852_p0 = scmp.ge.s32.totalorder %s3493_s29, 1  ;;  %s3493_s29 = sphi %s3559_s29, %s28_s29   ;;  %s3489_s28 = sphi %s3557_s28, %s4663_s28   ;;  %s3485_s27 = sphi %s3555_s27, %s4662_s27   ;;  %s3481_s26 = sphi %s3553_s26, %s4661_s26   ;;  %s3477_s25 = sphi %s3551_s25, %s4660_s25   ;;  %s3473_s24 = sphi %s3549_s24, %s4659_s24  }
  0x13   : > { %p4615_p1 = scmp.eq.s32.totalorder %s3580_s30, 0  ;;  %p234_p2 = scmp.lt.s32.totalorder %s3493_s29, 3 }
  0x14   : > { %s3495_s9 = smov [#allocation7]   ;;  %s3496_s11 = smov [#allocation8]  }
  0x15   : > { %p3585_p3 = pnand %p2852_p0, %p234_p2  ;;  %s247_s10 = sshll.u32 %s3495_s9, 4  ;;  %s248_s10 = int_to_ptr.vmem [resolvable:$true] %s247_s10 }
  0x16   : > { %s258_s12 = sshll.u32 %s3496_s11, 4  ;;  %s3497_s14 = smov [#allocation11]   ;;  %s3598_s12 = int_to_ptr.vmem [resolvable:$true] %s258_s12 }
  0x17   : > { %s4630_s8 = scalar_select %p3585_p3, 1, 0 }
  0x18   : > { %p3092_p5 = pneg %p3585_p3  ;;  %s279_s15 = sshll.u32 %s3497_s14, 4  ;;  %s3600_s15 = int_to_ptr.vmem [resolvable:$true] %s279_s15 }
  0x19   : > { %s4632_s2 = sld [smem:[#allocation22_spill]] }
  0x1a   : > { %p3594_p6 = pnand %p3092_p5, %p4615_p1 }
  0x1c   : > { %p3610_p8 = pneg %p3594_p6 }
  0x1f   : > { %s3195_s18 = scalar_lea.hbm %s4632_s2, 32 }
  0x20   : > { %p3196_p7 = scmp.ne.s32.totalorder %s4632_s2, %s3195_s18  ;;  %p3202_p11 = scmp.lt.u32.totalorder %s3195_s18, %s4632_s2 }
  0x22   : > { %p3198_p9 = pnand %p3610_p8, %p3196_p7 }
  0x24   : > { %p3199_p10 = pneg %p3198_p9 }
  0x26   : > { %p3204_p12 = pnand %p3202_p11, %p3199_p10 }
  0x28   : > { %3207 = shalt.err (!%p3204_p12)
}
  0x29   : > { %s3208_s9 = scalar_lea.vmem %s248_s10, 32  ;;  %p3216_p5 = scmp.lt.s32.totalorder %s248_s10, %s248_s10 }
  0x2a   : > { %p3209_p13 = scmp.ne.s32.totalorder %s248_s10, %s3208_s9  ;;  %p3217_p4 = scmp.lt.s32.totalorder %s3208_s9, %s3208_s9 }
  0x2c   : > { %p3211_p0 = pnand %p3209_p13, %p3610_p8  ;;  %p3218_p1 = por %p3217_p4, %p3216_p5 }
  0x2e   : > { %p3212_p2 = pneg %p3211_p0 }
  0x30   : > { %p3219_p3 = pnand %p3218_p1, %p3212_p2 }
  0x32   : > { %3222 = shalt.err (!%p3219_p3)
}
  0x33   : > { %3095 = dma.hbm_to_vmem [thread:$0]  (!%p3594_p6), %s4632_s2, 32, %s248_s10, [#allocation6]  }
  0x34   : > { %s4634_s3 = sld [smem:[#allocation23_spill]] }
  0x3a   : > { %s3223_s18 = scalar_lea.hbm %s4634_s3, 32 }
  0x3b   : > { %p3224_p7 = scmp.ne.s32.totalorder %s4634_s3, %s3223_s18  ;;  %p3230_p1 = scmp.lt.u32.totalorder %s3223_s18, %s4634_s3 }
  0x3d   : > { %p3226_p9 = pnand %p3224_p7, %p3610_p8 }
  0x3f   : > { %p3227_p4 = pneg %p3226_p9 }
  0x41   : > { %p3232_p3 = pnand %p3230_p1, %p3227_p4 }
  0x43   : > { %3235 = shalt.err (!%p3232_p3)
}
  0x44   : > { %s3236_s10 = scalar_lea.vmem %s3598_s12, 32  ;;  %p3244_p13 = scmp.lt.s32.totalorder %s3598_s12, %s3598_s12 }
  0x45   : > { %p3237_p10 = scmp.ne.s32.totalorder %s3598_s12, %s3236_s10  ;;  %p3245_p0 = scmp.lt.s32.totalorder %s3236_s10, %s3236_s10 }
  0x47   : > { %p3239_p11 = pnand %p3237_p10, %p3610_p8  ;;  %p3246_p2 = por %p3245_p0, %p3244_p13 }
  0x49   : > { %p3240_p12 = pneg %p3239_p11 }
  0x4b   : > { %p3247_p5 = pnand %p3246_p2, %p3240_p12 }
  0x4d   : > { %3250 = shalt.err (!%p3247_p5)
}
  0x4e   : > { %3098 = dma.hbm_to_vmem [thread:$0]  (!%p3594_p6), %s4634_s3, 32, %s3598_s12, [#allocation9]  }
  0x4f   : > { %s4635_s5 = sld [smem:[#allocation25_spill]] }
  0x55   : > { %s3251_s17 = scalar_lea.hbm %s4635_s5, 256 }
  0x56   : > { %p3252_p7 = scmp.ne.s32.totalorder %s4635_s5, %s3251_s17  ;;  %p3258_p1 = scmp.lt.u32.totalorder %s3251_s17, %s4635_s5 }
  0x58   : > { %p3254_p9 = pnand %p3252_p7, %p3610_p8 }
  0x5a   : > { %p3255_p4 = pneg %p3254_p9 }
  0x5c   : > { %p3260_p3 = pnand %p3258_p1, %p3255_p4 }
  0x5e   : > { %3263 = shalt.err (!%p3260_p3)
}
  0x5f   : > { %s3264_s12 = scalar_lea.vmem %s3600_s15, 256  ;;  %p3272_p13 = scmp.lt.s32.totalorder %s3600_s15, %s3600_s15 }
  0x60   : > { %p3265_p10 = scmp.ne.s32.totalorder %s3600_s15, %s3264_s12  ;;  %p3273_p0 = scmp.lt.s32.totalorder %s3264_s12, %s3264_s12 }
  0x62   : > { %p3267_p11 = pnand %p3265_p10, %p3610_p8  ;;  %p3274_p2 = por %p3273_p0, %p3272_p13 }
  0x64   : > { %p3268_p12 = pneg %p3267_p11 }
  0x66   : > { %p3275_p5 = pnand %p3274_p2, %p3268_p12 }
  0x68   : > { %3278 = shalt.err (!%p3275_p5)
}
  0x69   : > { %s4618_s23 = smov 64   ;;  %s4620_s10 = smov 4  }
  0x6a   : > { %3104 = dma.hbm_to_vmem [thread:$0]  (!%p3594_p6), %s4635_s5, 256, %s3600_s15, [#allocation12], %s4618_s23, %s4618_s23, %s4620_s10  }
  0x6b   : > { %s3500_s14 = smov [#allocation10]   ;;  %s3501_s17 = smov [#allocation13]  }
  0x6c   : > { %s269_s16 = sshll.u32 %s3500_s14, 4  ;;  %s293_s18 = sshll.u32 %s3501_s17, 4  ;;  %s270_s16 = int_to_ptr.vmem [resolvable:$true] %s269_s16  ;;  %s294_s18 = int_to_ptr.vmem [resolvable:$true] %s293_s18 }
  0x6d   : > { %s4636_s4 = sld [smem:[#allocation24_spill]] }
  0x73   : > { %s3279_s22 = scalar_lea.hbm %s4636_s4, 32 }
  0x74   : > { %p3280_p7 = scmp.ne.s32.totalorder %s4636_s4, %s3279_s22  ;;  %p3286_p1 = scmp.lt.u32.totalorder %s3279_s22, %s4636_s4 }
  0x76   : > { %p3282_p9 = pnand %p3280_p7, %p3610_p8 }
  0x78   : > { %p3283_p4 = pneg %p3282_p9 }
  0x7a   : > { %p3288_p3 = pnand %p3286_p1, %p3283_p4 }
  0x7c   : > { %3291 = shalt.err (!%p3288_p3)
}
  0x7d   : > { %s3292_s15 = scalar_lea.vmem %s270_s16, 32  ;;  %p3300_p13 = scmp.lt.s32.totalorder %s270_s16, %s270_s16 }
  0x7e   : > { %p3293_p10 = scmp.ne.s32.totalorder %s270_s16, %s3292_s15  ;;  %p3301_p0 = scmp.lt.s32.totalorder %s3292_s15, %s3292_s15 }
  0x80   : > { %p3295_p11 = pnand %p3293_p10, %p3610_p8  ;;  %p3302_p2 = por %p3301_p0, %p3300_p13 }
  0x82   : > { %p3296_p12 = pneg %p3295_p11 }
  0x84   : > { %p3303_p5 = pnand %p3302_p2, %p3296_p12 }
  0x86   : > { %3306 = shalt.err (!%p3303_p5)
}
  0x87   : > { %3101 = dma.hbm_to_vmem [thread:$0]  (!%p3594_p6), %s4636_s4, 32, %s270_s16, [#allocation9]  }
  0x88   : > { %s4637_s6 = sld [smem:[#allocation26_spill]] }
  0x8e   : > { %s3307_s11 = scalar_lea.hbm %s4637_s6, 32 }
  0x8f   : > { %p3308_p7 = scmp.ne.s32.totalorder %s4637_s6, %s3307_s11  ;;  %p3314_p1 = scmp.lt.u32.totalorder %s3307_s11, %s4637_s6 }
  0x91   : > { %p3310_p9 = pnand %p3308_p7, %p3610_p8 }
  0x93   : > { %p3311_p4 = pneg %p3310_p9 }
  0x95   : > { %p3316_p3 = pnand %p3314_p1, %p3311_p4 }
  0x97   : > { %3319 = shalt.err (!%p3316_p3)
}
  0x98   : > { %s3320_s22 = scalar_lea.vmem %s294_s18, 32  ;;  %p3328_p13 = scmp.lt.s32.totalorder %s294_s18, %s294_s18 }
  0x99   : > { %p3321_p10 = scmp.ne.s32.totalorder %s294_s18, %s3320_s22  ;;  %p3329_p0 = scmp.lt.s32.totalorder %s3320_s22, %s3320_s22 }
  0x9b   : > { %p3323_p11 = pnand %p3321_p10, %p3610_p8  ;;  %p3330_p2 = por %p3329_p0, %p3328_p13 }
  0x9d   : > { %p3324_p12 = pneg %p3323_p11 }
  0x9f   : > { %p3331_p5 = pnand %p3330_p2, %p3324_p12 }
  0xa1   : > { %3334 = shalt.err (!%p3331_p5)
}
  0xa2   : > { %3107 = dma.hbm_to_vmem [thread:$0]  (!%p3594_p6), %s4637_s6, 32, %s294_s18, [#allocation12]  }
  0xa3   : > { %s2851_s21 = sadd.s32 4294967294, %s3493_s29   ;;  %s40_s15 = sadd.s32 1, %s3489_s28 }
  0xa4   : > { %s49_s13 = sadd.s32 1, %s3481_s26  ;;  %p42_p8 = scmp.ge.s32.totalorder %s40_s15, 2 }
  0xa5   : > { %p56_p7 = scmp.ne.s32.totalorder %s3481_s26, %s3477_s25  ;;  %p57_p9 = scmp.eq.s32.totalorder %s3493_s29, 0 }
  0xa6   : > { %p62_p4 = scmp.ne.s32.totalorder %s3477_s25, %s3473_s24  ;;  %s4665_s15 = smov (%p42_p8, %s40_s15), 0 }
  0xa7   : > { %p3721_p1 = por %p57_p9, %p56_p7  ;;  %p4639_p3 = scmp.eq.s32.totalorder %s3580_s30, 0 }
  0xa8   : > { %s44_s9 = ssub.s32 %s3489_s28, %s4665_s15  ;;  %p221_p10 = scmp.eq.s32.totalorder %s3580_s30, 1 }
  0xa9   : > { %p3727_p6 = por %p4639_p3, %p62_p4  ;;  %p47_p11 = scmp.eq.s32.totalorder %s44_s9, 0 }
  0xaa   : > { %p227_p12 = scmp.eq.s32.totalorder %s2851_s21, 1  ;;  %p3734_p13 = por %p221_p10, %p56_p7 }
  0xab   : > { %p3124_p0 = scmp.lt.s32.totalorder %s3493_s29, 2  ;;  %s3747_s14 = sand.u32 1, %s3481_s26  }
  0xac   : > { %s4641_s3 = scalar_select %p3734_p13, 1, 0 }
  0xad   : > { %s3740_s7 = scalar_select %p47_p11, %s3481_s26, %s49_s13  }
  0xae   : > { %p3742_p2 = por %p227_p12, %p62_p4  ;;  %s2859_s17 = sshll.u32 %s3747_s14, 7 }
  0xaf   : > { %s2949_s19 = sshll.u32 %s3489_s28, 11  ;;  %s4643_s0 = sld [smem:[#allocation21_spill]] }
  0xb0   : > { %s4642_s11 = scalar_select %p3742_p2, 1, 0 }
  0xb1   : > { %s308_s12 = scalar_lea.vmem [#allocation2], %s2859_s17  ;;  %p3760_p5 = pnand %p3124_p0, %p3721_p1 }
  0xb2   : > { %s317_s21 = sshll.u32 %s308_s12, 4  ;;  %s2862_s23 = sshll.u32 %s3747_s14, 4  ;;  %s3756_s21 = int_to_ptr.vmem [resolvable:$true] %s317_s21 }
  0xb3   : > { %s305_s20 = scalar_lea.sflag [#allocation3], %s3747_s14  ;;  %p3337_p7 = pneg %p3760_p5 }
  0xb5   : > { %s3754_s16 = scalar_lea.hbm %s4643_s0, %s2949_s19  ;;  %s3340_s2 = scalar_lea.hbm %s4643_s0, 4096 }
  0xb6   : > { %s3335_s19 = scalar_lea.hbm %s3754_s16, 2048  ;;  %p3341_p1 = scmp.lt.u32.totalorder %s3754_s16, %s4643_s0 }
  0xb7   : > { %p3336_p8 = scmp.ne.s32.totalorder %s3754_s16, %s3335_s19  ;;  %p3342_p3 = scmp.lt.u32.totalorder %s3340_s2, %s3335_s19 }
  0xb8   : > { %p3344_p11 = scmp.lt.u32.totalorder %s3335_s19, %s3754_s16 }
  0xb9   : > { %p3338_p9 = pnand %p3337_p7, %p3336_p8  ;;  %p3343_p10 = por %p3342_p3, %p3341_p1 }
  0xbb   : > { %p3339_p4 = pneg %p3338_p9  ;;  %p3345_p12 = por %p3344_p11, %p3343_p10 }
  0xbd   : > { %p3346_p0 = pnand %p3345_p12, %p3339_p4 }
  0xbf   : > { %3349 = shalt.err (!%p3346_p0)
}
  0xc0   : > { %s3350_s9 = scalar_lea.vmem %s3756_s21, 2048  ;;  %s3502_s17 = smov [#allocation2]  }
  0xc1   : > { %p3351_p8 = scmp.ne.s32.totalorder %s3756_s21, %s3350_s9  ;;  %s3355_s22 = sshll.u32 %s3502_s17, 4  ;;  %s3356_s22 = int_to_ptr.vmem [resolvable:$false] %s3355_s22 }
  0xc2   : > { %s3357_s10 = scalar_lea.vmem %s3356_s22, 4096  ;;  %p3358_p13 = scmp.lt.s32.totalorder %s3756_s21, %s3356_s22 }
  0xc3   : > { %p3353_p9 = pnand %p3351_p8, %p3337_p7  ;;  %p3359_p1 = scmp.lt.s32.totalorder %s3357_s10, %s3350_s9 }
  0xc5   : > { %p3354_p2 = pneg %p3353_p9  ;;  %p3360_p3 = por %p3359_p1, %p3358_p13 }
  0xc7   : > { %p3361_p10 = pnand %p3360_p3, %p3354_p2 }
  0xc9   : > { %3364 = shalt.err (!%p3361_p10)
}
  0xca   : > { %s4645_s19 = smov 4   ;;  %s4646_s2 = smov 64  }
  0xcb   : > { %3111 = dma.hbm_to_vmem [thread:$0]  (!%p3760_p5), %s3754_s16, 2048, %s3756_s21, %s305_s20, %s4646_s2, %s4646_s2, %s4645_s19  }
  0xcc   : > { %s2950_s12 = sshll.u32 %s3489_s28, 8  ;;  %s331_s10 = scalar_lea.vmem [#allocation5], %s2862_s23 }
  0xcd   : > { %s3801_s22 = scalar_lea.hbm %s4608_s1, %s2950_s12  ;;  %s340_s0 = sshll.u32 %s331_s10, 4  ;;  %s3805_s0 = int_to_ptr.vmem [resolvable:$true] %s340_s0 }
  0xce   : > { %s4647_s4 = sand.u32 1, %s3493_s29   ;;  %s3365_s6 = scalar_lea.hbm %s3801_s22, 256 }
  0xcf   : > { %s3809_s5 = scalar_lea.sflag [#allocation6], %s4647_s4  ;;  %p3366_p13 = scmp.ne.s32.totalorder %s3801_s22, %s3365_s6 }
  0xd0   : > { %s3370_s14 = scalar_lea.hbm %s4608_s1, 512  ;;  %p3371_p11 = scmp.lt.u32.totalorder %s3801_s22, %s4608_s1 }
  0xd1   : > { %p3368_p2 = pnand %p3366_p13, %p3337_p7  ;;  %p3372_p12 = scmp.lt.u32.totalorder %s3370_s14, %s3365_s6 }
  0xd2   : > { %p3374_p8 = scmp.lt.u32.totalorder %s3365_s6, %s3801_s22 }
  0xd3   : > { %p3369_p4 = pneg %p3368_p2  ;;  %p3373_p0 = por %p3372_p12, %p3371_p11 }
  0xd5   : > { %p3375_p9 = por %p3374_p8, %p3373_p0 }
  0xd7   : > { %p3376_p1 = pnand %p3375_p9, %p3369_p4 }
  0xd9   : > { %3379 = shalt.err (!%p3376_p1)
}
  0xda   : > { %s3380_s4 = scalar_lea.vmem %s3805_s0, 256  ;;  %s3503_s23 = smov [#allocation5]  }
  0xdb   : > { %p3381_p3 = scmp.ne.s32.totalorder %s3805_s0, %s3380_s4  ;;  %s3385_s17 = sshll.u32 %s3503_s23, 4  ;;  %s3386_s17 = int_to_ptr.vmem [resolvable:$false] %s3385_s17 }
  0xdc   : > { %s3387_s9 = scalar_lea.vmem %s3386_s17, 512  ;;  %p3388_p2 = scmp.lt.s32.totalorder %s3805_s0, %s3386_s17 }
  0xdd   : > { %p3383_p10 = pnand %p3381_p3, %p3337_p7  ;;  %p3389_p11 = scmp.lt.s32.totalorder %s3387_s9, %s3380_s4 }
  0xdf   : > { %p3384_p13 = pneg %p3383_p10  ;;  %p3390_p12 = por %p3389_p11, %p3388_p2 }
  0xe1   : > { %p3391_p0 = pnand %p3390_p12, %p3384_p13 }
  0xe3   : > { %3394 = shalt.err (!%p3391_p0)
}
  0xe4   : > { %3114 = dma.hbm_to_vmem [thread:$0]  (!%p3760_p5), %s3801_s22, 256, %s3805_s0, %s3809_s5, %s4646_s2, %s4646_s2, %s4645_s19  }
  0xe5   : > { %p4648_p7 = scmp.ne.s32.totalorder %s4630_s8, 0 }
  0xe6   : > { %s3841_s6 = sand.u32 (!%p4648_p7), 1, %s3477_s25  }
  0xe7   : > { %352 = sbr.rel (%p4648_p7) target bundleno = 980 (0x3d4), region = 48  ;;  %s2866_s10 = sshll.u32 (!%p4648_p7), %s3841_s6, 7 }
  0xe8   : > { %s355_s16 = scalar_lea.sflag (!%p4648_p7), [#allocation3], %s3841_s6  ;;  %s3845_s21 = scalar_lea.vmem (!%p4648_p7), [#allocation2], %s2866_s10 }
  0xee   : > { %3448 = dma.done.wait (%p3727_p6), %s355_s16, 2048  }
  0xef   : > { %3450 = vsyncadd (%p3727_p6), %s355_s16, 4294965248  ;;  %s363_s0 = sand.u32 1, %s3580_s30   ;;  %s2867_s5 = sshll.u32 %s3841_s6, 4 }
  0xf0   : > { %s364_s8 = scalar_lea.sflag [#allocation6], %s363_s0  ;;  %s367_s13 = scalar_lea.vmem [#allocation5], %s2867_s5 }
  0xf1   : > { %3452 = dma.done.wait (%p3727_p6), %s364_s8, 256  }
  0xf2   : > { %3454 = vsyncadd (%p3727_p6), %s364_s8, 4294967040  ;;  %p4649_p5 = scmp.eq.s32.totalorder %s3580_s30, 0 }
  0xf4   : > { %3456 = dma.done.wait (%p4649_p5), [#allocation6], 32   ;;  %p4650_p4 = pmov %p4649_p5 }
  0xf6   : > { %3458 = vsyncadd (%p4650_p4), [#allocation6], 4294967264  ;;  %p4651_p8 = pmov %p4650_p4 }
  0xf7   : > { %p4652_p9 = pmov %p4650_p4 }
  0xf8   : > { %3460 = dma.done.wait (%p4651_p8), [#allocation9], 64  }
  0xf9   : > { %3462 = vsyncadd (%p4652_p9), [#allocation9], 4294967232  ;;  %p4653_p1 = pmov %p4650_p4 }
  0xfb   : > { %3464 = dma.done.wait (%p4653_p1), [#allocation12], 288   ;;  %p4654_p3 = pmov %p4653_p1 }
  0xfc   : > { %vm1142_vm0 = vcmask 1040384   ;;  %v469_v0 = vlaneseq  ;;  %vm1143_vm1 = vcmask 1041408   ;;  %v3504_v1 = vmov 65535   ;;  %v1011_v9 = vld [vmem:[#allocation8] sm:$0x3]  ;;  %s2873_s30 = sshll.u32 %s3841_s6, 5 }
  0xfd   : > { %3466 = vsyncadd (%p4654_p3), [#allocation12], 4294967008  ;;  %v1144_v2 = vsel %vm1142_vm0, 4294967295, %v3504_v1  ;;  %v3505_v3 = vmov 1966171168   ;;  %vm1093_vm2 = vcmask 23552  }
  0xfe   : > { %v467_v4 = vunpack.c.l.s4 %v3505_v3  ;;  %v3869_v5 = vshrl.u32 %v469_v0, 7  ;;  %v1145_v7 = vsel %vm1143_vm1, %v1144_v2, 0  ;;  %v458_v10 = vld [vmem:[%s367_s13] sm:$0xf]  ;;  %v459_v11 = vld [vmem:[%s367_s13 + $0x4] sm:$0xf] }
  0xff   : > { %v1323_v12 = vand.u32 %v1145_v7, %v1011_v9  ;;  %v2922_v15 = vcombine.low %v458_v10, %v459_v11  ;;  %v460_v16 = vld [vmem:[%s367_s13 + $0x8] sm:$0xf]  ;;  %v3876_v17 = vld [vmem:[%s367_s13 + $0xc] sm:$0xf]  ;;  %v1010_v18 = vld [vmem:[#allocation7] sm:$0x3] }
 0x100   : > { %v468_v6 = vunpack.c.0.s8 %v467_v4  ;;  %v2923_v19 = vcombine.low %v460_v16, %v3876_v17  ;;  %v1147_v20 = vand.u32 %v1145_v7, %v1010_v18  ;;  %v3897_v37 = vsub.s32 0, %v3869_v5  ;;  %v428_v2 = vld [vmem:[%s3845_s21 + $0x8] sm:$0xf]  ;;  %v426_v7 = vld [vmem:[%s3845_s21] sm:$0xf]  ;;  %s422_s18 = scalar_lea.vmem [#allocation14], %s2873_s30 }
 0x101   : > { %3024 = vmatprep.subr.bf16.mxu1 %v1323_v12  ;;  %3026 = vmatprep.mubr.msk.bf16.mxu1 %vm1093_vm2, %v2922_v15  ;;  %v430_v18 = vld [vmem:[%s3845_s21 + $0x10] sm:$0xf]  ;;  %vm1967_vm3 = vcmask 261120   ;;  %s2691_s19 = sshll.u32 %s422_s18, 4  ;;  %s2951_s2 = sshll.u32 %s3485_s27, 9  ;;  %s4551_s19 = int_to_ptr.vmem [resolvable:$true] %s2691_s19 }
 0x102   : > { %v3872_v8 = vsub.s32 %v468_v6, %v3869_v5  ;;  %3025 = vmatpush3.bf16.msra.mxu1 %v1323_v12  ;;  %2990 = vmatprep.subr.bf16.mxu0 %v1147_v20  ;;  %s4655_s20 = sld [smem:[#allocation27_spill]]  ;;  %s2677_s4 = scalar_lea.sflag [#allocation4], %s3841_s6 }
 0x103   : > { %2991 = vmatpush3.bf16.msra.mxu0 %v1147_v20  ;;  %s3395_s23 = scalar_lea.vmem %s4551_s19, 512  ;;  %p4656_p10 = scmp.ne.s32.totalorder %s4641_s3, 0 }
 0x104   : > { %v472_v13 = vrot.slane %v458_v10, %v3872_v8  ;;  %v496_v14 = vrot.slane %v459_v11, %v3872_v8  ;;  %v3889_v32 = vrot.slane %v460_v16, %v3872_v8  ;;  %v429_v10 = vld [vmem:[%s3845_s21 + $0xc] sm:$0xf]  ;;  %p3396_p6 = scmp.ne.s32.totalorder %s4551_s19, %s3395_s23  ;;  %s3506_s27 = smov [#allocation14]  }
 0x105   : > { %3027 = vmatmul.mubr.msk.bf16.vlgmr.msra.gmra.mrb[0].mxu1 %vm1093_vm2, %v2923_v19  ;;  %v431_v19 = vld [vmem:[%s3845_s21 + $0x14] sm:$0xf]  ;;  %s3399_s17 = sshll.u32 %s3506_s27, 4  ;;  %s3400_s17 = int_to_ptr.vmem [resolvable:$false] %s3399_s17 }
 0x106   : > { %v473_v21 = vcombine.high %v472_v13, %v472_v13  ;;  %v480_v22 = vrot.slane %v472_v13, %v3872_v8  ;;  %v497_v23 = vcombine.high %v496_v14, %v496_v14  ;;  %v504_v24 = vrot.slane %v496_v14, %v3872_v8  ;;  %v427_v14 = vld [vmem:[%s3845_s21 + $0x4] sm:$0xf]  ;;  %p3397_p13 = pnand %p3396_p6, %p4656_p10  ;;  %s3401_s9 = scalar_lea.vmem %s3400_s17, 1024 }
 0x107   : > { %v3903_v44 = vrot.slane %v3889_v32, %v3872_v8  ;;  %p3402_p11 = scmp.lt.s32.totalorder %s4551_s19, %s3400_s17  ;;  %p3403_p12 = scmp.lt.s32.totalorder %s3401_s9, %s3395_s23 }
 0x108   : > { %v487_v25 = vrot.slane %v473_v21, %v3872_v8  ;;  %v488_v26 = vcombine.high %v480_v22, %v480_v22  ;;  %v3884_v27 = vrot.slane %v497_v23, %v3872_v8  ;;  %v571_v28 = vunpack.i.h.s16 %v504_v24  ;;  %s4557_s12 = scalar_lea.hbm %s4655_s20, %s2951_s2  ;;  %p3398_p2 = pneg %p3397_p13 }
 0x109   : > { %v3886_v30 = vcombine.high %v504_v24, %v504_v24  ;;  %v2878_v34 = vpack.i.b16 %v504_v24, %v504_v24  ;;  %v563_v38 = vunpack.i.h.s16 %v480_v22  ;;  %v2874_v52 = vpack.i.b16 %v480_v22, %v480_v22  ;;  %p3404_p0 = por %p3403_p12, %p3402_p11 }
 0x10a   : > { %v489_v29 = vcombine.high %v487_v25, %v487_v25  ;;  %v565_v31 = vunpack.i.h.s16 %v487_v25  ;;  %v567_v33 = vunpack.i.h.s16 %v488_v26  ;;  %v3894_v35 = vcombine.high %v3884_v27, %v3884_v27 }
 0x10b   : > { %v573_v39 = vunpack.i.h.s16 %v3884_v27  ;;  %v2875_v40 = vpack.i.b16 %v487_v25, %v487_v25  ;;  %v603_v41 = vpack.i.b16 %v571_v28, %v571_v28  ;;  %v575_v42 = vunpack.i.h.s16 %v3886_v30  ;;  %p3405_p7 = pnand %p3404_p0, %p3398_p2 }
 0x10c   : > { %v569_v36 = vunpack.i.h.s16 %v489_v29  ;;  %v597_v43 = vpack.i.b16 %v565_v31, %v565_v31  ;;  %v2876_v45 = vpack.i.b16 %v488_v26, %v488_v26  ;;  %v599_v46 = vpack.i.b16 %v567_v33, %v567_v33 }
 0x10d   : > { %v661_v47 = vrot.slane %v2878_v34, %v3897_v37  ;;  %v665_v48 = vrot.slane %v603_v41, %v3897_v37  ;;  %v577_v49 = vunpack.i.h.s16 %v3894_v35  ;;  %v2877_v50 = vpack.i.b16 %v489_v29, %v489_v29 }
 0x10e   : > { %v601_v51 = vpack.i.b16 %v569_v36, %v569_v36  ;;  %v2879_v53 = vpack.i.b16 %v3884_v27, %v3884_v27  ;;  %v605_v54 = vpack.i.b16 %v573_v39, %v573_v39  ;;  %v595_v55 = vpack.i.b16 %v563_v38, %v563_v38 }
 0x10f   : > { %v637_v56 = vrot.slane %v2875_v40, %v3897_v37  ;;  %v811_v57 = vpack.i.b16 %v661_v47, %v661_v47  ;;  %v818_v58 = vpack.i.b16 %v665_v48, %v665_v48  ;;  %v629_v59 = vrot.slane %v2874_v52, %v3897_v37  ;;  %v432_v40 = vld [vmem:[%s3845_s21 + $0x18] sm:$0xf] }
 0x110   : > { %v641_v60 = vrot.slane %v597_v43, %v3897_v37  ;;  %v633_v61 = vrot.slane %v595_v55, %v3897_v37  ;;  %v645_v63 = vrot.slane %v2876_v45, %v3897_v37  ;;  %v649_v0 = vrot.slane %v599_v46, %v3897_v37  ;;  %v433_v45 = vld [vmem:[%s3845_s21 + $0x1c] sm:$0xf] }
 0x111   : > { %v769_v62 = vpack.i.b16 %v637_v56, %v637_v56  ;;  %v755_v1 = vpack.i.b16 %v629_v59, %v629_v59  ;;  %v653_v4 = vrot.slane %v2877_v50, %v3897_v37  ;;  %v657_v6 = vrot.slane %v601_v51, %v3897_v37  ;;  %v434_v51 = vld [vmem:[%s3845_s21 + $0x20] sm:$0xf] }
 0x112   : > { %v776_v3 = vpack.i.b16 %v641_v60, %v641_v60  ;;  %v762_v9 = vpack.i.b16 %v633_v61, %v633_v61  ;;  %v783_v12 = vpack.i.b16 %v645_v63, %v645_v63  ;;  %v790_v13 = vpack.i.b16 %v649_v0, %v649_v0 }
 0x113   : > { %v774_v11 = vrot.slane %v769_v62, %v3897_v37  ;;  %v760_v15 = vrot.slane %v755_v1, %v3897_v37  ;;  %v797_v20 = vpack.i.b16 %v653_v4, %v653_v4  ;;  %v804_v21 = vpack.i.b16 %v657_v6, %v657_v6 }
 0x114   : > { %v781_v16 = vrot.slane %v776_v3, %v3897_v37  ;;  %v767_v22 = vrot.slane %v762_v9, %v3897_v37  ;;  %v788_v24 = vrot.slane %v783_v12, %v3897_v37  ;;  %v795_v25 = vrot.slane %v790_v13, %v3897_v37  ;;  %v436_v9 = vld [vmem:[%s3845_s21 + $0x28] sm:$0xf]  ;;  %v437_v13 = vld [vmem:[%s3845_s21 + $0x2c] sm:$0xf] }
 0x115   : > { %v980_v23 = vsub.bf16 %v428_v2, %v774_v11  ;;  %v2880_v26 = vpack.i.b16 %v3886_v30, %v3886_v30  ;;  %v607_v27 = vpack.i.b16 %v575_v42, %v575_v42  ;;  %v978_v28 = vsub.bf16 %v426_v7, %v760_v15 }
 0x116   : > { %v981_v29 = vsub.bf16 %v429_v10, %v781_v16  ;;  %v979_v31 = vsub.bf16 %v427_v14, %v767_v22  ;;  %v982_v33 = vsub.bf16 %v430_v18, %v788_v24  ;;  %v983_v34 = vsub.bf16 %v431_v19, %v795_v25  ;;  %v438_v14 = vld [vmem:[%s3845_s21 + $0x30] sm:$0xf]  ;;  %v439_v19 = vld [vmem:[%s3845_s21 + $0x34] sm:$0xf] }
 0x117   : > { %v802_v36 = vrot.slane %v797_v20, %v3897_v37  ;;  %v521_v38 = vcombine.high %v3889_v32, %v3889_v32  ;;  %v809_v41 = vrot.slane %v804_v21, %v3897_v37  ;;  %v816_v43 = vrot.slane %v811_v57, %v3897_v37  ;;  %v435_v32 = vld [vmem:[%s3845_s21 + $0x24] sm:$0xf] }
 0x118   : > { %v2891_v39 = vcombine.low %v980_v23, %v981_v29  ;;  %v2890_v30 = vcombine.low %v978_v28, %v979_v31  ;;  %v2892_v42 = vcombine.low %v982_v33, %v983_v34  ;;  %v823_v46 = vrot.slane %v818_v58, %v3897_v37 }
 0x119   : > { %v669_v47 = vrot.slane %v2879_v53, %v3897_v37  ;;  %v2881_v48 = vpack.i.b16 %v3894_v35, %v3894_v35  ;;  %v579_v50 = vunpack.i.h.s16 %v3903_v44  ;;  %v673_v52 = vrot.slane %v605_v54, %v3897_v37 }
 0x11a   : > { %v677_v55 = vrot.slane %v2880_v26, %v3897_v37  ;;  %v609_v56 = vpack.i.b16 %v577_v49, %v577_v49  ;;  %2992 = vmatprep.mubr.msk.bf16.mxu0 %vm1093_vm2, %v2890_v30  ;;  %v984_v57 = vsub.bf16 %v432_v40, %v802_v36  ;;  %v681_v58 = vrot.slane %v607_v27, %v3897_v37 }
 0x11b   : > { %v825_v59 = vpack.i.b16 %v669_v47, %v669_v47  ;;  %2993 = vmatmul.mubr.msk.bf16.vlgmr.msra.gmra.mrb[0].mxu0 %vm1093_vm2, %v2891_v39  ;;  %v985_v53 = vsub.bf16 %v433_v45, %v809_v41  ;;  %v832_v35 = vpack.i.b16 %v673_v52, %v673_v52  ;;  %v2882_v61 = vpack.i.b16 %v3903_v44, %v3903_v44 }
 0x11c   : > { %v839_v60 = vpack.i.b16 %v677_v55, %v677_v55  ;;  %v535_v54 = vrot.slane %v521_v38, %v3872_v8  ;;  %2996 = vmatprep.mubr.msk.bf16.mxu0 %vm1093_vm2, %v2892_v42  ;;  %v986_v49 = vsub.bf16 %v434_v51, %v816_v43  ;;  %v987_v62 = vsub.bf16 %v435_v32, %v823_v46 }
 0x11d   : > { %v846_v63 = vpack.i.b16 %v681_v58, %v681_v58  ;;  %v544_v0 = vrot.slane %v3876_v17, %v3872_v8  ;;  %v685_v1 = vrot.slane %v2881_v48, %v3897_v37  ;;  %v611_v2 = vpack.i.b16 %v579_v50, %v579_v50  ;;  %v440_v48 = vld [vmem:[%s3845_s21 + $0x38] sm:$0xf]  ;;  %v441_v50 = vld [vmem:[%s3845_s21 + $0x3c] sm:$0xf] }
 0x11e   : > { %v536_v3 = vcombine.high %v3903_v44, %v3903_v44  ;;  %v830_v4 = vrot.slane %v825_v59, %v3897_v37  ;;  %v689_v6 = vrot.slane %v609_v56, %v3897_v37  ;;  %v2893_v7 = vcombine.low %v984_v57, %v985_v53  ;;  %v442_v56 = vld [vmem:[%s3845_s21 + $0x40] sm:$0xf]  ;;  %v443_v57 = vld [vmem:[%s3845_s21 + $0x44] sm:$0xf] }
 0x11f   : > { %v837_v10 = vrot.slane %v832_v35, %v3897_v37  ;;  %v844_v11 = vrot.slane %v839_v60, %v3897_v37  ;;  %v693_v12 = vrot.slane %v2882_v61, %v3897_v37  ;;  %v2894_v17 = vcombine.low %v986_v49, %v987_v62 }
 0x120   : > { %v851_v15 = vrot.slane %v846_v63, %v3897_v37  ;;  %v697_v16 = vrot.slane %v611_v2, %v3897_v37  ;;  %v581_v44 = vunpack.i.h.s16 %v535_v54  ;;  %v552_v18 = vrot.slane %v544_v0, %v3872_v8 }
 0x121   : > { %v853_v20 = vpack.i.b16 %v685_v1, %v685_v1  ;;  %v2883_v21 = vpack.i.b16 %v535_v54, %v535_v54  ;;  %v988_v22 = vsub.bf16 %v436_v9, %v830_v4  ;;  %v860_v23 = vpack.i.b16 %v689_v6, %v689_v6  ;;  %v444_v4 = vld [vmem:[%s3845_s21 + $0x48] sm:$0xf] }
 0x122   : > { %v613_v24 = vpack.i.b16 %v581_v44, %v581_v44  ;;  %v583_v25 = vunpack.i.h.s16 %v536_v3  ;;  %v989_v26 = vsub.bf16 %v437_v13, %v837_v10  ;;  %v990_v27 = vsub.bf16 %v438_v14, %v844_v11 }
 0x123   : > { %2997 = vmatmul.mubr.msk.bf16.gmra.mrb[4].mxu0 %vm1093_vm2, %v2893_v7  ;;  %v867_v28 = vpack.i.b16 %v693_v12, %v693_v12  ;;  %v2884_v29 = vpack.i.b16 %v536_v3, %v536_v3  ;;  %v991_v31 = vsub.bf16 %v439_v19, %v851_v15  ;;  %v874_v33 = vpack.i.b16 %v697_v16, %v697_v16  ;;  %v445_v12 = vld [vmem:[%s3845_s21 + $0x4c] sm:$0xf]  ;;  %v446_v15 = vld [vmem:[%s3845_s21 + $0x50] sm:$0xf] }
 0x124   : > { %3000 = vmatprep.mubr.msk.bf16.mxu0 %vm1093_vm2, %v2894_v17  ;;  %v615_v34 = vpack.i.b16 %v583_v25, %v583_v25  ;;  %v537_v36 = vcombine.high %v535_v54, %v535_v54  ;;  %v545_v38 = vcombine.high %v544_v0, %v544_v0  ;;  %v701_v39 = vrot.slane %v2883_v21, %v3897_v37 }
 0x125   : > { %v587_v40 = vunpack.i.h.s16 %v552_v18  ;;  %v705_v41 = vrot.slane %v613_v24, %v3897_v37  ;;  %v2895_v30 = vcombine.low %v988_v22, %v989_v26  ;;  %v858_v42 = vrot.slane %v853_v20, %v3897_v37  ;;  %v447_v20 = vld [vmem:[%s3845_s21 + $0x54] sm:$0xf] }
 0x126   : > { %v585_v43 = vunpack.i.h.s16 %v537_v36  ;;  %v865_v45 = vrot.slane %v860_v23, %v3897_v37  ;;  %v709_v46 = vrot.slane %v2884_v29, %v3897_v37  ;;  %v2896_v47 = vcombine.low %v990_v27, %v991_v31 }
 0x127   : > { %v872_v51 = vrot.slane %v867_v28, %v3897_v37  ;;  %v879_v32 = vrot.slane %v874_v33, %v3897_v37  ;;  %v713_v52 = vrot.slane %v615_v34, %v3897_v37  ;;  %v559_v55 = vrot.slane %v545_v38, %v3872_v8 }
 0x128   : > { %v881_v59 = vpack.i.b16 %v701_v39, %v701_v39  ;;  %v888_v58 = vpack.i.b16 %v705_v41, %v705_v41  ;;  %v2885_v53 = vpack.i.b16 %v537_v36, %v537_v36  ;;  %v617_v35 = vpack.i.b16 %v585_v43, %v585_v43  ;;  %v448_v41 = vld [vmem:[%s3845_s21 + $0x58] sm:$0xf]  ;;  %v449_v43 = vld [vmem:[%s3845_s21 + $0x5c] sm:$0xf] }
 0x129   : > { %v2886_v60 = vpack.i.b16 %v552_v18, %v552_v18  ;;  %v560_v61 = vcombine.high %v552_v18, %v552_v18  ;;  %v992_v54 = vsub.bf16 %v440_v48, %v858_v42  ;;  %v993_v49 = vsub.bf16 %v441_v50, %v865_v45 }
 0x12a   : > { %v895_v62 = vpack.i.b16 %v709_v46, %v709_v46  ;;  %v994_v63 = vsub.bf16 %v442_v56, %v872_v51  ;;  %v995_v0 = vsub.bf16 %v443_v57, %v879_v32  ;;  %v902_v1 = vpack.i.b16 %v713_v52, %v713_v52  ;;  %v450_v51 = vld [vmem:[%s3845_s21 + $0x60] sm:$0xf]  ;;  %v451_v32 = vld [vmem:[%s3845_s21 + $0x64] sm:$0xf] }
 0x12b   : > { %3001 = vmatmul.mubr.msk.bf16.gmra.mrb[8].mxu0 %vm1093_vm2, %v2895_v30  ;;  %v619_v2 = vpack.i.b16 %v587_v40, %v587_v40  ;;  %v886_v3 = vrot.slane %v881_v59, %v3897_v37  ;;  %v893_v6 = vrot.slane %v888_v58, %v3897_v37  ;;  %v717_v7 = vrot.slane %v2885_v53, %v3897_v37 }
 0x12c   : > { %3004 = vmatprep.mubr.msk.bf16.mxu0 %vm1093_vm2, %v2896_v47  ;;  %v721_v9 = vrot.slane %v617_v35, %v3897_v37  ;;  %v725_v10 = vrot.slane %v2886_v60, %v3897_v37  ;;  %v2897_v11 = vcombine.low %v992_v54, %v993_v49  ;;  %v900_v17 = vrot.slane %v895_v62, %v3897_v37 }
 0x12d   : > { %v589_v13 = vunpack.i.h.s16 %v559_v55  ;;  %v2898_v14 = vcombine.low %v994_v63, %v995_v0  ;;  %v907_v16 = vrot.slane %v902_v1, %v3897_v37  ;;  %v729_v44 = vrot.slane %v619_v2, %v3897_v37  ;;  %v452_v2 = vld [vmem:[%s3845_s21 + $0x68] sm:$0xf] }
 0x12e   : > { %v591_v18 = vunpack.i.h.s16 %v560_v61  ;;  %v996_v19 = vsub.bf16 %v444_v4, %v886_v3  ;;  %v997_v21 = vsub.bf16 %v445_v12, %v893_v6  ;;  %v909_v22 = vpack.i.b16 %v717_v7, %v717_v7  ;;  %v453_v3 = vld [vmem:[%s3845_s21 + $0x6c] sm:$0xf]  ;;  %v454_v7 = vld [vmem:[%s3845_s21 + $0x70] sm:$0xf] }
 0x12f   : > { %v916_v23 = vpack.i.b16 %v721_v9, %v721_v9  ;;  %v923_v24 = vpack.i.b16 %v725_v10, %v725_v10  ;;  %v998_v25 = vsub.bf16 %v446_v15, %v900_v17  ;;  %v2887_v26 = vpack.i.b16 %v559_v55, %v559_v55  ;;  %v455_v9 = vld [vmem:[%s3845_s21 + $0x74] sm:$0xf] }
 0x130   : > { %v621_v27 = vpack.i.b16 %v589_v13, %v589_v13  ;;  %v561_v28 = vcombine.high %v559_v55, %v559_v55  ;;  %v999_v29 = vsub.bf16 %v447_v20, %v907_v16  ;;  %v930_v31 = vpack.i.b16 %v729_v44, %v729_v44  ;;  %v457_v20 = vld [vmem:[%s3845_s21 + $0x7c] sm:$0xf] }
 0x131   : > { %v2888_v33 = vpack.i.b16 %v560_v61, %v560_v61  ;;  %v623_v34 = vpack.i.b16 %v591_v18, %v591_v18  ;;  %v914_v36 = vrot.slane %v909_v22, %v3897_v37  ;;  %v921_v38 = vrot.slane %v916_v23, %v3897_v37 }
 0x132   : > { %v928_v39 = vrot.slane %v923_v24, %v3897_v37  ;;  %v2899_v40 = vcombine.low %v996_v19, %v997_v21  ;;  %v733_v30 = vrot.slane %v2887_v26, %v3897_v37  ;;  %v737_v42 = vrot.slane %v621_v27, %v3897_v37  ;;  %v456_v19 = vld [vmem:[%s3845_s21 + $0x78] sm:$0xf]  ;;  %v3193_v24 = vld [vmem:[#allocation11] sm:$0xff]  }
 0x133   : > { %3005 = vmatmul.mubr.msk.bf16.gmra.mrb[12].mxu0 %vm1093_vm2, %v2897_v11  ;;  %v593_v45 = vunpack.i.h.s16 %v561_v28  ;;  %v2900_v46 = vcombine.low %v998_v25, %v999_v29  ;;  %v935_v47 = vrot.slane %v930_v31, %v3897_v37  ;;  %v741_v48 = vrot.slane %v2888_v33, %v3897_v37  ;;  %3030 = vmatprep.subr.bf16.mxu1 %v3193_v24  ;;  %v3194_v25 = vld [vmem:[#allocation11 + $0x8] sm:$0xff]  }
 0x134   : > { %3008 = vmatprep.mubr.msk.bf16.mxu0 %vm1093_vm2, %v2898_v14  ;;  %v745_v50 = vrot.slane %v623_v34, %v3897_v37  ;;  %v1000_v52 = vsub.bf16 %v448_v41, %v914_v36  ;;  %v1001_v55 = vsub.bf16 %v449_v43, %v921_v38  ;;  %v937_v56 = vpack.i.b16 %v733_v30, %v733_v30 }
 0x135   : > { %v944_v57 = vpack.i.b16 %v737_v42, %v737_v42  ;;  %v2889_v59 = vpack.i.b16 %v561_v28, %v561_v28  ;;  %v625_v58 = vpack.i.b16 %v593_v45, %v593_v45  ;;  %v1002_v53 = vsub.bf16 %v450_v51, %v928_v39  ;;  %3031 = vmatpush3.bf16.msra.mxu1 %v3193_v24 }
 0x136   : > { %v1003_v35 = vsub.bf16 %v451_v32, %v935_v47  ;;  %v951_v60 = vpack.i.b16 %v741_v48, %v741_v48  ;;  %v958_v61 = vpack.i.b16 %v745_v50, %v745_v50  ;;  %v2901_v54 = vcombine.low %v1000_v52, %v1001_v55  ;;  %3032 = vmatprep.subr.bf16.mxu1 %v3194_v25  ;;  %v1012_v48 = vld [vmem:[#allocation10] sm:$0x3] }
 0x137   : > { %v942_v49 = vrot.slane %v937_v56, %v3897_v37  ;;  %v949_v62 = vrot.slane %v944_v57, %v3897_v37  ;;  %v749_v63 = vrot.slane %v2889_v59, %v3897_v37  ;;  %v753_v0 = vrot.slane %v625_v58, %v3897_v37 }
 0x138   : > { %v2902_v1 = vcombine.low %v1002_v53, %v1003_v35  ;;  %v956_v4 = vrot.slane %v951_v60, %v3897_v37  ;;  %v963_v6 = vrot.slane %v958_v61, %v3897_v37  ;;  %v1804_v42 = vsub.s32 1, %v3869_v5 }
 0x139   : > { %v1004_v10 = vsub.bf16 %v452_v2, %v942_v49  ;;  %v1005_v11 = vsub.bf16 %v453_v3, %v949_v62  ;;  %v965_v12 = vpack.i.b16 %v749_v63, %v749_v63  ;;  %v972_v17 = vpack.i.b16 %v753_v0, %v753_v0  ;;  %3033 = vmatpush3.bf16.msra.mxu1 %v3194_v25 }
 0x13a   : > { %v1006_v13 = vsub.bf16 %v454_v7, %v956_v4  ;;  %v1007_v14 = vsub.bf16 %v455_v9, %v963_v6  ;;  %v4055_v59 = vrot.slane %v1012_v48, %v3897_v37  ;;  %v4059_v58 = vrot.slane %v1012_v48, %v1804_v42 }
 0x13b   : > { %3009 = vmatmul.mubr.msk.bf16.gmra.mrb[16].mxu0 %vm1093_vm2, %v2899_v40  ;;  %v2903_v15 = vcombine.low %v1004_v10, %v1005_v11  ;;  %v970_v16 = vrot.slane %v965_v12, %v3897_v37  ;;  %v977_v44 = vrot.slane %v972_v17, %v3897_v37 }
 0x13c   : > { %3012 = vmatprep.mubr.msk.bf16.mxu0 %vm1093_vm2, %v2900_v46  ;;  %v2904_v18 = vcombine.low %v1006_v13, %v1007_v14 }
 0x13d   : > { %v1008_v21 = vsub.bf16 %v456_v19, %v970_v16  ;;  %v1009_v22 = vsub.bf16 %v457_v20, %v977_v44 }
 0x13f   : > { %v2905_v23 = vcombine.low %v1008_v21, %v1009_v22 }
 0x143   : > { %3013 = vmatmul.mubr.msk.bf16.gmra.mrb[20].mxu0 %vm1093_vm2, %v2901_v54 }
 0x144   : > { %3016 = vmatprep.mubr.msk.bf16.mxu0 %vm1093_vm2, %v2902_v1 }
 0x14b   : > { %3017 = vmatmul.mubr.msk.bf16.gmra.mrb[24].mxu0 %vm1093_vm2, %v2903_v15 }
 0x14c   : > { %3020 = vmatprep.mubr.msk.bf16.mxu0 %vm1093_vm2, %v2904_v18 }
 0x153   : > { %3021 = vmatmul.mubr.msk.bf16.gmra.mrb[28].mxu0 %vm1093_vm2, %v2905_v23 }
 0x1d8   : > { %v3028_v26 = vpop.f32.mrb[0].mxu1 }
 0x1d9   : > { %v1359_v27 = vpop.f32.mrb[1].mxu1  ;;  %v1476_v38 = vcombine.high %v3028_v26, %v3028_v26  ;;  %v1483_v39 = vrot.slane %v3028_v26, %v3872_v8 }
 0x1da   : > { %v3029_v28 = vpop.f32.mrb[2].mxu1  ;;  %v1385_v29 = vrot.slane %v1359_v27, %v3872_v8  ;;  %v1378_v34 = vcombine.high %v1359_v27, %v1359_v27 }
 0x1db   : > { %v1362_v31 = vpop.f32.mrb[3].mxu1  ;;  %v1525_v41 = vcombine.high %v3029_v28, %v3029_v28  ;;  %v4043_v45 = vrot.slane %v1476_v38, %v3872_v8  ;;  %v1532_v46 = vrot.slane %v3029_v28, %v3872_v8  ;;  %v1491_v50 = vcombine.high %v1483_v39, %v1483_v39 }
 0x1dc   : > { %v1393_v33 = vcombine.high %v1385_v29, %v1385_v29  ;;  %v1401_v36 = vrot.slane %v1385_v29, %v3872_v8  ;;  %v1392_v43 = vrot.slane %v1378_v34, %v3872_v8  ;;  %v1427_v47 = vcombine.high %v1362_v31, %v1362_v31 }
 0x1dd   : > { %v4047_v51 = vrot.slane %v1525_v41, %v3872_v8  ;;  %v1434_v55 = vrot.slane %v1362_v31, %v3872_v8  ;;  %v1492_v53 = vcombine.high %v4043_v45, %v4043_v45  ;;  %v4064_v35 = vrot.slane %v1483_v39, %v3872_v8 }
 0x1de   : > { %v1415_v40 = vrot.slane %v1393_v33, %v3872_v8  ;;  %v1423_v30 = vcombine.high %v1401_v36, %v1401_v36  ;;  %v4050_v52 = vrot.slane %v1392_v43, %v3872_v8  ;;  %v1394_v56 = vcombine.high %v1392_v43, %v1392_v43 }
 0x1df   : > { %v1540_v60 = vcombine.high %v1532_v46, %v1532_v46  ;;  %v4067_v61 = vrot.slane %v1427_v47, %v3872_v8  ;;  %v4071_v54 = vrot.slane %v4043_v45, %v3872_v8  ;;  %v4074_v49 = vrot.slane %v1491_v50, %v3872_v8 }
 0x1e0   : > { %v1425_v32 = vcombine.high %v1415_v40, %v1415_v40  ;;  %v1585_v57 = vrot.slane %v1423_v30, %v3897_v37  ;;  %v1541_v62 = vcombine.high %v4047_v51, %v4047_v51  ;;  %v4080_v0 = vrot.slane %v1532_v46, %v3872_v8 }
 0x1e1   : > { %v1442_v1 = vcombine.high %v1434_v55, %v1434_v55  ;;  %v1577_v3 = vrot.slane %v1401_v36, %v3897_v37  ;;  %v1424_v4 = vcombine.high %v4050_v52, %v4050_v52  ;;  %v4087_v6 = vrot.slane %v4047_v51, %v3872_v8 }
 0x1e2   : > { %v1589_v63 = vrot.slane %v1425_v32, %v3897_v37  ;;  %v4090_v7 = vrot.slane %v1434_v55, %v3872_v8  ;;  %v1422_v11 = vrot.slane %v1394_v56, %v3872_v8  ;;  %v4094_v12 = vrot.slane %v1540_v60, %v3872_v8 }
 0x1e3   : > { %v4098_v17 = vrot.slane %v4067_v61, %v3872_v8  ;;  %v1581_v15 = vrot.slane %v1415_v40, %v3897_v37  ;;  %v1443_v16 = vcombine.high %v4067_v61, %v4067_v61  ;;  %v1593_v20 = vrot.slane %v4050_v52, %v3897_v37 }
 0x1e4   : > { %v4107_v21 = vrot.slane %v1442_v1, %v3872_v8  ;;  %v1601_v24 = vrot.slane %v1424_v4, %v3897_v37  ;;  %v1426_v27 = vcombine.high %v1422_v11, %v1422_v11  ;;  %v1472_v28 = vcombine.high %v4090_v7, %v4090_v7 }
 0x1e5   : > { %v1609_v33 = vrot.slane %v4090_v7, %v3897_v37  ;;  %v1473_v34 = vcombine.high %v4098_v17, %v4098_v17  ;;  %v1625_v39 = vrot.slane %v4098_v17, %v3897_v37  ;;  %v1597_v30 = vrot.slane %v1422_v11, %v3897_v37 }
 0x1e6   : > { %v1605_v50 = vrot.slane %v1426_v27, %v3897_v37 }
 0x1ee   : > { %v2994_v2 = vpop.f32.mrb[0].mxu0 }
 0x1ef   : > { %v1736_v9 = vadd.f32 %v2994_v2, %v1585_v57  ;;  %v1183_v10 = vpop.f32.mrb[1].mxu0 }
 0x1f0   : > { %v1734_v13 = vadd.f32 %v1577_v3, %v1183_v10  ;;  %v2995_v14 = vpop.f32.mrb[2].mxu0 }
 0x1f1   : > { %v1772_v44 = vmul.f32 %v4055_v59, %v1736_v9  ;;  %v1737_v18 = vadd.f32 %v2995_v14, %v1589_v63  ;;  %v1186_v19 = vpop.f32.mrb[3].mxu0 }
 0x1f2   : > { %v1770_v22 = vmul.f32 %v4055_v59, %v1734_v13  ;;  %v1735_v23 = vadd.f32 %v1581_v15, %v1186_v19  ;;  %v1474_v13 = vcombine.high %v4107_v21, %v4107_v21 }
 0x1f3   : > { %v1808_v25 = vadd.f32 %v4059_v58, %v1772_v44  ;;  %v1773_v26 = vmul.f32 %v4055_v59, %v1737_v18  ;;  %v4137_v44 = vrot.slane %v1443_v16, %v3872_v8  ;;  %v1521_v18 = vcombine.high %v4064_v35, %v4064_v35 }
 0x1f4   : > { %v1806_v29 = vadd.f32 %v4059_v58, %v1770_v22  ;;  %v1771_v31 = vmul.f32 %v4055_v59, %v1735_v23  ;;  %v1617_v22 = vrot.slane %v1472_v28, %v3897_v37  ;;  %v1613_v16 = vrot.slane %v4107_v21, %v3897_v37 }
 0x1f5   : > { %vm1840_vm4 = vcmp.gt.f32.partialorder %v1808_v25, 0.0  ;;  %v1872_v36 = vmul.f32 0.2, %v1808_v25  ;;  %v1809_v38 = vadd.f32 %v4059_v58, %v1773_v26 }
 0x1f6   : > { %vm1838_vm5 = vcmp.gt.f32.partialorder %v1806_v29, 0.0  ;;  %v1870_v40 = vmul.f32 0.2, %v1806_v29  ;;  %v1807_v41 = vadd.f32 %v4059_v58, %v1771_v31  ;;  %v2998_v43 = vpop.f32.mrb[4].mxu0  ;;  %v1621_v31 = vrot.slane %v1474_v13, %v3897_v37 }
 0x1f7   : > { %vm1841_vm6 = vcmp.gt.f32.partialorder %v1809_v38, 0.0  ;;  %v1873_v46 = vmul.f32 0.2, %v1809_v38  ;;  %v1740_v47 = vadd.f32 %v2998_v43, %v1601_v24  ;;  %v1199_v48 = vpop.f32.mrb[5].mxu0  ;;  %v1904_v32 = vsel %vm1840_vm4, %v1808_v25, %v1872_v36 }
 0x1f8   : > { %vm1839_vm7 = vcmp.gt.f32.partialorder %v1807_v41, 0.0  ;;  %v1871_v52 = vmul.f32 0.2, %v1807_v41  ;;  %v1738_v55 = vadd.f32 %v1593_v20, %v1199_v48  ;;  %v2999_v56 = vpop.f32.mrb[6].mxu0  ;;  %v1902_v1 = vsel %vm1838_vm5, %v1806_v29, %v1870_v40 }
 0x1f9   : > { %v1905_v57 = vsel %vm1841_vm6, %v1809_v38, %v1873_v46  ;;  %v1776_v60 = vmul.f32 %v4055_v59, %v1740_v47  ;;  %v1741_v61 = vadd.f32 %v2999_v56, %v1605_v50  ;;  %v1202_v63 = vpop.f32.mrb[7].mxu0  ;;  %v1475_v56 = vcombine.high %v4137_v44, %v4137_v44 }
 0x1fa   : > { %v1940_v2 = vpack.c.bf16 %v1905_v57, %v1904_v32  ;;  %v1774_v3 = vmul.f32 %v4055_v59, %v1738_v55  ;;  %v1739_v4 = vadd.f32 %v1597_v30, %v1202_v63  ;;  %v1903_v7 = vsel %vm1839_vm7, %v1807_v41, %v1871_v52 }
 0x1fb   : > { %v1812_v9 = vadd.f32 %v4059_v58, %v1776_v60  ;;  %v1777_v10 = vmul.f32 %v4055_v59, %v1741_v61  ;;  %v1939_v11 = vpack.c.bf16 %v1903_v7, %v1902_v1  ;;  %v1633_v61 = vrot.slane %v1473_v34, %v3897_v37 }
 0x1fc   : > { %v1810_v14 = vadd.f32 %v4059_v58, %v1774_v3  ;;  %v1775_v15 = vmul.f32 %v4055_v59, %v1739_v4  ;;  %v1629_v63 = vrot.slane %v4137_v44, %v3897_v37  ;;  %v1649_v3 = vrot.slane %v1521_v18, %v3897_v37 }
 0x1fd   : > { %vm1844_vm8 = vcmp.gt.f32.partialorder %v1812_v9, 0.0  ;;  %v1876_v19 = vmul.f32 0.2, %v1812_v9  ;;  %v1813_v20 = vadd.f32 %v4059_v58, %v1777_v10  ;;  %3034 = vmatprep.mubr.msk.bf16.mxu1 %vm1967_vm3, %v1939_v11  ;;  %v1641_v34 = vrot.slane %v4064_v35, %v3897_v37 }
 0x1fe   : > { %vm1842_vm9 = vcmp.gt.f32.partialorder %v1810_v14, 0.0  ;;  %v1874_v23 = vmul.f32 0.2, %v1810_v14  ;;  %v1811_v24 = vadd.f32 %v4059_v58, %v1775_v15  ;;  %v3002_v25 = vpop.f32.mrb[8].mxu0  ;;  %3035 = vmatmul.mubr.msk.bf16.vlgmr.msra.gmra.mrb[4].mxu1 %vm1967_vm3, %v1940_v2 }
 0x1ff   : > { %vm1845_vm10 = vcmp.gt.f32.partialorder %v1813_v20, 0.0  ;;  %v1877_v26 = vmul.f32 0.2, %v1813_v20  ;;  %v1744_v27 = vadd.f32 %v3002_v25, %v1617_v22  ;;  %v1215_v29 = vpop.f32.mrb[9].mxu0  ;;  %v1908_v40 = vsel %vm1844_vm8, %v1812_v9, %v1876_v19 }
 0x200   : > { %vm1843_vm11 = vcmp.gt.f32.partialorder %v1811_v24, 0.0  ;;  %v1875_v36 = vmul.f32 0.2, %v1811_v24  ;;  %v1742_v38 = vadd.f32 %v1609_v33, %v1215_v29  ;;  %v3003_v28 = vpop.f32.mrb[10].mxu0  ;;  %v1906_v46 = vsel %vm1842_vm9, %v1810_v14, %v1874_v23 }
 0x201   : > { %v1780_v41 = vmul.f32 %v4055_v59, %v1744_v27  ;;  %v1745_v43 = vadd.f32 %v3003_v28, %v1621_v31  ;;  %v1218_v30 = vpop.f32.mrb[11].mxu0  ;;  %v1909_v47 = vsel %vm1845_vm10, %v1813_v20, %v1877_v26  ;;  %v1637_v14 = vrot.slane %v1475_v56, %v3897_v37 }
 0x202   : > { %v1778_v21 = vmul.f32 %v4055_v59, %v1742_v38  ;;  %v1743_v48 = vadd.f32 %v1613_v16, %v1218_v30  ;;  %v1907_v50 = vsel %vm1843_vm11, %v1811_v24, %v1875_v36  ;;  %v1942_v32 = vpack.c.bf16 %v1909_v47, %v1908_v40 }
 0x203   : > { %v1816_v52 = vadd.f32 %v4059_v58, %v1780_v41  ;;  %v1781_v55 = vmul.f32 %v4055_v59, %v1745_v43  ;;  %v1941_v33 = vpack.c.bf16 %v1907_v50, %v1906_v46  ;;  %v1523_v31 = vcombine.high %v4074_v49, %v4074_v49 }
 0x204   : > { %v1814_v57 = vadd.f32 %v4059_v58, %v1778_v21  ;;  %v1779_v60 = vmul.f32 %v4055_v59, %v1743_v48  ;;  %v1645_v28 = vrot.slane %v4074_v49, %v3897_v37  ;;  %v1522_v40 = vcombine.high %v4071_v54, %v4071_v54 }
 0x205   : > { %vm1848_vm12 = vcmp.gt.f32.partialorder %v1816_v52, 0.0  ;;  %v1880_v1 = vmul.f32 0.2, %v1816_v52  ;;  %v1817_v2 = vadd.f32 %v4059_v58, %v1781_v55  ;;  %3038 = vmatprep.mubr.msk.bf16.mxu1 %vm1967_vm3, %v1941_v33  ;;  %v1657_v30 = vrot.slane %v4071_v54, %v3897_v37 }
 0x206   : > { %vm1846_vm13 = vcmp.gt.f32.partialorder %v1814_v57, 0.0  ;;  %v1878_v4 = vmul.f32 0.2, %v1814_v57  ;;  %v1815_v7 = vadd.f32 %v4059_v58, %v1779_v60  ;;  %v3006_v9 = vpop.f32.mrb[12].mxu0  ;;  %3039 = vmatmul.mubr.msk.bf16.gmra.mrb[8].mxu1 %vm1967_vm3, %v1942_v32  ;;  %v1520_v49 = vrot.slane %v1492_v53, %v3872_v8 }
 0x207   : > { %vm1849_vm14 = vcmp.gt.f32.partialorder %v1817_v2, 0.0  ;;  %v1881_v10 = vmul.f32 0.2, %v1817_v2  ;;  %v1748_v11 = vadd.f32 %v3006_v9, %v1633_v61  ;;  %v1231_v13 = vpop.f32.mrb[13].mxu0  ;;  %v1912_v19 = vsel %vm1848_vm12, %v1816_v52, %v1880_v1 }
 0x208   : > { %vm1847_vm15 = vcmp.gt.f32.partialorder %v1815_v7, 0.0  ;;  %v1879_v15 = vmul.f32 0.2, %v1815_v7  ;;  %v1746_v44 = vadd.f32 %v1625_v39, %v1231_v13  ;;  %v3007_v18 = vpop.f32.mrb[14].mxu0  ;;  %v1910_v35 = vsel %vm1846_vm13, %v1814_v57, %v1878_v4 }
 0x209   : > { %v1784_v20 = vmul.f32 %v4055_v59, %v1748_v11  ;;  %v1749_v22 = vadd.f32 %v3007_v18, %v1637_v14  ;;  %v1234_v23 = vpop.f32.mrb[15].mxu0  ;;  %v1913_v24 = vsel %vm1849_vm14, %v1817_v2, %v1881_v10  ;;  %v1653_v52 = vrot.slane %v1523_v31, %v3897_v37 }
 0x20a   : > { %v1782_v25 = vmul.f32 %v4055_v59, %v1746_v44  ;;  %v1747_v16 = vadd.f32 %v1629_v63, %v1234_v23  ;;  %v1911_v26 = vsel %vm1847_vm15, %v1815_v7, %v1879_v15  ;;  %v1944_v27 = vpack.c.bf16 %v1913_v24, %v1912_v19 }
 0x20b   : > { %v1820_v29 = vadd.f32 %v4059_v58, %v1784_v20  ;;  %v1785_v17 = vmul.f32 %v4055_v59, %v1749_v22  ;;  %v1943_v39 = vpack.c.bf16 %v1911_v26, %v1910_v35  ;;  %v1665_v13 = vrot.slane %v1522_v40, %v3897_v37 }
 0x20c   : > { %v1818_v36 = vadd.f32 %v4059_v58, %v1782_v25  ;;  %v1783_v38 = vmul.f32 %v4055_v59, %v1747_v16  ;;  %v1570_v14 = vcombine.high %v4080_v0, %v4080_v0  ;;  %v1572_v18 = vcombine.high %v4094_v12, %v4094_v12 }
 0x20d   : > { %vm1852_vm0 = vcmp.gt.f32.partialorder %v1820_v29, 0.0  ;;  %v1884_v41 = vmul.f32 0.2, %v1820_v29  ;;  %v1821_v43 = vadd.f32 %v4059_v58, %v1785_v17  ;;  %3042 = vmatprep.mubr.msk.bf16.mxu1 %vm1967_vm3, %v1943_v39  ;;  %v1661_v23 = vrot.slane %v1520_v49, %v3897_v37 }
 0x20e   : > { %vm1850_vm1 = vcmp.gt.f32.partialorder %v1818_v36, 0.0  ;;  %v1882_v46 = vmul.f32 0.2, %v1818_v36  ;;  %v1819_v47 = vadd.f32 %v4059_v58, %v1783_v38  ;;  %v3010_v21 = vpop.f32.mrb[16].mxu0  ;;  %3043 = vmatmul.mubr.msk.bf16.gmra.mrb[12].mxu1 %vm1967_vm3, %v1944_v27 }
 0x20f   : > { %vm1853_vm2 = vcmp.gt.f32.partialorder %v1821_v43, 0.0  ;;  %v1885_v48 = vmul.f32 0.2, %v1821_v43  ;;  %v1752_v50 = vadd.f32 %v3010_v21, %v1649_v3  ;;  %v1247_v32 = vpop.f32.mrb[17].mxu0  ;;  %v1916_v56 = vsel %vm1852_vm0, %v1820_v29, %v1884_v41 }
 0x210   : > { %vm1851_vm4 = vcmp.gt.f32.partialorder %v1819_v47, 0.0  ;;  %v1883_v54 = vmul.f32 0.2, %v1819_v47  ;;  %v1750_v55 = vadd.f32 %v1641_v34, %v1247_v32  ;;  %v3011_v33 = vpop.f32.mrb[18].mxu0  ;;  %v1914_v63 = vsel %vm1850_vm1, %v1818_v36, %v1882_v46 }
 0x211   : > { %v1788_v57 = vmul.f32 %v4055_v59, %v1752_v50  ;;  %v1753_v60 = vadd.f32 %v3011_v33, %v1653_v52  ;;  %v1250_v61 = vpop.f32.mrb[19].mxu0  ;;  %v1917_v45 = vsel %vm1853_vm2, %v1821_v43, %v1885_v48  ;;  %v1524_v34 = vcombine.high %v1520_v49, %v1520_v49 }
 0x212   : > { %v1786_v53 = vmul.f32 %v4055_v59, %v1750_v55  ;;  %v1751_v1 = vadd.f32 %v1645_v28, %v1250_v61  ;;  %v1915_v2 = vsel %vm1851_vm4, %v1819_v47, %v1883_v54  ;;  %v1946_v3 = vpack.c.bf16 %v1917_v45, %v1916_v56 }
 0x213   : > { %v1824_v4 = vadd.f32 %v4059_v58, %v1788_v57  ;;  %v1789_v7 = vmul.f32 %v4055_v59, %v1753_v60  ;;  %v1945_v9 = vpack.c.bf16 %v1915_v2, %v1914_v63  ;;  %v1669_v16 = vrot.slane %v1524_v34, %v3897_v37 }
 0x214   : > { %v1822_v10 = vadd.f32 %v4059_v58, %v1786_v53  ;;  %v1787_v11 = vmul.f32 %v4055_v59, %v1751_v1  ;;  %v1673_v49 = vrot.slane %v4080_v0, %v3897_v37  ;;  %v1681_v32 = vrot.slane %v1570_v14, %v3897_v37 }
 0x215   : > { %vm1856_vm5 = vcmp.gt.f32.partialorder %v1824_v4, 0.0  ;;  %v1888_v15 = vmul.f32 0.2, %v1824_v4  ;;  %v1825_v44 = vadd.f32 %v4059_v58, %v1789_v7  ;;  %3046 = vmatprep.mubr.msk.bf16.mxu1 %vm1967_vm3, %v1945_v9  ;;  %v1677_v52 = vrot.slane %v4094_v12, %v3897_v37 }
 0x216   : > { %vm1854_vm6 = vcmp.gt.f32.partialorder %v1822_v10, 0.0  ;;  %v1886_v19 = vmul.f32 0.2, %v1822_v10  ;;  %v1823_v20 = vadd.f32 %v4059_v58, %v1787_v11  ;;  %v3014_v22 = vpop.f32.mrb[20].mxu0  ;;  %3047 = vmatmul.mubr.msk.bf16.gmra.mrb[16].mxu1 %vm1967_vm3, %v1946_v3  ;;  %v1571_v33 = vcombine.high %v4087_v6, %v4087_v6 }
 0x217   : > { %vm1857_vm7 = vcmp.gt.f32.partialorder %v1825_v44, 0.0  ;;  %v1889_v35 = vmul.f32 0.2, %v1825_v44  ;;  %v1756_v24 = vadd.f32 %v3014_v22, %v1665_v13  ;;  %v1263_v25 = vpop.f32.mrb[21].mxu0  ;;  %v1920_v17 = vsel %vm1856_vm5, %v1824_v4, %v1888_v15 }
 0x218   : > { %vm1855_vm8 = vcmp.gt.f32.partialorder %v1823_v20, 0.0  ;;  %v1887_v26 = vmul.f32 0.2, %v1823_v20  ;;  %v1754_v27 = vadd.f32 %v1657_v30, %v1263_v25  ;;  %v3015_v29 = vpop.f32.mrb[22].mxu0  ;;  %v1918_v38 = vsel %vm1854_vm6, %v1822_v10, %v1886_v19 }
 0x219   : > { %v1792_v39 = vmul.f32 %v4055_v59, %v1756_v24  ;;  %v1757_v31 = vadd.f32 %v3015_v29, %v1669_v16  ;;  %v1266_v36 = vpop.f32.mrb[23].mxu0  ;;  %v1921_v28 = vsel %vm1857_vm7, %v1825_v44, %v1889_v35  ;;  %v1685_v60 = vrot.slane %v1572_v18, %v3897_v37 }
 0x21a   : > { %v1790_v40 = vmul.f32 %v4055_v59, %v1754_v27  ;;  %v1755_v41 = vadd.f32 %v1661_v23, %v1266_v36  ;;  %v1919_v43 = vsel %vm1855_vm8, %v1823_v20, %v1887_v26  ;;  %v1948_v46 = vpack.c.bf16 %v1921_v28, %v1920_v17 }
 0x21b   : > { %v1828_v47 = vadd.f32 %v4059_v58, %v1792_v39  ;;  %v1793_v21 = vmul.f32 %v4055_v59, %v1757_v31  ;;  %v1947_v30 = vpack.c.bf16 %v1919_v43, %v1918_v38  ;;  %v1569_v45 = vrot.slane %v1541_v62, %v3872_v8 }
 0x21c   : > { %v1826_v48 = vadd.f32 %v4059_v58, %v1790_v40  ;;  %v1791_v50 = vmul.f32 %v4055_v59, %v1755_v41  ;;  %v1689_v20 = vrot.slane %v4087_v6, %v3897_v37  ;;  %v1697_v35 = vrot.slane %v1571_v33, %v3897_v37 }
 0x21d   : > { %vm1860_vm9 = vcmp.gt.f32.partialorder %v1828_v47, 0.0  ;;  %v1892_v54 = vmul.f32 0.2, %v1828_v47  ;;  %v1829_v55 = vadd.f32 %v4059_v58, %v1793_v21  ;;  %3050 = vmatprep.mubr.msk.bf16.mxu1 %vm1967_vm3, %v1947_v30  ;;  %v1573_v44 = vcombine.high %v1569_v45, %v1569_v45 }
 0x21e   : > { %vm1858_vm10 = vcmp.gt.f32.partialorder %v1826_v48, 0.0  ;;  %v1890_v0 = vmul.f32 0.2, %v1826_v48  ;;  %v1827_v56 = vadd.f32 %v4059_v58, %v1791_v50  ;;  %v3018_v57 = vpop.f32.mrb[24].mxu0  ;;  %3051 = vmatmul.mubr.msk.bf16.gmra.mrb[20].mxu1 %vm1967_vm3, %v1948_v46  ;;  %v1693_v26 = vrot.slane %v1569_v45, %v3897_v37 }
 0x21f   : > { %vm1861_vm11 = vcmp.gt.f32.partialorder %v1829_v55, 0.0  ;;  %v1893_v12 = vmul.f32 0.2, %v1829_v55  ;;  %v1760_v61 = vadd.f32 %v3018_v57, %v1681_v32  ;;  %v1279_v63 = vpop.f32.mrb[25].mxu0  ;;  %v1924_v3 = vsel %vm1860_vm9, %v1828_v47, %v1892_v54 }
 0x220   : > { %vm1859_vm12 = vcmp.gt.f32.partialorder %v1827_v56, 0.0  ;;  %v1891_v53 = vmul.f32 0.2, %v1827_v56  ;;  %v1758_v1 = vadd.f32 %v1673_v49, %v1279_v63  ;;  %v3019_v2 = vpop.f32.mrb[26].mxu0  ;;  %v1922_v34 = vsel %vm1858_vm10, %v1826_v48, %v1890_v0 }
 0x221   : > { %v1796_v4 = vmul.f32 %v4055_v59, %v1760_v61  ;;  %v1761_v7 = vadd.f32 %v3019_v2, %v1685_v60  ;;  %v1282_v9 = vpop.f32.mrb[27].mxu0  ;;  %v1925_v10 = vsel %vm1861_vm11, %v1829_v55, %v1893_v12  ;;  %v1701_v17 = vrot.slane %v1573_v44, %v3897_v37 }
 0x222   : > { %v1794_v11 = vmul.f32 %v4055_v59, %v1758_v1  ;;  %v1759_v13 = vadd.f32 %v1677_v52, %v1282_v9  ;;  %v1923_v14 = vsel %vm1859_vm12, %v1827_v56, %v1891_v53  ;;  %v1950_v15 = vpack.c.bf16 %v1925_v10, %v1924_v3  ;;  %v1938_v1 = vld [vmem:[#allocation13] sm:$0x3] }
 0x223   : > { %v1832_v8 = vadd.f32 %v4059_v58, %v1796_v4  ;;  %v1797_v51 = vmul.f32 %v4055_v59, %v1761_v7  ;;  %v1949_v62 = vpack.c.bf16 %v1923_v14, %v1922_v34  ;;  %v4280_v2 = vrot.slane %v1938_v1, %v1804_v42 }
 0x224   : > { %v1830_v18 = vadd.f32 %v4059_v58, %v1794_v11  ;;  %v1795_v19 = vmul.f32 %v4055_v59, %v1759_v13 }
 0x225   : > { %vm1864_vm13 = vcmp.gt.f32.partialorder %v1832_v8, 0.0  ;;  %v1896_v22 = vmul.f32 0.2, %v1832_v8  ;;  %v1833_v23 = vadd.f32 %v4059_v58, %v1797_v51  ;;  %3054 = vmatprep.mubr.msk.bf16.mxu1 %vm1967_vm3, %v1949_v62 }
 0x226   : > { %vm1862_vm14 = vcmp.gt.f32.partialorder %v1830_v18, 0.0  ;;  %v1894_v24 = vmul.f32 0.2, %v1830_v18  ;;  %v1831_v25 = vadd.f32 %v4059_v58, %v1795_v19  ;;  %v3022_v16 = vpop.f32.mrb[28].mxu0  ;;  %3055 = vmatmul.mubr.msk.bf16.gmra.mrb[24].mxu1 %vm1967_vm3, %v1950_v15 }
 0x227   : > { %vm1865_vm15 = vcmp.gt.f32.partialorder %v1833_v23, 0.0  ;;  %v1897_v27 = vmul.f32 0.2, %v1833_v23  ;;  %v1764_v6 = vadd.f32 %v3022_v16, %v1697_v35  ;;  %v1295_v29 = vpop.f32.mrb[29].mxu0  ;;  %v1928_v38 = vsel %vm1864_vm13, %v1832_v8, %v1896_v22 }
 0x228   : > { %vm1863_vm0 = vcmp.gt.f32.partialorder %v1831_v25, 0.0  ;;  %v1895_v39 = vmul.f32 0.2, %v1831_v25  ;;  %v1762_v31 = vadd.f32 %v1689_v20, %v1295_v29  ;;  %v3023_v36 = vpop.f32.mrb[30].mxu0  ;;  %v1926_v43 = vsel %vm1862_vm14, %v1830_v18, %v1894_v24 }
 0x229   : > { %v1800_v28 = vmul.f32 %v4055_v59, %v1764_v6  ;;  %v1765_v40 = vadd.f32 %v3023_v36, %v1701_v17  ;;  %v1298_v41 = vpop.f32.mrb[31].mxu0  ;;  %v1929_v46 = vsel %vm1865_vm15, %v1833_v23, %v1897_v27 }
 0x22a   : > { %v1798_v47 = vmul.f32 %v4055_v59, %v1762_v31  ;;  %v1763_v21 = vadd.f32 %v1693_v26, %v1298_v41  ;;  %v1927_v30 = vsel %vm1863_vm0, %v1831_v25, %v1895_v39  ;;  %v1952_v49 = vpack.c.bf16 %v1929_v46, %v1928_v38 }
 0x22b   : > { %v1836_v48 = vadd.f32 %v4059_v58, %v1800_v28  ;;  %v1801_v50 = vmul.f32 %v4055_v59, %v1765_v40  ;;  %v1951_v32 = vpack.c.bf16 %v1927_v30, %v1926_v43 }
 0x22c   : > { %v1834_v52 = vadd.f32 %v4059_v58, %v1798_v47  ;;  %v1799_v54 = vmul.f32 %v4055_v59, %v1763_v21 }
 0x22d   : > { %v1900_v55 = vmul.f32 0.2, %v1836_v48  ;;  %v1837_v33 = vadd.f32 %v4059_v58, %v1801_v50  ;;  %3058 = vmatprep.mubr.msk.bf16.mxu1 %vm1967_vm3, %v1951_v32  ;;  %vm1868_vm1 = vcmp.gt.f32.partialorder %v1836_v48, 0.0 }
 0x22e   : > { %v1898_v0 = vmul.f32 0.2, %v1834_v52  ;;  %v1835_v56 = vadd.f32 %v4059_v58, %v1799_v54  ;;  %3059 = vmatmul.mubr.msk.bf16.gmra.mrb[28].mxu1 %vm1967_vm3, %v1952_v49  ;;  %vm1866_vm2 = vcmp.gt.f32.partialorder %v1834_v52, 0.0  ;;  %v4276_v58 = vrot.slane %v1938_v1, %v3897_v37 }
 0x22f   : > { %vm1869_vm4 = vcmp.gt.f32.partialorder %v1837_v33, 0.0  ;;  %v1901_v57 = vmul.f32 0.2, %v1837_v33  ;;  %v1932_v12 = vsel %vm1868_vm1, %v1836_v48, %v1900_v55 }
 0x230   : > { %vm1867_vm5 = vcmp.gt.f32.partialorder %v1835_v56, 0.0  ;;  %v1899_v60 = vmul.f32 0.2, %v1835_v56  ;;  %v1930_v63 = vsel %vm1866_vm2, %v1834_v52, %v1898_v0 }
 0x231   : > { %v1933_v61 = vsel %vm1869_vm4, %v1837_v33, %v1901_v57 }
 0x232   : > { %v1931_v59 = vsel %vm1867_vm5, %v1835_v56, %v1899_v60  ;;  %v1954_v45 = vpack.c.bf16 %v1933_v61, %v1932_v12 }
 0x233   : > { %v1953_v53 = vpack.c.bf16 %v1931_v59, %v1930_v63 }
 0x235   : > { %3062 = vmatprep.mubr.msk.bf16.mxu1 %vm1967_vm3, %v1953_v53 }
 0x236   : > { %3063 = vmatmul.mubr.msk.bf16.gmra.mrb[32].mxu1 %vm1967_vm3, %v1954_v45 }
 0x2d1   : > { %v3036_v3 = vpop.f32.mrb[4].mxu1 }
 0x2d2   : > { %v2183_v4 = vmul.f32 %v3036_v3, %v4276_v58  ;;  %v2050_v7 = vpop.f32.mrb[5].mxu1 }
 0x2d3   : > { %v2181_v9 = vmul.f32 %v4276_v58, %v2050_v7  ;;  %v3037_v34 = vpop.f32.mrb[6].mxu1 }
 0x2d4   : > { %v2219_v10 = vadd.f32 %v4280_v2, %v2183_v4  ;;  %v2184_v11 = vmul.f32 %v3037_v34, %v4276_v58  ;;  %v2053_v13 = vpop.f32.mrb[7].mxu1 }
 0x2d5   : > { %v2217_v14 = vadd.f32 %v4280_v2, %v2181_v9  ;;  %v2182_v37 = vmul.f32 %v4276_v58, %v2053_v13 }
 0x2d6   : > { %vm2251_vm6 = vcmp.gt.f32.partialorder %v2219_v10, 0.0  ;;  %v2283_v5 = vmul.f32 0.2, %v2219_v10  ;;  %v2220_v42 = vadd.f32 %v4280_v2, %v2184_v11 }
 0x2d7   : > { %vm2249_vm7 = vcmp.gt.f32.partialorder %v2217_v14, 0.0  ;;  %v2281_v15 = vmul.f32 0.2, %v2217_v14  ;;  %v2218_v8 = vadd.f32 %v4280_v2, %v2182_v37 }
 0x2d8   : > { %v2315_v51 = vsel %vm2251_vm6, %v2219_v10, %v2283_v5  ;;  %vm2252_vm8 = vcmp.gt.f32.partialorder %v2220_v42, 0.0  ;;  %v2284_v62 = vmul.f32 0.2, %v2220_v42  ;;  %vm2601_vm6 = vcmask 1041409  }
 0x2d9   : > { %v2359_v44 = vsel %vm1967_vm3, %v2315_v51, -inf  ;;  %v2313_v18 = vsel %vm2249_vm7, %v2217_v14, %v2281_v15  ;;  %vm2250_vm9 = vcmp.gt.f32.partialorder %v2218_v8, 0.0  ;;  %v2282_v19 = vmul.f32 0.2, %v2218_v8  ;;  %v3040_v20 = vpop.f32.mrb[8].mxu1 }
 0x2da   : > { %v2360_v22 = vrot.slane %v2359_v44, 4  ;;  %v2345_v23 = vsel %vm1967_vm3, %v2313_v18, -inf  ;;  %v2316_v35 = vsel %vm2252_vm8, %v2220_v42, %v2284_v62  ;;  %v2187_v24 = vmul.f32 %v3040_v20, %v4276_v58  ;;  %v2066_v25 = vpop.f32.mrb[9].mxu1 }
 0x2db   : > { %v2346_v16 = vrot.slane %v2345_v23, 4  ;;  %v2366_v26 = vsel %vm1967_vm3, %v2316_v35, -inf  ;;  %v2314_v27 = vsel %vm2250_vm9, %v2218_v8, %v2282_v19  ;;  %v2185_v6 = vmul.f32 %v4276_v58, %v2066_v25  ;;  %v3041_v29 = vpop.f32.mrb[10].mxu1 }
 0x2dc   : > { %v2361_v17 = vmax.f32 %v2359_v44, %v2360_v22  ;;  %v2367_v39 = vrot.slane %v2366_v26, 4  ;;  %v2352_v31 = vsel %vm1967_vm3, %v2314_v27, -inf  ;;  %v2223_v36 = vadd.f32 %v4280_v2, %v2187_v24  ;;  %v2069_v38 = vpop.f32.mrb[11].mxu1 }
 0x2dd   : > { %v2347_v28 = vmax.f32 %v2345_v23, %v2346_v16  ;;  %v2353_v40 = vrot.slane %v2352_v31, 4  ;;  %v2221_v41 = vadd.f32 %v4280_v2, %v2185_v6  ;;  %v2188_v43 = vmul.f32 %v3041_v29, %v4276_v58 }
 0x2de   : > { %v2362_v46 = vrot.slane %v2361_v17, 2  ;;  %v2368_v47 = vmax.f32 %v2366_v26, %v2367_v39  ;;  %vm2255_vm10 = vcmp.gt.f32.partialorder %v2223_v36, 0.0  ;;  %v2287_v21 = vmul.f32 0.2, %v2223_v36 }
 0x2df   : > { %v2348_v30 = vrot.slane %v2347_v28, 2  ;;  %v2354_v49 = vmax.f32 %v2352_v31, %v2353_v40  ;;  %vm2253_vm11 = vcmp.gt.f32.partialorder %v2221_v41, 0.0  ;;  %v2285_v48 = vmul.f32 0.2, %v2221_v41 }
 0x2e0   : > { %v2363_v50 = vmax.f32 %v2361_v17, %v2362_v46  ;;  %v2369_v32 = vrot.slane %v2368_v47, 2  ;;  %v2319_v52 = vsel %vm2255_vm10, %v2223_v36, %v2287_v21  ;;  %v2224_v54 = vadd.f32 %v4280_v2, %v2188_v43 }
 0x2e1   : > { %v2349_v55 = vmax.f32 %v2347_v28, %v2348_v30  ;;  %v2355_v33 = vrot.slane %v2354_v49, 2  ;;  %v2387_v0 = vsel %vm1967_vm3, %v2319_v52, -inf  ;;  %v2317_v56 = vsel %vm2253_vm11, %v2221_v41, %v2285_v48  ;;  %v3044_v57 = vpop.f32.mrb[12].mxu1 }
 0x2e2   : > { %v2364_v60 = vrot.slane %v2363_v50, 1  ;;  %v2370_v12 = vmax.f32 %v2368_v47, %v2369_v32  ;;  %v2388_v61 = vrot.slane %v2387_v0, 4  ;;  %v2373_v63 = vsel %vm1967_vm3, %v2317_v56, -inf  ;;  %v2082_v59 = vpop.f32.mrb[13].mxu1 }
 0x2e3   : > { %v2350_v45 = vrot.slane %v2349_v55, 1  ;;  %v2356_v53 = vmax.f32 %v2354_v49, %v2355_v33  ;;  %v2374_v1 = vrot.slane %v2373_v63, 4  ;;  %vm2256_vm12 = vcmp.gt.f32.partialorder %v2224_v54, 0.0  ;;  %v3045_v3 = vpop.f32.mrb[14].mxu1 }
 0x2e4   : > { %v2371_v4 = vrot.slane %v2370_v12, 1  ;;  %v2288_v7 = vmul.f32 0.2, %v2224_v54  ;;  %v2085_v9 = vpop.f32.mrb[15].mxu1  ;;  %v4302_v34 = vmax.f32 %v2363_v50, %v2364_v60  ;;  %v2186_v13 = vmul.f32 %v4276_v58, %v2069_v38 }
 0x2e5   : > { %v2357_v10 = vrot.slane %v2356_v53, 1  ;;  %v4304_v11 = vmax.f32 %v2373_v63, %v2374_v1  ;;  %v4307_v14 = vmax.f32 %v2387_v0, %v2388_v61  ;;  %v2191_v5 = vmul.f32 %v3044_v57, %v4276_v58 }
 0x2e6   : > { %v2320_v37 = vsel %vm2256_vm12, %v2224_v54, %v2288_v7  ;;  %v2189_v42 = vmul.f32 %v4276_v58, %v2082_v59  ;;  %v4311_v15 = vmax.f32 %v2349_v55, %v2350_v45  ;;  %v4313_v8 = vmax.f32 %v2370_v12, %v2371_v4 }
 0x2e7   : > { %v4315_v51 = vmax.f32 %v2356_v53, %v2357_v10  ;;  %v2222_v62 = vadd.f32 %v4280_v2, %v2186_v13  ;;  %v2376_v44 = vrot.slane %v4304_v11, 2  ;;  %v2227_v18 = vadd.f32 %v4280_v2, %v2191_v5 }
 0x2e8   : > { %v2225_v19 = vadd.f32 %v4280_v2, %v2189_v42  ;;  %v2192_v20 = vmul.f32 %v3045_v3, %v4276_v58  ;;  %v4323_v22 = vsel %vm1967_vm3, %v2320_v37, -inf  ;;  %v2190_v35 = vmul.f32 %v4276_v58, %v2085_v9 }
 0x2e9   : > { %vm2254_vm13 = vcmp.gt.f32.partialorder %v2222_v62, 0.0  ;;  %v2286_v23 = vmul.f32 0.2, %v2222_v62  ;;  %v3048_v24 = vpop.f32.mrb[16].mxu1  ;;  %vm2259_vm14 = vcmp.gt.f32.partialorder %v2227_v18, 0.0  ;;  %v2395_v49 = vrot.slane %v4323_v22, 4 }
 0x2ea   : > { %v2291_v25 = vmul.f32 0.2, %v2227_v18  ;;  %vm2257_vm15 = vcmp.gt.f32.partialorder %v2225_v19, 0.0  ;;  %v2289_v16 = vmul.f32 0.2, %v2225_v19  ;;  %v2228_v27 = vadd.f32 %v4280_v2, %v2192_v20  ;;  %v2098_v17 = vpop.f32.mrb[17].mxu1 }
 0x2eb   : > { %v2318_v26 = vsel %vm2254_vm13, %v2222_v62, %v2286_v23  ;;  %v2226_v6 = vadd.f32 %v4280_v2, %v2190_v35  ;;  %v2195_v29 = vmul.f32 %v3048_v24, %v4276_v58  ;;  %v2193_v38 = vmul.f32 %v4276_v58, %v2098_v17  ;;  %v3049_v28 = vpop.f32.mrb[18].mxu1 }
 0x2ec   : > { %v2380_v39 = vsel %vm1967_vm3, %v2318_v26, -inf  ;;  %v2323_v31 = vsel %vm2259_vm14, %v2227_v18, %v2291_v25  ;;  %v2321_v36 = vsel %vm2257_vm15, %v2225_v19, %v2289_v16  ;;  %vm2260_vm0 = vcmp.gt.f32.partialorder %v2228_v27, 0.0  ;;  %v2101_v46 = vpop.f32.mrb[19].mxu1 }
 0x2ed   : > { %v2381_v40 = vrot.slane %v2380_v39, 4  ;;  %v2415_v41 = vsel %vm1967_vm3, %v2323_v31, -inf  ;;  %v2401_v43 = vsel %vm1967_vm3, %v2321_v36, -inf  ;;  %v2292_v30 = vmul.f32 0.2, %v2228_v27 }
 0x2ee   : > { %v2416_v47 = vrot.slane %v2415_v41, 4  ;;  %v2402_v21 = vrot.slane %v2401_v43, 4  ;;  %vm2258_vm1 = vcmp.gt.f32.partialorder %v2226_v6, 0.0  ;;  %v2290_v48 = vmul.f32 0.2, %v2226_v6 }
 0x2ef   : > { %v2231_v50 = vadd.f32 %v4280_v2, %v2195_v29  ;;  %v2229_v32 = vadd.f32 %v4280_v2, %v2193_v38  ;;  %v2324_v55 = vsel %vm2260_vm0, %v2228_v27, %v2292_v30  ;;  %v2196_v33 = vmul.f32 %v3049_v28, %v4276_v58 }
 0x2f0   : > { %v2417_v52 = vmax.f32 %v2415_v41, %v2416_v47  ;;  %v2403_v54 = vmax.f32 %v2401_v43, %v2402_v21  ;;  %v4337_v0 = vmax.f32 %v2380_v39, %v2381_v40  ;;  %v2422_v56 = vsel %vm1967_vm3, %v2324_v55, -inf }
 0x2f1   : > { %v2322_v57 = vsel %vm2258_vm1, %v2226_v6, %v2290_v48  ;;  %vm2263_vm2 = vcmp.gt.f32.partialorder %v2231_v50, 0.0  ;;  %v3052_v60 = vpop.f32.mrb[20].mxu1  ;;  %v2423_v63 = vrot.slane %v2422_v56, 4  ;;  %v2295_v1 = vmul.f32 0.2, %v2231_v50 }
 0x2f2   : > { %v2418_v12 = vrot.slane %v2417_v52, 2  ;;  %v2404_v61 = vrot.slane %v2403_v54, 2  ;;  %v2408_v59 = vsel %vm1967_vm3, %v2322_v57, -inf  ;;  %v2114_v45 = vpop.f32.mrb[21].mxu1  ;;  %vm2261_vm4 = vcmp.gt.f32.partialorder %v2229_v32, 0.0 }
 0x2f3   : > { %v2409_v53 = vrot.slane %v2408_v59, 4  ;;  %v2293_v3 = vmul.f32 0.2, %v2229_v32  ;;  %v2424_v9 = vmax.f32 %v2422_v56, %v2423_v63  ;;  %v2232_v10 = vadd.f32 %v4280_v2, %v2196_v33  ;;  %v3053_v13 = vpop.f32.mrb[22].mxu1 }
 0x2f4   : > { %v2419_v4 = vmax.f32 %v2417_v52, %v2418_v12  ;;  %v2405_v7 = vmax.f32 %v2403_v54, %v2404_v61  ;;  %v2327_v5 = vsel %vm2263_vm2, %v2231_v50, %v2295_v1  ;;  %v2194_v62 = vmul.f32 %v4276_v58, %v2101_v46  ;;  %v4344_v18 = vpop.f32.mrb[23].mxu1 }
 0x2f5   : > { %v2410_v37 = vmax.f32 %v2408_v59, %v2409_v53  ;;  %v2325_v42 = vsel %vm2261_vm4, %v2229_v32, %v2293_v3  ;;  %v4349_v19 = vmax.f32 %v4304_v11, %v2376_v44  ;;  %v2383_v20 = vrot.slane %v4337_v0, 2 }
 0x2f6   : > { %v2425_v23 = vrot.slane %v2424_v9, 2  ;;  %v2443_v35 = vsel %vm1967_vm3, %v2327_v5, -inf  ;;  %v2420_v24 = vrot.slane %v2419_v4, 1  ;;  %v2429_v26 = vsel %vm1967_vm3, %v2325_v42, -inf }
 0x2f7   : > { %v2411_v25 = vrot.slane %v2410_v37, 2  ;;  %v2444_v16 = vrot.slane %v2443_v35, 4  ;;  %v2406_v27 = vrot.slane %v2405_v7, 1  ;;  %v2430_v29 = vrot.slane %v2429_v26, 4 }
 0x2f8   : > { %v2426_v6 = vmax.f32 %v2424_v9, %v2425_v23  ;;  %vm2264_vm5 = vcmp.gt.f32.partialorder %v2232_v10, 0.0  ;;  %v2296_v31 = vmul.f32 0.2, %v2232_v10  ;;  %v2230_v11 = vadd.f32 %v4280_v2, %v2194_v62 }
 0x2f9   : > { %v2412_v17 = vmax.f32 %v2410_v37, %v2411_v25  ;;  %v4354_v39 = vmax.f32 %v2443_v35, %v2444_v16  ;;  %v4357_v44 = vpop.f32.mrb[24].mxu1  ;;  %v2431_v38 = vmax.f32 %v2429_v26, %v2430_v29  ;;  %v2199_v28 = vmul.f32 %v3052_v60, %v4276_v58 }
 0x2fa   : > { %v2427_v36 = vrot.slane %v2426_v6, 1  ;;  %v2197_v40 = vmul.f32 %v4276_v58, %v2114_v45  ;;  %v4361_v41 = vpop.f32.mrb[25].mxu1  ;;  %v4363_v43 = vmax.f32 %v2419_v4, %v2420_v24  ;;  %v2328_v47 = vsel %vm2264_vm5, %v2232_v10, %v2296_v31 }
 0x2fb   : > { %v2413_v46 = vrot.slane %v2412_v17, 1  ;;  %vm2262_vm7 = vcmp.gt.f32.partialorder %v2230_v11, 0.0  ;;  %v4365_v21 = vpop.f32.mrb[26].mxu1  ;;  %v4367_v30 = vmax.f32 %v2405_v7, %v2406_v27  ;;  %v2446_v48 = vrot.slane %v4354_v39, 2 }
 0x2fc   : > { %v4371_v50 = vsel %vm1967_vm3, %v2328_v47, -inf  ;;  %v2294_v32 = vmul.f32 0.2, %v2230_v11  ;;  %vm2603_vm8 = vcmask 1042434   ;;  %v4373_v52 = vpop.f32.mrb[27].mxu1  ;;  %v4375_v54 = vmax.f32 %v2426_v6, %v2427_v36 }
 0x2fd   : > { %v2432_v55 = vrot.slane %v2431_v38, 2  ;;  %v2235_v33 = vadd.f32 %v4280_v2, %v2199_v28  ;;  %v2233_v56 = vadd.f32 %v4280_v2, %v2197_v40  ;;  %vm2605_vm9 = vcmask 1043459  }
 0x2fe   : > { %v4379_v57 = vmax.f32 %v2412_v17, %v2413_v46  ;;  %v2451_v60 = vrot.slane %v4371_v50, 4  ;;  %v2326_v12 = vsel %vm2262_vm7, %v2230_v11, %v2294_v32  ;;  %v2200_v61 = vmul.f32 %v3053_v13, %v4276_v58 }
 0x2ff   : > { %vm2607_vm10 = vcmask 1044484   ;;  %v2436_v63 = vsel %vm1967_vm3, %v2326_v12, -inf  ;;  %vm2267_vm11 = vcmp.gt.f32.partialorder %v2235_v33, 0.0  ;;  %v2299_v59 = vmul.f32 0.2, %v2235_v33 }
 0x300   : > { %vm2265_vm12 = vcmp.gt.f32.partialorder %v2233_v56, 0.0  ;;  %vm2609_vm13 = vcmask 1045509   ;;  %v2437_v45 = vrot.slane %v2436_v63, 4  ;;  %v2297_v53 = vmul.f32 0.2, %v2233_v56 }
 0x301   : > { %v2236_v1 = vadd.f32 %v4280_v2, %v2200_v61  ;;  %v2378_v3 = vrot.slane %v4349_v19, 1  ;;  %vm2611_vm14 = vcmask 1046534   ;;  %v4386_v4 = vmax.f32 %v2431_v38, %v2432_v55  ;;  %v4390_v13 = vpop.f32.mrb[28].mxu1 }
 0x302   : > { %v2331_v7 = vsel %vm2267_vm11, %v2235_v33, %v2299_v59  ;;  %v2384_v9 = vmax.f32 %v4337_v0, %v2383_v20  ;;  %v2390_v10 = vrot.slane %v4307_v14, 2  ;;  %v2438_v37 = vmax.f32 %v2436_v63, %v2437_v45  ;;  %v4393_v62 = vpop.f32.mrb[29].mxu1 }
 0x303   : > { %v2471_v5 = vsel %vm1967_vm3, %v2331_v7, -inf  ;;  %v2329_v42 = vsel %vm2265_vm12, %v2233_v56, %v2297_v53  ;;  %vm2268_vm15 = vcmp.gt.f32.partialorder %v2236_v1, 0.0  ;;  %v2300_v24 = vmul.f32 0.2, %v2236_v1  ;;  %v4396_v16 = vpop.f32.mrb[30].mxu1 }
 0x304   : > { %v2472_v23 = vrot.slane %v2471_v5, 4  ;;  %v2457_v35 = vsel %vm1967_vm3, %v2329_v42, -inf  ;;  %v2385_v25 = vrot.slane %v2384_v9, 1  ;;  %v2379_v0 = vmax.f32 %v4349_v19, %v2378_v3  ;;  %v4403_v6 = vpop.f32.mrb[31].mxu1 }
 0x305   : > { %v2458_v26 = vrot.slane %v2457_v35, 4  ;;  %v2391_v20 = vmax.f32 %v4307_v14, %v2390_v10  ;;  %v2396_v27 = vmax.f32 %v4323_v22, %v2395_v49  ;;  %vm2613_vm0 = vcmask 1047559  }
 0x306   : > { %v2439_v29 = vrot.slane %v2438_v37, 2  ;;  %v2473_v17 = vmax.f32 %v2471_v5, %v2472_v23  ;;  %v2332_v31 = vsel %vm2268_vm15, %v2236_v1, %v2300_v24  ;;  %v2602_v11 = vsel %vm2601_vm6, %v4315_v51, %v4311_v15 }
 0x307   : > { %v2459_v36 = vmax.f32 %v2457_v35, %v2458_v26  ;;  %v2478_v38 = vsel %vm1967_vm3, %v2332_v31, -inf  ;;  %v2386_v19 = vmax.f32 %v2384_v9, %v2385_v25  ;;  %v2392_v28 = vrot.slane %v2391_v20, 1 }
 0x308   : > { %v2474_v14 = vrot.slane %v2473_v17, 2  ;;  %v2479_v40 = vrot.slane %v2478_v38, 4  ;;  %v2397_v46 = vrot.slane %v2396_v27, 2  ;;  %v2604_v22 = vsel %vm2603_vm8, %v4302_v34, %v2602_v11 }
 0x309   : > { %v2460_v49 = vrot.slane %v2459_v36, 2  ;;  %v2393_v47 = vmax.f32 %v2391_v20, %v2392_v28  ;;  %v2606_v32 = vsel %vm2605_vm9, %v4313_v8, %v2604_v22  ;;  %v2198_v55 = vmul.f32 %v4276_v58, %v4344_v18  ;;  %v4416_v12 = vpop.f32.mrb[32].mxu1 }
 0x30a   : > { %v2475_v15 = vmax.f32 %v2473_v17, %v2474_v14  ;;  %v2480_v51 = vmax.f32 %v2478_v38, %v2479_v40  ;;  %v2398_v33 = vmax.f32 %v2396_v27, %v2397_v46  ;;  %v2608_v56 = vsel %vm2607_vm10, %v2379_v0, %v2606_v32  ;;  %v4422_v45 = vpop.f32.mrb[33].mxu1 }
 0x30b   : > { %v2461_v61 = vmax.f32 %v2459_v36, %v2460_v49  ;;  %v2610_v63 = vsel %vm2609_vm13, %v2386_v19, %v2608_v56  ;;  %v2234_v34 = vadd.f32 %v4280_v2, %v2198_v55  ;;  %v2203_v59 = vmul.f32 %v4357_v44, %v4276_v58  ;;  %v4425_v3 = vpop.f32.mrb[34].mxu1 }
 0x30c   : > { %v2476_v8 = vrot.slane %v2475_v15, 1  ;;  %v2481_v53 = vrot.slane %v2480_v51, 2  ;;  %v2399_v18 = vrot.slane %v2398_v33, 1  ;;  %v2612_v1 = vsel %vm2611_vm14, %v2393_v47, %v2610_v63  ;;  %v4429_v5 = vpop.f32.mrb[35].mxu1 }
 0x30d   : > { %v2434_v7 = vrot.slane %v4386_v4, 1  ;;  %vm2266_vm1 = vcmp.gt.f32.partialorder %v2234_v34, 0.0  ;;  %v2298_v9 = vmul.f32 0.2, %v2234_v34  ;;  %v2239_v10 = vadd.f32 %v4280_v2, %v2203_v59 }
 0x30e   : > { %v4431_v42 = vmax.f32 %v2438_v37, %v2439_v29  ;;  %v2462_v44 = vrot.slane %v2461_v61, 1  ;;  %v2400_v23 = vmax.f32 %v2398_v33, %v2399_v18  ;;  %v2201_v35 = vmul.f32 %v4276_v58, %v4361_v41 }
 0x30f   : > { %v4435_v24 = vmax.f32 %v2475_v15, %v2476_v8  ;;  %v2330_v25 = vsel %vm2266_vm1, %v2234_v34, %v2298_v9  ;;  %vm2271_vm2 = vcmp.gt.f32.partialorder %v2239_v10, 0.0  ;;  %v2303_v26 = vmul.f32 0.2, %v2239_v10 }
 0x310   : > { %v2482_v0 = vmax.f32 %v2480_v51, %v2481_v53  ;;  %v2614_v20 = vsel %vm2613_vm0, %v2400_v23, %v2612_v1  ;;  %v2464_v27 = vsel %vm1967_vm3, %v2330_v25, -inf  ;;  %v2237_v17 = vadd.f32 %v4280_v2, %v2201_v35 }
 0x311   : > { %2640 = vxpose.xlu0.b32.start [1/4] (short) (narrow) %v2614_v20, 32  ;;  %v2465_v37 = vrot.slane %v2464_v27, 4  ;;  %v2335_v29 = vsel %vm2271_vm2, %v2239_v10, %v2303_v26  ;;  %v2204_v31 = vmul.f32 %v4365_v21, %v4276_v58  ;;  %v2202_v41 = vmul.f32 %v4276_v58, %v4373_v52 }
 0x312   : > { %v4444_v11 = vmax.f32 %v2461_v61, %v2462_v44  ;;  %v2499_v36 = vsel %vm1967_vm3, %v2335_v29, -inf  ;;  %vm2269_vm4 = vcmp.gt.f32.partialorder %v2237_v17, 0.0  ;;  %v2301_v38 = vmul.f32 0.2, %v2237_v17 }
 0x313   : > { %v2466_v19 = vmax.f32 %v2464_v27, %v2465_v37  ;;  %v2500_v28 = vrot.slane %v2499_v36, 4  ;;  %v2240_v14 = vadd.f32 %v4280_v2, %v2204_v31  ;;  %v2238_v40 = vadd.f32 %v4280_v2, %v2202_v41 }
 0x314   : > { %v2333_v46 = vsel %vm2269_vm4, %v2237_v17, %v2301_v38  ;;  %v2207_v22 = vmul.f32 %v4390_v13, %v4276_v58  ;;  %v2205_v21 = vmul.f32 %v4276_v58, %v4393_v62  ;;  %v2208_v52 = vmul.f32 %v4396_v16, %v4276_v58 }
 0x315   : > { %v2483_v49 = vrot.slane %v2482_v0, 1  ;;  %v2467_v47 = vrot.slane %v2466_v19, 2  ;;  %v2485_v32 = vsel %vm1967_vm3, %v2333_v46, -inf  ;;  %vm2272_vm5 = vcmp.gt.f32.partialorder %v2240_v14, 0.0 }
 0x316   : > { %v2486_v55 = vrot.slane %v2485_v32, 4  ;;  %v2304_v15 = vmul.f32 0.2, %v2240_v14  ;;  %vm2270_vm7 = vcmp.gt.f32.partialorder %v2238_v40, 0.0  ;;  %v2302_v51 = vmul.f32 0.2, %v2238_v40 }
 0x317   : > { %v2468_v33 = vmax.f32 %v2466_v19, %v2467_v47  ;;  %v4456_v56 = vmax.f32 %v2499_v36, %v2500_v28  ;;  %v2243_v13 = vadd.f32 %v4280_v2, %v2207_v22  ;;  %v2241_v61 = vadd.f32 %v4280_v2, %v2205_v21 }
 0x318   : > { %v2487_v62 = vmax.f32 %v2485_v32, %v2486_v55  ;;  %v2336_v63 = vsel %vm2272_vm5, %v2240_v14, %v2304_v15  ;;  %v2334_v34 = vsel %vm2270_vm7, %v2238_v40, %v2302_v51  ;;  %v2244_v16 = vadd.f32 %v4280_v2, %v2208_v52 }
 0x319   : > { %v2469_v59 = vrot.slane %v2468_v33, 1  ;;  %v4462_v8 = vsel %vm1967_vm3, %v2336_v63, -inf  ;;  %v2492_v53 = vsel %vm1967_vm3, %v2334_v34, -inf  ;;  %vm2275_vm11 = vcmp.gt.f32.partialorder %v2243_v13, 0.0 }
 0x31a   : > { %v4465_v18 = vmax.f32 %v2482_v0, %v2483_v49  ;;  %v2488_v1 = vrot.slane %v2487_v62, 2  ;;  %v2493_v9 = vrot.slane %v2492_v53, 4  ;;  %v2307_v10 = vmul.f32 0.2, %v2243_v13 }
 0x31b   : > { %v2502_v44 = vrot.slane %v4456_v56, 2  ;;  %v2507_v23 = vrot.slane %v4462_v8, 4  ;;  %vm2273_vm12 = vcmp.gt.f32.partialorder %v2241_v61, 0.0  ;;  %v2305_v35 = vmul.f32 0.2, %v2241_v61 }
 0x31c   : > { %v2494_v25 = vmax.f32 %v2492_v53, %v2493_v9  ;;  %v2339_v26 = vsel %vm2275_vm11, %v2243_v13, %v2307_v10  ;;  %vm2276_vm15 = vcmp.gt.f32.partialorder %v2244_v16, 0.0  ;;  %v2308_v20 = vmul.f32 0.2, %v2244_v16 }
 0x31d   : > { %v4469_v27 = vmax.f32 %v2468_v33, %v2469_v59  ;;  %v2527_v17 = vsel %vm1967_vm3, %v2339_v26, -inf  ;;  %v2337_v37 = vsel %vm2273_vm12, %v2241_v61, %v2305_v35  ;;  %v2441_v0 = vrot.slane %v4431_v42, 1 }
 0x31e   : > { %v4473_v29 = vmax.f32 %v2487_v62, %v2488_v1  ;;  %v2528_v31 = vrot.slane %v2527_v17, 4  ;;  %v2513_v41 = vsel %vm1967_vm3, %v2337_v37, -inf  ;;  %v2435_v36 = vmax.f32 %v4386_v4, %v2434_v7 }
 0x31f   : > { %v2495_v38 = vrot.slane %v2494_v25, 2  ;;  %v2514_v19 = vrot.slane %v2513_v41, 4  ;;  %v2340_v28 = vsel %vm2276_vm15, %v2244_v16, %v2308_v20  ;;  %v2447_v14 = vmax.f32 %v4354_v39, %v2446_v48 }
 0x320   : > { %v2529_v40 = vmax.f32 %v2527_v17, %v2528_v31  ;;  %v2534_v46 = vsel %vm1967_vm3, %v2340_v28, -inf  ;;  %v2442_v22 = vmax.f32 %v4431_v42, %v2441_v0  ;;  %v2452_v21 = vmax.f32 %v4371_v50, %v2451_v60 }
 0x321   : > { %v2515_v52 = vmax.f32 %v2513_v41, %v2514_v19  ;;  %v2535_v49 = vrot.slane %v2534_v46, 4  ;;  %v2448_v47 = vrot.slane %v2447_v14, 1  ;;  %v2615_v4 = vsel %vm2601_vm6, %v4379_v57, %v4367_v30 }
 0x322   : > { %v2530_v7 = vrot.slane %v2529_v40, 2  ;;  %v2453_v32 = vrot.slane %v2452_v21, 2  ;;  %v2616_v39 = vsel %vm2603_vm8, %v4363_v43, %v2615_v4  ;;  %v2206_v48 = vmul.f32 %v4276_v58, %v4403_v6 }
 0x323   : > { %v2516_v42 = vrot.slane %v2515_v52, 2  ;;  %v2536_v55 = vmax.f32 %v2534_v46, %v2535_v49  ;;  %v2449_v15 = vmax.f32 %v2447_v14, %v2448_v47  ;;  %v2617_v50 = vsel %vm2605_vm9, %v4375_v54, %v2616_v39 }
 0x324   : > { %v2531_v60 = vmax.f32 %v2529_v40, %v2530_v7  ;;  %v2454_v51 = vmax.f32 %v2452_v21, %v2453_v32  ;;  %v2618_v33 = vsel %vm2607_vm10, %v2435_v36, %v2617_v50  ;;  %v2242_v30 = vadd.f32 %v4280_v2, %v2206_v48 }
 0x325   : > { %v2517_v57 = vmax.f32 %v2515_v52, %v2516_v42  ;;  %v2537_v13 = vrot.slane %v2536_v55, 2  ;;  %v2619_v61 = vsel %vm2609_vm13, %v2442_v22, %v2618_v33  ;;  %v2211_v43 = vmul.f32 %v4416_v12, %v4276_v58 }
 0x326   : > { %v2532_v6 = vrot.slane %v2531_v60, 1  ;;  %v2455_v62 = vrot.slane %v2454_v51, 1  ;;  %v2620_v63 = vsel %vm2611_vm14, %v2449_v15, %v2619_v61  ;;  %vm2274_vm1 = vcmp.gt.f32.partialorder %v2242_v30, 0.0 }
 0x327   : > { %v2490_v54 = vrot.slane %v4473_v29, 1  ;;  %v2518_v34 = vrot.slane %v2517_v57, 1  ;;  %v2306_v16 = vmul.f32 0.2, %v2242_v30  ;;  %v2247_v59 = vadd.f32 %v4280_v2, %v2211_v43 }
 0x328   : > { %v2538_v53 = vmax.f32 %v2536_v55, %v2537_v13  ;;  %v2456_v1 = vmax.f32 %v2454_v51, %v2455_v62  ;;  %v2209_v9 = vmul.f32 %v4276_v58, %v4422_v45  ;;  %v2212_v10 = vmul.f32 %v4425_v3, %v4276_v58 }
 0x329   : > { %v2496_v12 = vmax.f32 %v2494_v25, %v2495_v38  ;;  %v4508_v35 = vmax.f32 %v2531_v60, %v2532_v6  ;;  %v2338_v26 = vsel %vm2274_vm1, %v2242_v30, %v2306_v16  ;;  %vm2279_vm2 = vcmp.gt.f32.partialorder %v2247_v59, 0.0 }
 0x32a   : > { %v2621_v20 = vsel %vm2613_vm0, %v2456_v1, %v2620_v63  ;;  %v2520_v17 = vsel %vm1967_vm3, %v2338_v26, -inf  ;;  %v2311_v37 = vmul.f32 0.2, %v2247_v59  ;;  %v2245_v0 = vadd.f32 %v4280_v2, %v2209_v9 }
 0x32b   : > { %v2519_v31 = vmax.f32 %v2517_v57, %v2518_v34  ;;  %2641 = vxpose.xlu0.b32.cont [2/4] (short) (narrow) %v2621_v20, 32  ;;  %v2521_v41 = vrot.slane %v2520_v17, 4  ;;  %v2248_v45 = vadd.f32 %v4280_v2, %v2212_v10  ;;  %v2210_v3 = vmul.f32 %v4276_v58, %v4429_v5 }
 0x32c   : > { %v2539_v25 = vrot.slane %v2538_v53, 1  ;;  %v2343_v36 = vsel %vm2279_vm2, %v2247_v59, %v2311_v37  ;;  %vm2277_vm4 = vcmp.gt.f32.partialorder %v2245_v0, 0.0  ;;  %v2309_v38 = vmul.f32 0.2, %v2245_v0 }
 0x32d   : > { %v2522_v19 = vmax.f32 %v2520_v17, %v2521_v41  ;;  %v2555_v28 = vsel %vm1967_vm3, %v2343_v36, -inf  ;;  %vm2280_vm5 = vcmp.gt.f32.partialorder %v2248_v45, 0.0  ;;  %v2312_v14 = vmul.f32 0.2, %v2248_v45 }
 0x32e   : > { %v2556_v40 = vrot.slane %v2555_v28, 4  ;;  %v2341_v46 = vsel %vm2277_vm4, %v2245_v0, %v2309_v38  ;;  %v2246_v22 = vadd.f32 %v4280_v2, %v2210_v3  ;;  %v2497_v21 = vrot.slane %v2496_v12, 1 }
 0x32f   : > { %v2523_v52 = vrot.slane %v2522_v19, 2  ;;  %v2541_v49 = vsel %vm1967_vm3, %v2341_v46, -inf  ;;  %v2344_v47 = vsel %vm2280_vm5, %v2248_v45, %v2312_v14  ;;  %v2503_v58 = vmax.f32 %v4456_v56, %v2502_v44 }
 0x330   : > { %v2557_v5 = vmax.f32 %v2555_v28, %v2556_v40  ;;  %v2542_v4 = vrot.slane %v2541_v49, 4  ;;  %v2562_v7 = vsel %vm1967_vm3, %v2344_v47, -inf  ;;  %vm2278_vm7 = vcmp.gt.f32.partialorder %v2246_v22, 0.0 }
 0x331   : > { %v2524_v32 = vmax.f32 %v2522_v19, %v2523_v52  ;;  %v2563_v39 = vrot.slane %v2562_v7, 4  ;;  %v2310_v48 = vmul.f32 0.2, %v2246_v22  ;;  %v2491_v42 = vmax.f32 %v4473_v29, %v2490_v54 }
 0x332   : > { %v2543_v2 = vmax.f32 %v2541_v49, %v2542_v4  ;;  %v2498_v55 = vmax.f32 %v2496_v12, %v2497_v21  ;;  %v2504_v15 = vrot.slane %v2503_v58, 1  ;;  %v2508_v50 = vmax.f32 %v4462_v8, %v2507_v23 }
 0x333   : > { %v2525_v60 = vrot.slane %v2524_v32, 1  ;;  %v2342_v51 = vsel %vm2278_vm7, %v2246_v22, %v2310_v48  ;;  %v2622_v56 = vsel %vm2601_vm6, %v4469_v27, %v4444_v11  ;;  %v2564_v44 = vmax.f32 %v2562_v7, %v2563_v39 }
 0x334   : > { %v2558_v33 = vrot.slane %v2557_v5, 2  ;;  %v2544_v30 = vrot.slane %v2543_v2, 2  ;;  %v2548_v57 = vsel %vm1967_vm3, %v2342_v51, -inf  ;;  %v2509_v13 = vrot.slane %v2508_v50, 2 }
 0x335   : > { %v2540_v29 = vmax.f32 %v2538_v53, %v2539_v25  ;;  %v2526_v61 = vmax.f32 %v2524_v32, %v2525_v60  ;;  %v2549_v43 = vrot.slane %v2548_v57, 4  ;;  %v2623_v6 = vsel %vm2603_vm8, %v4435_v24, %v2622_v56 }
 0x336   : > { %v2545_v62 = vmax.f32 %v2543_v2, %v2544_v30  ;;  %v2510_v8 = vmax.f32 %v2508_v50, %v2509_v13  ;;  %v2624_v23 = vsel %vm2605_vm9, %v4465_v18, %v2623_v6  ;;  %v2565_v63 = vrot.slane %v2564_v44, 2 }
 0x337   : > { %v2550_v54 = vmax.f32 %v2548_v57, %v2549_v43  ;;  %v2505_v11 = vmax.f32 %v2503_v58, %v2504_v15  ;;  %v2625_v27 = vsel %vm2607_vm10, %v2491_v42, %v2624_v23  ;;  %v2629_v34 = vsel %vm2601_vm6, %v2526_v61, %v2519_v31 }
 0x338   : > { %v2546_v16 = vrot.slane %v2545_v62, 1  ;;  %v2511_v59 = vrot.slane %v2510_v8, 1  ;;  %v2626_v53 = vsel %vm2609_vm13, %v2498_v55, %v2625_v27  ;;  %v2559_v1 = vmax.f32 %v2557_v5, %v2558_v33 }
 0x339   : > { %v2551_v9 = vrot.slane %v2550_v54, 2  ;;  %v2627_v24 = vsel %vm2611_vm14, %v2505_v11, %v2626_v53  ;;  %v2566_v10 = vmax.f32 %v2564_v44, %v2565_v63  ;;  %v2630_v12 = vsel %vm2603_vm8, %v4508_v35, %v2629_v34 }
 0x33a   : > { %v2512_v18 = vmax.f32 %v2510_v8, %v2511_v59  ;;  %v2547_v26 = vmax.f32 %v2545_v62, %v2546_v16  ;;  %v2631_v20 = vsel %vm2605_vm9, %v2540_v29, %v2630_v12  ;;  %v2560_v0 = vrot.slane %v2559_v1, 1 }
 0x33b   : > { %v2552_v17 = vmax.f32 %v2550_v54, %v2551_v9  ;;  %v2567_v45 = vrot.slane %v2566_v10, 1 }
 0x33c   : > { %v2628_v37 = vsel %vm2613_vm0, %v2512_v18, %v2627_v24  ;;  %v2632_v31 = vsel %vm2607_vm10, %v2547_v26, %v2631_v20  ;;  %v2561_v25 = vmax.f32 %v2559_v1, %v2560_v0 }
 0x33d   : > { %2642 = vxpose.xlu0.b32.cont [3/4] (short) (narrow) %v2628_v37, 32  ;;  %v2553_v41 = vrot.slane %v2552_v17, 1  ;;  %v2568_v36 = vmax.f32 %v2566_v10, %v2567_v45 }
 0x33f   : > { %v2554_v3 = vmax.f32 %v2552_v17, %v2553_v41 }
 0x341   : > { %v2633_v35 = vsel %vm2609_vm13, %v2554_v3, %v2632_v31 }
 0x342   : > { %v2634_v38 = vsel %vm2611_vm14, %v2561_v25, %v2633_v35 }
 0x343   : > { %v2635_v19 = vsel %vm2613_vm0, %v2568_v36, %v2634_v38 }
 0x344   : > { %2643 = vxpose.xlu0.b32.end [4/4] (short) (narrow) %v2635_v19, 32 }
 0x3b8   : > { %v2656_v28 = vpop.trf.xlu0 }
 0x3b9   : > { %2672 = vst.msk [vmem:[%s422_s18] sm:$0xff] %vm1967_vm3, %v2656_v28 }
 0x3bc   : > { %v2657_v14 = vpop.trf.xlu0 }
 0x3bd   : > { %2673 = vst.msk [vmem:[%s422_s18 + $0x8] sm:$0xff] %vm1967_vm3, %v2657_v14 }
 0x3c0   : > { %v2658_v40 = vpop.trf.xlu0 }
 0x3c1   : > { %2674 = vst.msk [vmem:[%s422_s18 + $0x10] sm:$0xff] %vm1967_vm3, %v2658_v40 }
 0x3c4   : > { %v2659_v46 = vpop.trf.xlu0 }
 0x3c5   : > { %2675 = vst.msk [vmem:[%s422_s18 + $0x18] sm:$0xff] %vm1967_vm3, %v2659_v46 }
 0x3c6   : > { %3408 = shalt.err (!%p3405_p7)
}
 0x3c7   : > { %s3409_s10 = scalar_lea.hbm %s4557_s12, 512  ;;  %s3413_s0 = scalar_lea.hbm %s4655_s20, 1024 }
 0x3c8   : > { %p3410_p5 = scmp.ne.s32.totalorder %s4557_s12, %s3409_s10  ;;  %p3414_p9 = scmp.lt.u32.totalorder %s4557_s12, %s4655_s20 }
 0x3c9   : > { %p3415_p1 = scmp.lt.u32.totalorder %s3413_s0, %s3409_s10  ;;  %p3417_p6 = scmp.lt.u32.totalorder %s3409_s10, %s4557_s12 }
 0x3ca   : > { %p3411_p4 = pnand %p3410_p5, %p4656_p10 }
 0x3cb   : > { %p3416_p3 = por %p3415_p1, %p3414_p9 }
 0x3cc   : > { %p3412_p8 = pneg %p3411_p4 }
 0x3cd   : > { %p3418_p13 = por %p3417_p6, %p3416_p3 }
 0x3cf   : > { %p3419_p2 = pnand %p3418_p13, %p3412_p8 }
 0x3d1   : > { %3422 = shalt.err (!%p3419_p2)
}
 0x3d2   : > { %s3507_s13 = smov 128   ;;  %s3508_s30 = smov 8  }
 0x3d3   : > { %3090 = dma.vmem_to_hbm [thread:$0]  (%p4656_p10), %s4551_s19, 512, %s4557_s12, %s2677_s4, %s3507_s13, %s3507_s13, %s3508_s30  }
 0x3d4 PF: > { %s2706_s18 = sand.u32 1, %s3473_s24   ;;  %p4657_p11 = scmp.ne.s32.totalorder %s4642_s11, 0 }
 0x3d5   : > { %p4658_p12 = scmp.ge.s32.totalorder %s3493_s29, 2  ;;  %s2707_s2 = scalar_lea.sflag [#allocation4], %s2706_s18 }
 0x3d7   : > { %p3116_p0 = pnand %p4658_p12, %p4657_p11 }
 0x3d9   : > { %3468 = dma.done.wait (!%p3116_p0), %s2707_s2, 512  }
 0x3da   : > { %3470 = vsyncadd (!%p3116_p0), %s2707_s2, 4294966784  ;;  %s28_s29 = sadd.s32 1, %s3493_s29   ;;  %s4659_s24 = smov %s3477_s25 }
 0x3db   : > { %p25_p7 = scmp.ge.s32.totalorder %s28_s29, 4   ;;  %s4660_s25 = smov %s3481_s26 }
 0x3dc   : > { %s4661_s26 = smov %s3740_s7  ;;  %s4662_s27 = smov %s3489_s28 }
 0x3dd   : > { %s4663_s28 = smov %s4665_s15  ;;  %27 = sbr.rel (!%p25_p7) target bundleno = 18 (0x12), region = 126 }
 0x3e4   :  { %2712 = vsyncpa [#allocation3], 1 }
 0x3e5   :  { %2714 = vsyncpa [#allocation3 + $0x1], 1 }
 0x3e6   :  { %2715 = vsyncpa [#allocation6], 1 }
 0x3e7   :  { %2717 = vsyncpa [#allocation6 + $0x1], 1 }
 0x3e8   :  { %2718 = vsyncpa [#allocation9], 1 }
 0x3e9   :  { %2719 = vsyncpa [#allocation12], 1 }
 0x3ea   :  { %2720 = vsyncpa [#allocation4], 1 }
 0x3eb   :  { %2722 = vsyncpa [#allocation4 + $0x1], 1 }

</bundles_post_ra>
